<compile_context>
chip_gen: v5e
topology: v5e:2x2
jax: 0.10.0
libtpu: 0.0.40
codegen_flags: <defaults>
</compile_context>

<pallas_src>
import jax
import jax.numpy as jnp
from jax.experimental import pallas as pl
from jax.experimental.pallas import tpu as pltpu

IN_FEATURES = 100 * 100 * 3          # 30000
K_PAD = 236 * 128                    # 30208: smallest multiple of 256 >= 30000
K_HALF = K_PAD // 2                  # 15104 = 118 * 128 (lane-aligned)


def layer1_kernel(x_ref, w1_ref, part_ref):
    # One K-half of layer 1: (B, K/2)bf16 @ (K/2, 128)bf16 -> (B, 128)f32 on MXU.
    part_ref[0] = jnp.dot(x_ref[...], w1_ref[...],
                          preferred_element_type=jnp.float32)


def tail_kernel(part_ref, b1_ref, w2_ref, b2_ref, w3_ref, b3_ref,
                w4_ref, b4_ref, w5_ref, b5_ref, w6_ref, b6_ref, out_ref):
    # Sum the two K-half partials, add bias, ReLU, then the small resident
    # layers 128->256->512->256->128->2 (all f32, all in VMEM).
    h = jnp.maximum(part_ref[0] + part_ref[1] + b1_ref[...], 0.0)
    h = jnp.maximum(
        jnp.dot(h, w2_ref[...], preferred_element_type=jnp.float32)
        + b2_ref[...], 0.0)
    h = jnp.maximum(
        jnp.dot(h, w3_ref[...], preferred_element_type=jnp.float32)
        + b3_ref[...], 0.0)
    h = jnp.maximum(
        jnp.dot(h, w4_ref[...], preferred_element_type=jnp.float32)
        + b4_ref[...], 0.0)
    h = jnp.maximum(
        jnp.dot(h, w5_ref[...], preferred_element_type=jnp.float32)
        + b5_ref[...], 0.0)
    out_ref[...] = (
        jnp.dot(h, w6_ref[...], preferred_element_type=jnp.float32)
        + b6_ref[...]).astype(out_ref.dtype)


def init_params(key):
    """Deterministic synthetic parameters (shapes match the nn.Linear stack)."""
    dims = [IN_FEATURES, 128, 256, 512, 256, 128, 2]
    params = {}
    keys = jax.random.split(key, 2 * (len(dims) - 1))
    for i in range(len(dims) - 1):
        fan_in, fan_out = dims[i], dims[i + 1]
        scale = 1.0 / jnp.sqrt(jnp.float32(fan_in))
        params[f"w{i+1}"] = scale * jax.random.normal(
            keys[2 * i], (fan_in, fan_out), jnp.float32)
        params[f"b{i+1}"] = scale * jax.random.normal(
            keys[2 * i + 1], (1, fan_out), jnp.float32)
    return params


def prepare_params(params):
    """One-time (outside jit) kernel-format params: pad W1 rows with zeros to
    K_PAD and cast it to bf16.  Zero rows + zero-padded x columns make the K
    padding a numerical no-op."""
    kp = dict(params)
    w1 = jnp.pad(params["w1"], ((0, K_PAD - IN_FEATURES), (0, 0)))
    kp["w1"] = w1.astype(jnp.bfloat16)
    return kp


@jax.jit
def mlp_forward(x, kparams):
    B = x.shape[0]
    # Flatten NCHW row-major exactly like torch's reshape(-1, 30000); pad K
    # with zeros and stream the activations as bf16 (tiny vs the W1 stream).
    xf = x.reshape(B, -1)
    xf = jnp.pad(xf, ((0, 0), (0, K_PAD - IN_FEATURES))).astype(jnp.bfloat16)

    # Layer 1: two K-halves on a "parallel" grid axis (one per TensorCore on
    # v7x), each producing a partial (B, 128) f32 product.
    part = pl.pallas_call(
        layer1_kernel,
        out_shape=jax.ShapeDtypeStruct((2, B, 128), jnp.float32),
        grid_spec=pltpu.PrefetchScalarGridSpec(
            num_scalar_prefetch=0,
            grid=(2,),
            in_specs=[
                pl.BlockSpec((B, K_HALF), lambda c: (0, c)),      # x half (bf16)
                pl.BlockSpec((K_HALF, 128), lambda c: (c, 0)),    # W1 half (bf16)
            ],
            out_specs=pl.BlockSpec((1, B, 128), lambda c: (c, 0, 0)),
        ),
        compiler_params=pltpu.CompilerParams(
            dimension_semantics=("parallel",)),
    )(xf, kparams["w1"])

    # Tail: bias + ReLU of layer 1 plus the small 128->...->2 stack. All
    # operands fit whole in VMEM, so no grid / BlockSpecs are needed.
    return pl.pallas_call(
        tail_kernel,
        out_shape=jax.ShapeDtypeStruct((B, 2), jnp.float32),
    )(part,
      kparams["b1"],
      kparams["w2"], kparams["b2"],
      kparams["w3"], kparams["b3"],
      kparams["w4"], kparams["b4"],
      kparams["w5"], kparams["b5"],
      kparams["w6"], kparams["b6"])


def mlp_reference(x, params):
    h = x.reshape(x.shape[0], -1).astype(jnp.float32)
    for i in range(1, 6):
        h = jnp.maximum(h @ params[f"w{i}"] + params[f"b{i}"], 0.0)
    return h @ params["w6"] + params["b6"]


if __name__ == "__main__":
    key = jax.random.PRNGKey(0)
    k_x, k_p = jax.random.split(key)

    # Batch of 2 NCHW images, as MLPNet's forward implies (3 x 100 x 100).
    x = jax.random.normal(k_x, (2, 3, 100, 100), jnp.float32)
    params = init_params(k_p)
    kparams = prepare_params(params)          # one-time pad + bf16 cast of W1

    out = mlp_forward(x, kparams)
    out = jax.block_until_ready(out)

    ref = mlp_reference(x, params)
    assert out.shape == (2, 2)
    # Layer-1 inputs/weights are streamed in bf16 (f32 accumulation), so use a
    # slightly relaxed tolerance vs the all-f32 reference.
    assert jnp.allclose(out, ref, atol=3e-2, rtol=3e-2), (out, ref)

    print("KERNEL_OK")
</pallas_src>

<mosaic_0001>
module attributes {stable_mosaic.version = 11 : i64} {
  func.func @layer1_kernel(%arg0: i32, %arg1: memref<2x15104xbf16, #tpu.memory_space<vmem>>, %arg2: memref<15104x128xbf16, #tpu.memory_space<vmem>>, %arg3: memref<1x2x128xf32, #tpu.memory_space<vmem>>) attributes {dimension_semantics = [#tpu.dimension_semantics<parallel>], iteration_bounds = array<i64: 2>, scalar_prefetch = 0 : i64, scratch_operands = 0 : i64, tpu.core_type = #tpu.core_type<tc>, window_params = [{transform_indices = @transform_0, window_bounds = array<i64: 2, 15104>}, {transform_indices = @transform_1, window_bounds = array<i64: 15104, 128>}, {transform_indices = @transform_2, window_bounds = array<i64: 1, 2, 128>}]} {
    %c0 = arith.constant 0 : index
    %c0_0 = arith.constant 0 : index
    %0 = vector.load %arg1[%c0, %c0_0] : memref<2x15104xbf16, #tpu.memory_space<vmem>>, vector<2x15104xbf16>
    %c0_1 = arith.constant 0 : index
    %c0_2 = arith.constant 0 : index
    %1 = vector.load %arg2[%c0_1, %c0_2] : memref<15104x128xbf16, #tpu.memory_space<vmem>>, vector<15104x128xbf16>
    %cst = arith.constant dense<0.000000e+00> : vector<2x128xf32>
    %2 = tpu.matmul %0, %1, %cst {dimension_numbers = #tpu.dot_dimension_numbers<[1], [0], [0], [1], [0, 0, 1, 1], [], []>} : vector<2x15104xbf16>, vector<15104x128xbf16>, vector<2x128xf32> -> vector<2x128xf32>
    %c0_3 = arith.constant 0 : index
    %c0_4 = arith.constant 0 : index
    %c0_5 = arith.constant 0 : index
    %3 = vector.load %arg3[%c0_3, %c0_4, %c0_5] : memref<1x2x128xf32, #tpu.memory_space<vmem>>, vector<1x2x128xf32>
    %4 = vector.shape_cast %3 : vector<1x2x128xf32> to vector<2x128xf32>
    %5 = vector.shape_cast %2 : vector<2x128xf32> to vector<1x2x128xf32>
    tpu.vector_store %arg3[%c0_3, %c0_4, %c0_5], %5 {strides = array<i32>} : memref<1x2x128xf32, #tpu.memory_space<vmem>>, vector<1x2x128xf32>,
    return
  }
  func.func @transform_0(%arg0: i32) -> (i32, i32) {
    %c0_i32 = arith.constant 0 : i32
    %c0_i32_0 = arith.constant 0 : i32
    return %c0_i32, %arg0 : i32, i32
  }
  func.func @transform_1(%arg0: i32) -> (i32, i32) {
    %c0_i32 = arith.constant 0 : i32
    %c0_i32_0 = arith.constant 0 : i32
    return %arg0, %c0_i32 : i32, i32
  }
  func.func @transform_2(%arg0: i32) -> (i32, i32, i32) {
    %c0_i32 = arith.constant 0 : i32
    %c0_i32_0 = arith.constant 0 : i32
    %c0_i32_1 = arith.constant 0 : i32
    return %arg0, %c0_i32, %c0_i32_0 : i32, i32, i32
  }
}

module attributes {stable_mosaic.version = 11 : i64} {
  func.func @tail_kernel(%arg0: memref<2x2x128xf32, #tpu.memory_space<vmem>>, %arg1: memref<1x128xf32, #tpu.memory_space<vmem>>, %arg2: memref<128x256xf32, #tpu.memory_space<vmem>>, %arg3: memref<1x256xf32, #tpu.memory_space<vmem>>, %arg4: memref<256x512xf32, #tpu.memory_space<vmem>>, %arg5: memref<1x512xf32, #tpu.memory_space<vmem>>, %arg6: memref<512x256xf32, #tpu.memory_space<vmem>>, %arg7: memref<1x256xf32, #tpu.memory_space<vmem>>, %arg8: memref<256x128xf32, #tpu.memory_space<vmem>>, %arg9: memref<1x128xf32, #tpu.memory_space<vmem>>, %arg10: memref<128x2xf32, #tpu.memory_space<vmem>>, %arg11: memref<1x2xf32, #tpu.memory_space<vmem>>, %arg12: memref<2x2xf32, #tpu.memory_space<vmem>>) attributes {dimension_semantics = [], scalar_prefetch = 0 : i64, scratch_operands = 0 : i64, tpu.core_type = #tpu.core_type<tc>} {
    %c0 = arith.constant 0 : index
    %c0_0 = arith.constant 0 : index
    %c0_1 = arith.constant 0 : index
    %0 = vector.load %arg0[%c0, %c0_0, %c0_1] : memref<2x2x128xf32, #tpu.memory_space<vmem>>, vector<1x2x128xf32>
    %1 = vector.shape_cast %0 : vector<1x2x128xf32> to vector<2x128xf32>
    %c1 = arith.constant 1 : index
    %c0_2 = arith.constant 0 : index
    %c0_3 = arith.constant 0 : index
    %2 = vector.load %arg0[%c1, %c0_2, %c0_3] : memref<2x2x128xf32, #tpu.memory_space<vmem>>, vector<1x2x128xf32>
    %3 = vector.shape_cast %2 : vector<1x2x128xf32> to vector<2x128xf32>
    %4 = arith.addf %1, %3 : vector<2x128xf32>
    %c0_4 = arith.constant 0 : index
    %c0_5 = arith.constant 0 : index
    %5 = vector.load %arg1[%c0_4, %c0_5] : memref<1x128xf32, #tpu.memory_space<vmem>>, vector<1x128xf32>
    %6 = vector.broadcast %5 : vector<1x128xf32> to vector<2x128xf32>
    %7 = arith.addf %4, %6 : vector<2x128xf32>
    %cst = arith.constant 0.000000e+00 : f32
    %8 = vector.broadcast %cst : f32 to vector<2x128xf32>
    %9 = arith.maximumf %7, %8 : vector<2x128xf32>
    %c0_6 = arith.constant 0 : index
    %c0_7 = arith.constant 0 : index
    %10 = vector.load %arg2[%c0_6, %c0_7] : memref<128x256xf32, #tpu.memory_space<vmem>>, vector<128x256xf32>
    %cst_8 = arith.constant dense<0.000000e+00> : vector<2x256xf32>
    %11 = tpu.matmul %9, %10, %cst_8 {dimension_numbers = #tpu.dot_dimension_numbers<[1], [0], [0], [1], [0, 0, 1, 1], [], []>} : vector<2x128xf32>, vector<128x256xf32>, vector<2x256xf32> -> vector<2x256xf32>
    %c0_9 = arith.constant 0 : index
    %c0_10 = arith.constant 0 : index
    %12 = vector.load %arg3[%c0_9, %c0_10] : memref<1x256xf32, #tpu.memory_space<vmem>>, vector<1x256xf32>
    %13 = vector.broadcast %12 : vector<1x256xf32> to vector<2x256xf32>
    %14 = arith.addf %11, %13 : vector<2x256xf32>
    %cst_11 = arith.constant 0.000000e+00 : f32
    %15 = vector.broadcast %cst_11 : f32 to vector<2x256xf32>
    %16 = arith.maximumf %14, %15 : vector<2x256xf32>
    %c0_12 = arith.constant 0 : index
    %c0_13 = arith.constant 0 : index
    %17 = vector.load %arg4[%c0_12, %c0_13] : memref<256x512xf32, #tpu.memory_space<vmem>>, vector<256x512xf32>
    %cst_14 = arith.constant dense<0.000000e+00> : vector<2x512xf32>
    %18 = tpu.matmul %16, %17, %cst_14 {dimension_numbers = #tpu.dot_dimension_numbers<[1], [0], [0], [1], [0, 0, 1, 1], [], []>} : vector<2x256xf32>, vector<256x512xf32>, vector<2x512xf32> -> vector<2x512xf32>
    %c0_15 = arith.constant 0 : index
    %c0_16 = arith.constant 0 : index
    %19 = vector.load %arg5[%c0_15, %c0_16] : memref<1x512xf32, #tpu.memory_space<vmem>>, vector<1x512xf32>
    %20 = vector.broadcast %19 : vector<1x512xf32> to vector<2x512xf32>
    %21 = arith.addf %18, %20 : vector<2x512xf32>
    %cst_17 = arith.constant 0.000000e+00 : f32
    %22 = vector.broadcast %cst_17 : f32 to vector<2x512xf32>
    %23 = arith.maximumf %21, %22 : vector<2x512xf32>
    %c0_18 = arith.constant 0 : index
    %c0_19 = arith.constant 0 : index
    %24 = vector.load %arg6[%c0_18, %c0_19] : memref<512x256xf32, #tpu.memory_space<vmem>>, vector<512x256xf32>
    %cst_20 = arith.constant dense<0.000000e+00> : vector<2x256xf32>
    %25 = tpu.matmul %23, %24, %cst_20 {dimension_numbers = #tpu.dot_dimension_numbers<[1], [0], [0], [1], [0, 0, 1, 1], [], []>} : vector<2x512xf32>, vector<512x256xf32>, vector<2x256xf32> -> vector<2x256xf32>
    %c0_21 = arith.constant 0 : index
    %c0_22 = arith.constant 0 : index
    %26 = vector.load %arg7[%c0_21, %c0_22] : memref<1x256xf32, #tpu.memory_space<vmem>>, vector<1x256xf32>
    %27 = vector.broadcast %26 : vector<1x256xf32> to vector<2x256xf32>
    %28 = arith.addf %25, %27 : vector<2x256xf32>
    %cst_23 = arith.constant 0.000000e+00 : f32
    %29 = vector.broadcast %cst_23 : f32 to vector<2x256xf32>
    %30 = arith.maximumf %28, %29 : vector<2x256xf32>
    %c0_24 = arith.constant 0 : index
    %c0_25 = arith.constant 0 : index
    %31 = vector.load %arg8[%c0_24, %c0_25] : memref<256x128xf32, #tpu.memory_space<vmem>>, vector<256x128xf32>
    %cst_26 = arith.constant dense<0.000000e+00> : vector<2x128xf32>
    %32 = tpu.matmul %30, %31, %cst_26 {dimension_numbers = #tpu.dot_dimension_numbers<[1], [0], [0], [1], [0, 0, 1, 1], [], []>} : vector<2x256xf32>, vector<256x128xf32>, vector<2x128xf32> -> vector<2x128xf32>
    %c0_27 = arith.constant 0 : index
    %c0_28 = arith.constant 0 : index
    %33 = vector.load %arg9[%c0_27, %c0_28] : memref<1x128xf32, #tpu.memory_space<vmem>>, vector<1x128xf32>
    %34 = vector.broadcast %33 : vector<1x128xf32> to vector<2x128xf32>
    %35 = arith.addf %32, %34 : vector<2x128xf32>
    %cst_29 = arith.constant 0.000000e+00 : f32
    %36 = vector.broadcast %cst_29 : f32 to vector<2x128xf32>
    %37 = arith.maximumf %35, %36 : vector<2x128xf32>
    %c0_30 = arith.constant 0 : index
    %c0_31 = arith.constant 0 : index
    %38 = vector.load %arg10[%c0_30, %c0_31] : memref<128x2xf32, #tpu.memory_space<vmem>>, vector<128x2xf32>
    %cst_32 = arith.constant dense<0.000000e+00> : vector<2x2xf32>
    %39 = tpu.matmul %37, %38, %cst_32 {dimension_numbers = #tpu.dot_dimension_numbers<[1], [0], [0], [1], [0, 0, 1, 1], [], []>} : vector<2x128xf32>, vector<128x2xf32>, vector<2x2xf32> -> vector<2x2xf32>
    %c0_33 = arith.constant 0 : index
    %c0_34 = arith.constant 0 : index
    %40 = vector.load %arg11[%c0_33, %c0_34] : memref<1x2xf32, #tpu.memory_space<vmem>>, vector<1x2xf32>
    %41 = vector.broadcast %40 : vector<1x2xf32> to vector<2x2xf32>
    %42 = arith.addf %39, %41 : vector<2x2xf32>
    %c0_35 = arith.constant 0 : index
    %c0_36 = arith.constant 0 : index
    %43 = vector.load %arg12[%c0_35, %c0_36] : memref<2x2xf32, #tpu.memory_space<vmem>>, vector<2x2xf32>
    tpu.vector_store %arg12[%c0_35, %c0_36], %42 {strides = array<i32>} : memref<2x2xf32, #tpu.memory_space<vmem>>, vector<2x2xf32>,
    return
  }
}

</mosaic_0001>

<bundles_post_ra>
// kernel: mlp_forward.3
= control target key start
LH: loop header
LB: loop body
LE: loop exit
PB: predicated region body
PF: predicated region fallthrough
CT: control target
= control target key end

     0   :  { %17 = vsyncpa [#allocation3], 0  ;;  %s1483_s0 = inlined_call_operand.vmem [shape: f32[2,2,128], index: 0, kind: input, shape index: {}]   ;;  %s1484_s1 = inlined_call_operand.hbm [shape: f32[1,128], index: 1, kind: input, shape index: {}]   ;;  %s1485_s2 = inlined_call_operand.hbm [shape: f32[128,256], index: 2, kind: input, shape index: {}]   ;;  %s1486_s3 = inlined_call_operand.hbm [shape: f32[1,256], index: 3, kind: input, shape index: {}]   ;;  %s1487_s4 = inlined_call_operand.hbm [shape: f32[256,512], index: 4, kind: input, shape index: {}]   ;;  %s1488_s5 = inlined_call_operand.hbm [shape: f32[1,512], index: 5, kind: input, shape index: {}]   ;;  %s1489_s6 = inlined_call_operand.hbm [shape: f32[512,256], index: 6, kind: input, shape index: {}]   ;;  %s1490_s7 = inlined_call_operand.hbm [shape: f32[1,256], index: 7, kind: input, shape index: {}]   ;;  %s1491_s8 = inlined_call_operand.hbm [shape: f32[256,128], index: 8, kind: input, shape index: {}]   ;;  %s1492_s9 = inlined_call_operand.hbm [shape: f32[1,128], index: 9, kind: input, shape index: {}]   ;;  %s1493_s10 = inlined_call_operand.vmem [shape: f32[128,2], index: 10, kind: input, shape index: {}]   ;;  %s1494_s11 = inlined_call_operand.hbm [shape: f32[1,2], index: 11, kind: input, shape index: {}]   ;;  %s1495_s12 = inlined_call_operand.hbm [shape: f32[2,2], index: 12, kind: output, shape index: {}]  }
   0x1   :  { %18 = vsyncpa [#allocation6], 0 }
   0x2   :  { %19 = vsyncpa [#allocation9], 0 }
   0x3   :  { %20 = vsyncpa [#allocation12], 0 }
   0x4   :  { %21 = vsyncpa [#allocation15], 0 }
   0x5   :  { %22 = vsyncpa [#allocation18], 0  ;;  %s41_s23 = sshll.u32 %s1485_s2, 4  ;;  %s42_s23 = int_to_ptr.hbm [resolvable:$true] %s41_s23 }
   0x6   :  { %23 = vsyncpa [#allocation4], 0  ;;  %s1314_s24 = smov [#allocation5]   ;;  %s65_s28 = sshll.u32 %s1487_s4, 4  ;;  %s66_s28 = int_to_ptr.hbm [resolvable:$true] %s65_s28 }
   0x7   :  { %s43_s25 = sshll.u32 %s1314_s24, 4  ;;  %s1315_s29 = smov 256   ;;  %s44_s25 = int_to_ptr.vmem [resolvable:$true] %s43_s25 }
   0x8   :  { %s1316_s30 = smov 16   ;;  %s1317_s13 = smov [#allocation8]  }
   0x9   :  { %49 = dma.hbm_to_vmem [thread:$0]  %s42_s23, 4096, %s44_s25, [#allocation6], %s1315_s29, %s1315_s29, %s1316_s30  }
   0xa   :  { %s67_s14 = sshll.u32 %s1317_s13, 4  ;;  %s1318_s15 = smov 512   ;;  %s68_s14 = int_to_ptr.vmem [resolvable:$true] %s67_s14 }
   0xb   :  { %s1319_s16 = smov 32   ;;  %s89_s18 = sshll.u32 %s1489_s6, 4  ;;  %s90_s18 = int_to_ptr.hbm [resolvable:$true] %s89_s18 }
   0xc   :  { %73 = dma.hbm_to_vmem [thread:$0]  %s66_s28, 16384, %s68_s14, [#allocation9], %s1318_s15, %s1318_s15, %s1319_s16  }
   0xd   :  { %s1320_s19 = smov [#allocation11]   ;;  %s113_s22 = sshll.u32 %s1491_s8, 4  ;;  %s114_s22 = int_to_ptr.hbm [resolvable:$true] %s113_s22 }
   0xe   :  { %s91_s20 = sshll.u32 %s1320_s19, 4  ;;  %s1321_s23 = smov [#allocation14]   ;;  %s92_s20 = int_to_ptr.vmem [resolvable:$true] %s91_s20 }
   0xf   :  { %97 = dma.hbm_to_vmem [thread:$0]  %s90_s18, 16384, %s92_s20, [#allocation12], %s1315_s29, %s1315_s29, %s1316_s30  }
  0x10   :  { %s115_s24 = sshll.u32 %s1321_s23, 4  ;;  %s1322_s25 = smov 128   ;;  %s116_s24 = int_to_ptr.vmem [resolvable:$true] %s115_s24 }
  0x11   :  { %s1323_s26 = smov 8   ;;  %s31_s6 = sshll.u32 %s1484_s1, 4  ;;  %s32_s6 = int_to_ptr.hbm [resolvable:$true] %s31_s6 }
  0x12   :  { %121 = dma.hbm_to_vmem [thread:$0]  %s114_s22, 4096, %s116_s24, [#allocation15], %s1322_s25, %s1322_s25, %s1323_s26  }
  0x13   :  { %s1324_s13 = smov [#allocation2]   ;;  %s55_s8 = sshll.u32 %s1486_s3, 4  ;;  %s56_s8 = int_to_ptr.hbm [resolvable:$true] %s55_s8 }
  0x14   :  { %s33_s14 = sshll.u32 %s1324_s13, 4  ;;  %s1325_s29 = smov [#allocation7]   ;;  %s34_s14 = int_to_ptr.vmem [resolvable:$true] %s33_s14 }
  0x15   :  { %36 = dma.hbm_to_vmem [thread:$0]  %s32_s6, 16, %s34_s14, [#allocation3]  }
  0x16   :  { %s57_s30 = sshll.u32 %s1325_s29, 4  ;;  %s79_s18 = sshll.u32 %s1488_s5, 4  ;;  %s58_s30 = int_to_ptr.vmem [resolvable:$true] %s57_s30  ;;  %s80_s18 = int_to_ptr.hbm [resolvable:$true] %s79_s18 }
  0x17   :  { %60 = dma.hbm_to_vmem [thread:$0]  %s56_s8, 32, %s58_s30, [#allocation6]  }
  0x18   :  { %s103_s20 = sshll.u32 %s1490_s7, 4  ;;  %s1326_s21 = smov [#allocation10]   ;;  %s104_s20 = int_to_ptr.hbm [resolvable:$true] %s103_s20 }
  0x19   :  { %s81_s4 = sshll.u32 %s1326_s21, 4  ;;  %s1327_s3 = smov [#allocation13]   ;;  %s82_s4 = int_to_ptr.vmem [resolvable:$true] %s81_s4 }
  0x1a   :  { %84 = dma.hbm_to_vmem [thread:$0]  %s80_s18, 64, %s82_s4, [#allocation9]  }
  0x1b   :  { %s105_s22 = sshll.u32 %s1327_s3, 4  ;;  %s127_s25 = sshll.u32 %s1492_s9, 4  ;;  %s106_s22 = int_to_ptr.vmem [resolvable:$true] %s105_s22  ;;  %s128_s25 = int_to_ptr.hbm [resolvable:$true] %s127_s25 }
  0x1c   :  { %108 = dma.hbm_to_vmem [thread:$0]  %s104_s20, 32, %s106_s22, [#allocation12]  }
  0x1d   :  { %s140_s27 = sshll.u32 %s1494_s11, 4  ;;  %s1328_s28 = smov [#allocation16]   ;;  %s141_s27 = int_to_ptr.hbm [resolvable:$true] %s140_s27 }
  0x1e   :  { %s129_s7 = sshll.u32 %s1328_s28, 4  ;;  %s1329_s6 = smov [#allocation17]   ;;  %s130_s7 = int_to_ptr.vmem [resolvable:$true] %s129_s7 }
  0x1f   :  { %132 = dma.hbm_to_vmem [thread:$0]  %s128_s25, 16, %s130_s7, [#allocation15]  }
  0x20   :  { %s142_s13 = sshll.u32 %s1329_s6, 4  ;;  %s143_s13 = int_to_ptr.vmem [resolvable:$true] %s142_s13 }
  0x21   :  { %145 = dma.hbm_to_vmem [thread:$0]  %s141_s27, 16, %s143_s13, [#allocation18]  }
  0x22   :  { %1300 = dma.done.wait [#allocation3], 16  }
  0x23   :  { %1301 = vsyncadd [#allocation3], 4294967280 }
  0x24   :  { %1302 = dma.done.wait [#allocation6], 4128  }
  0x25   :  { %1303 = vsyncadd [#allocation6], 4294963168 }
  0x26   :  { %1304 = dma.done.wait [#allocation9], 16448  }
  0x27   :  { %1305 = vsyncadd [#allocation9], 4294950848 }
  0x28   :  { %1306 = dma.done.wait [#allocation12], 16416  }
  0x29   :  { %1307 = vsyncadd [#allocation12], 4294950880 }
  0x2a   :  { %1308 = dma.done.wait [#allocation15], 4112  }
  0x2b   :  { %1309 = vsyncadd [#allocation15], 4294963184 }
  0x2c   :  { %1310 = dma.done.wait [#allocation18], 16  }
  0x2d   :  { %1311 = vsyncadd [#allocation18], 4294967280  ;;  %v226_v0 = vld [vmem:[#allocation5 + $0xf0] sm:$0xff]  ;;  %v227_v1 = vld [vmem:[#allocation5 + $0xf8] sm:$0xff]  ;;  %s1330_s29 = smov [#allocation19]   ;;  %s1000_s18 = sshll.u32 %s1495_s12, 4  ;;  %s1001_s18 = int_to_ptr.hbm [resolvable:$true] %s1000_s18 }
  0x2e   :  { %v224_v2 = vld [vmem:[#allocation5 + $0xe0] sm:$0xff]  ;;  %234 = vmatpush.msra.mxu0 %v226_v0  ;;  %254 = vmatpush.msra.mxu1 %v227_v1  ;;  %v225_v3 = vld [vmem:[#allocation5 + $0xe8] sm:$0xff]  ;;  %v222_v4 = vld [vmem:[#allocation5 + $0xd0] sm:$0xff]  ;;  %s998_s30 = sshll.u32 %s1330_s29, 4  ;;  %vm991_vm0 = vcmask 9216   ;;  %s999_s30 = int_to_ptr.vmem [resolvable:$true] %s998_s30 }
  0x2f   :  { %v223_v5 = vld [vmem:[#allocation5 + $0xd8] sm:$0xff]  ;;  %v220_v6 = vld [vmem:[#allocation5 + $0xc0] sm:$0xff]  ;;  %v221_v7 = vld [vmem:[#allocation5 + $0xc8] sm:$0xff] }
  0x30   :  { %235 = vmatpush.msra.mxu0 %v224_v2  ;;  %255 = vmatpush.msra.mxu1 %v225_v3  ;;  %v218_v8 = vld [vmem:[#allocation5 + $0xb0] sm:$0xff]  ;;  %v219_v9 = vld [vmem:[#allocation5 + $0xb8] sm:$0xff]  ;;  %v216_v10 = vld [vmem:[#allocation5 + $0xa0] sm:$0xff] }
  0x31   :  { %v217_v11 = vld [vmem:[#allocation5 + $0xa8] sm:$0xff]  ;;  %v214_v12 = vld [vmem:[#allocation5 + $0x90] sm:$0xff]  ;;  %v215_v13 = vld [vmem:[#allocation5 + $0x98] sm:$0xff] }
  0x32   :  { %236 = vmatpush.msra.mxu0 %v222_v4  ;;  %256 = vmatpush.msra.mxu1 %v223_v5  ;;  %v212_v14 = vld [vmem:[#allocation5 + $0x80] sm:$0xff]  ;;  %v213_v15 = vld [vmem:[#allocation5 + $0x88] sm:$0xff]  ;;  %v210_v20 = vld [vmem:[#allocation5 + $0x70] sm:$0xff] }
  0x33   :  { %v336_v16 = vld [vmem:[#allocation8 + $0x1e0] sm:$0xff]  ;;  %v211_v21 = vld [vmem:[#allocation5 + $0x78] sm:$0xff]  ;;  %v1015_v27 = vld [vmem:[%s1483_s0 + $0x2] sm:$0x3] }
  0x34   :  { %237 = vmatpush.msra.mxu0 %v220_v6  ;;  %257 = vmatpush.msra.mxu1 %v221_v7  ;;  %v400_v17 = vld [vmem:[#allocation8 + $0x3e0] sm:$0xff]  ;;  %v186_v26 = vld [vmem:[%s1483_s0] sm:$0x3]  ;;  %v206_v30 = vld [vmem:[#allocation5 + $0x50] sm:$0xff] }
  0x35   :  { %v332_v18 = vld [vmem:[#allocation8 + $0x1c0] sm:$0xff]  ;;  %414 = vmatpush.msra.mxu2 %v336_v16  ;;  %434 = vmatpush.msra.mxu3 %v400_v17  ;;  %v207_v31 = vld [vmem:[#allocation5 + $0x58] sm:$0xff]  ;;  %v189_v36 = vadd.f32 %v1015_v27, %v186_v26  ;;  %v202_v40 = vld [vmem:[#allocation5 + $0x30] sm:$0xff] }
  0x36   :  { %238 = vmatpush.msra.mxu0 %v218_v8  ;;  %258 = vmatpush.msra.mxu1 %v219_v9  ;;  %v396_v19 = vld [vmem:[#allocation8 + $0x3c0] sm:$0xff]  ;;  %v1033_v37 = vld [vmem:[#allocation2] ss:$0 sm:$0xff]  ;;  %v198_v49 = vld [vmem:[#allocation5 + $0x10] sm:$0xff] }
  0x37   :  { %v328_v22 = vld [vmem:[#allocation8 + $0x1a0] sm:$0xff]  ;;  %415 = vmatpush.msra.mxu2 %v332_v18  ;;  %435 = vmatpush.msra.mxu3 %v396_v19  ;;  %v203_v41 = vld [vmem:[#allocation5 + $0x38] sm:$0xff]  ;;  %v194_v46 = vadd.f32 %v1033_v37, %v189_v36  ;;  %v337_v56 = vld [vmem:[#allocation8 + $0x1e8] sm:$0xff] }
  0x38   :  { %239 = vmatpush.msra.mxu0 %v216_v10  ;;  %259 = vmatpush.msra.mxu1 %v217_v11  ;;  %v392_v23 = vld [vmem:[#allocation8 + $0x3a0] sm:$0xff]  ;;  %v199_v50 = vld [vmem:[#allocation5 + $0x18] sm:$0xff]  ;;  %v401_v57 = vld [vmem:[#allocation8 + $0x3e8] sm:$0xff] }
  0x39   :  { %v208_v24 = vld [vmem:[#allocation5 + $0x60] sm:$0xff]  ;;  %v209_v25 = vld [vmem:[#allocation5 + $0x68] sm:$0xff]  ;;  %416 = vmatpush.msra.mxu2 %v328_v22  ;;  %436 = vmatpush.msra.mxu3 %v392_v23  ;;  %v195_v55 = vmax.f32 %v194_v46, 0.0  ;;  %v338_v22 = vld [vmem:[#allocation8 + $0x1f0] sm:$0xff] }
  0x3a   :  { %240 = vmatpush.msra.mxu0 %v214_v12  ;;  %260 = vmatpush.msra.mxu1 %v215_v13  ;;  %v324_v28 = vld [vmem:[#allocation8 + $0x180] sm:$0xff]  ;;  %v333_v60 = vld [vmem:[#allocation8 + $0x1c8] sm:$0xff]  ;;  %v402_v23 = vld [vmem:[#allocation8 + $0x3f0] sm:$0xff] }
  0x3b   :  { %v388_v29 = vld [vmem:[#allocation8 + $0x380] sm:$0xff]  ;;  %417 = vmatpush.msra.mxu2 %v324_v28  ;;  %v397_v61 = vld [vmem:[#allocation8 + $0x3c8] sm:$0xff]  ;;  %v334_v26 = vld [vmem:[#allocation8 + $0x1d0] sm:$0xff] }
  0x3c   :  { %241 = vmatpush.msra.mxu0 %v212_v14  ;;  %261 = vmatpush.msra.mxu1 %v213_v15  ;;  %v320_v32 = vld [vmem:[#allocation8 + $0x160] sm:$0xff]  ;;  %v329_v0 = vld [vmem:[#allocation8 + $0x1a8] sm:$0xff]  ;;  %v398_v27 = vld [vmem:[#allocation8 + $0x3d0] sm:$0xff] }
  0x3d   :  { %v384_v33 = vld [vmem:[#allocation8 + $0x360] sm:$0xff]  ;;  %437 = vmatpush.msra.mxu3 %v388_v29  ;;  %418 = vmatpush.msra.mxu2 %v320_v32  ;;  %v393_v1 = vld [vmem:[#allocation8 + $0x3a8] sm:$0xff]  ;;  %v314_v46 = vld [vmem:[#allocation8 + $0x130] sm:$0xff] }
  0x3e   :  { %242 = vmatpush.msra.mxu0 %v210_v20  ;;  %262 = vmatpush.msra.mxu1 %v211_v21  ;;  %v204_v34 = vld [vmem:[#allocation5 + $0x40] sm:$0xff]  ;;  %v205_v35 = vld [vmem:[#allocation5 + $0x48] sm:$0xff] }
  0x3f   :  { %v316_v38 = vld [vmem:[#allocation8 + $0x140] sm:$0xff]  ;;  %438 = vmatpush.msra.mxu3 %v384_v33  ;;  %v325_v4 = vld [vmem:[#allocation8 + $0x188] sm:$0xff] }
  0x40   :  { %243 = vmatpush.msra.mxu0 %v208_v24  ;;  %263 = vmatpush.msra.mxu1 %v209_v25  ;;  %v380_v39 = vld [vmem:[#allocation8 + $0x340] sm:$0xff]  ;;  %v389_v5 = vld [vmem:[#allocation8 + $0x388] sm:$0xff] }
  0x41   :  { %v312_v42 = vld [vmem:[#allocation8 + $0x120] sm:$0xff]  ;;  %419 = vmatpush.msra.mxu2 %v316_v38  ;;  %439 = vmatpush.msra.mxu3 %v380_v39  ;;  %v321_v8 = vld [vmem:[#allocation8 + $0x168] sm:$0xff]  ;;  %v322_v38 = vld [vmem:[#allocation8 + $0x170] sm:$0xff] }
  0x42   :  { %244 = vmatpush.msra.mxu0 %v206_v30  ;;  %264 = vmatpush.msra.mxu1 %v207_v31  ;;  %v376_v43 = vld [vmem:[#allocation8 + $0x320] sm:$0xff]  ;;  %v385_v9 = vld [vmem:[#allocation8 + $0x368] sm:$0xff]  ;;  %v330_v30 = vld [vmem:[#allocation8 + $0x1b0] sm:$0xff] }
  0x43   :  { %v200_v44 = vld [vmem:[#allocation5 + $0x20] sm:$0xff]  ;;  %v201_v45 = vld [vmem:[#allocation5 + $0x28] sm:$0xff]  ;;  %420 = vmatpush.msra.mxu2 %v312_v42  ;;  %440 = vmatpush.msra.mxu3 %v376_v43  ;;  %v394_v31 = vld [vmem:[#allocation8 + $0x3b0] sm:$0xff] }
  0x44   :  { %245 = vmatpush.msra.mxu0 %v204_v34  ;;  %265 = vmatpush.msra.mxu1 %v205_v35  ;;  %v308_v47 = vld [vmem:[#allocation8 + $0x100] sm:$0xff]  ;;  %v317_v12 = vld [vmem:[#allocation8 + $0x148] sm:$0xff]  ;;  %v326_v34 = vld [vmem:[#allocation8 + $0x190] sm:$0xff] }
  0x45   :  { %v372_v48 = vld [vmem:[#allocation8 + $0x300] sm:$0xff]  ;;  %421 = vmatpush.msra.mxu2 %v308_v47  ;;  %v381_v13 = vld [vmem:[#allocation8 + $0x348] sm:$0xff]  ;;  %v390_v35 = vld [vmem:[#allocation8 + $0x390] sm:$0xff] }
  0x46   :  { %246 = vmatpush.msra.mxu0 %v202_v40  ;;  %266 = vmatpush.msra.mxu1 %v203_v41  ;;  %v304_v51 = vld [vmem:[#allocation8 + $0xe0] sm:$0xff]  ;;  %v313_v16 = vld [vmem:[#allocation8 + $0x128] sm:$0xff]  ;;  %v386_v39 = vld [vmem:[#allocation8 + $0x370] sm:$0xff] }
  0x47   :  { %v368_v52 = vld [vmem:[#allocation8 + $0x2e0] sm:$0xff]  ;;  %441 = vmatpush.msra.mxu3 %v372_v48  ;;  %422 = vmatpush.msra.mxu2 %v304_v51  ;;  %v377_v17 = vld [vmem:[#allocation8 + $0x328] sm:$0xff]  ;;  %v318_v42 = vld [vmem:[#allocation8 + $0x150] sm:$0xff] }
  0x48   :  { %247 = vmatpush.msra.mxu0 %v200_v44  ;;  %267 = vmatpush.msra.mxu1 %v201_v45  ;;  %v196_v53 = vld [vmem:[#allocation5] sm:$0xff]  ;;  %v197_v54 = vld [vmem:[#allocation5 + $0x8] sm:$0xff]  ;;  %v382_v43 = vld [vmem:[#allocation8 + $0x350] sm:$0xff] }
  0x49   :  { %442 = vmatpush.msra.mxu3 %v368_v52  ;;  %v300_v58 = vld [vmem:[#allocation8 + $0xc0] sm:$0xff]  ;;  %v309_v20 = vld [vmem:[#allocation8 + $0x108] sm:$0xff]  ;;  %v378_v47 = vld [vmem:[#allocation8 + $0x330] sm:$0xff] }
  0x4a   :  { %248 = vmatpush.msra.mxu0 %v198_v49  ;;  %268 = vmatpush.msra.mxu1 %v199_v50  ;;  %v364_v59 = vld [vmem:[#allocation8 + $0x2c0] sm:$0xff]  ;;  %v373_v21 = vld [vmem:[#allocation8 + $0x308] sm:$0xff]  ;;  %v310_v50 = vld [vmem:[#allocation8 + $0x110] sm:$0xff] }
  0x4b   :  { %v296_v62 = vld [vmem:[#allocation8 + $0xa0] sm:$0xff]  ;;  %423 = vmatpush.msra.mxu2 %v300_v58  ;;  %443 = vmatpush.msra.mxu3 %v364_v59  ;;  %v305_v24 = vld [vmem:[#allocation8 + $0xe8] sm:$0xff]  ;;  %v374_v51 = vld [vmem:[#allocation8 + $0x310] sm:$0xff] }
  0x4c   :  { %249 = vmatpush.msra.mxu0 %v196_v53  ;;  %269 = vmatpush.msra.mxu1 %v197_v54  ;;  %v360_v63 = vld [vmem:[#allocation8 + $0x2a0] sm:$0xff]  ;;  %v369_v25 = vld [vmem:[#allocation8 + $0x2e8] sm:$0xff]  ;;  %v339_v54 = vld [vmem:[#allocation8 + $0x1f8] sm:$0xff] }
  0x4d   :  { %250 = vmatmul.f32.vlgmr.msra.gmra.mxu0 %v195_v55  ;;  %270 = vmatmul.f32.vlgmr.msra.gmra.mxu1 %v195_v55  ;;  %v292_v2 = vld [vmem:[#allocation8 + $0x80] sm:$0xff]  ;;  %v301_v28 = vld [vmem:[#allocation8 + $0xc8] sm:$0xff]  ;;  %v403_v55 = vld [vmem:[#allocation8 + $0x3f8] sm:$0xff] }
  0x4e   :  { %454 = vmatpush.msrb.mxu0 %v337_v56  ;;  %474 = vmatpush.msrb.mxu1 %v401_v57  ;;  %v356_v3 = vld [vmem:[#allocation8 + $0x280] sm:$0xff]  ;;  %v365_v29 = vld [vmem:[#allocation8 + $0x2c8] sm:$0xff]  ;;  %v306_v56 = vld [vmem:[#allocation8 + $0xf0] sm:$0xff] }
  0x4f   :  { %424 = vmatpush.msra.mxu2 %v296_v62  ;;  %444 = vmatpush.msra.mxu3 %v360_v63  ;;  %v288_v6 = vld [vmem:[#allocation8 + $0x60] sm:$0xff]  ;;  %v297_v32 = vld [vmem:[#allocation8 + $0xa8] sm:$0xff]  ;;  %v370_v57 = vld [vmem:[#allocation8 + $0x2f0] sm:$0xff] }
  0x50   :  { %455 = vmatpush.msrb.mxu0 %v333_v60  ;;  %475 = vmatpush.msrb.mxu1 %v397_v61  ;;  %v352_v7 = vld [vmem:[#allocation8 + $0x260] sm:$0xff]  ;;  %v361_v33 = vld [vmem:[#allocation8 + $0x2a8] sm:$0xff]  ;;  %v335_v58 = vld [vmem:[#allocation8 + $0x1d8] sm:$0xff] }
  0x51   :  { %425 = vmatpush.msra.mxu2 %v292_v2  ;;  %445 = vmatpush.msra.mxu3 %v356_v3  ;;  %v284_v10 = vld [vmem:[#allocation8 + $0x40] sm:$0xff]  ;;  %v293_v36 = vld [vmem:[#allocation8 + $0x88] sm:$0xff]  ;;  %v399_v59 = vld [vmem:[#allocation8 + $0x3d8] sm:$0xff] }
  0x52   :  { %456 = vmatpush.msrb.mxu0 %v329_v0  ;;  %476 = vmatpush.msrb.mxu1 %v393_v1  ;;  %v348_v11 = vld [vmem:[#allocation8 + $0x240] sm:$0xff]  ;;  %v357_v37 = vld [vmem:[#allocation8 + $0x288] sm:$0xff]  ;;  %v331_v60 = vld [vmem:[#allocation8 + $0x1b8] sm:$0xff] }
  0x53   :  { %426 = vmatpush.msra.mxu2 %v288_v6  ;;  %446 = vmatpush.msra.mxu3 %v352_v7  ;;  %v280_v14 = vld [vmem:[#allocation8 + $0x20] sm:$0xff]  ;;  %v289_v40 = vld [vmem:[#allocation8 + $0x68] sm:$0xff]  ;;  %v395_v61 = vld [vmem:[#allocation8 + $0x3b8] sm:$0xff] }
  0x54   :  { %457 = vmatpush.msrb.mxu0 %v325_v4  ;;  %477 = vmatpush.msrb.mxu1 %v389_v5  ;;  %v344_v15 = vld [vmem:[#allocation8 + $0x220] sm:$0xff]  ;;  %v353_v41 = vld [vmem:[#allocation8 + $0x268] sm:$0xff]  ;;  %v327_v62 = vld [vmem:[#allocation8 + $0x198] sm:$0xff] }
  0x55   :  { %427 = vmatpush.msra.mxu2 %v284_v10  ;;  %447 = vmatpush.msra.mxu3 %v348_v11  ;;  %v276_v18 = vld [vmem:[#allocation8] sm:$0xff]  ;;  %v285_v44 = vld [vmem:[#allocation8 + $0x48] sm:$0xff]  ;;  %v391_v63 = vld [vmem:[#allocation8 + $0x398] sm:$0xff] }
  0x56   :  { %458 = vmatpush.msrb.mxu0 %v321_v8  ;;  %478 = vmatpush.msrb.mxu1 %v385_v9  ;;  %v340_v19 = vld [vmem:[#allocation8 + $0x200] sm:$0xff]  ;;  %v349_v45 = vld [vmem:[#allocation8 + $0x248] sm:$0xff]  ;;  %v323_v0 = vld [vmem:[#allocation8 + $0x178] sm:$0xff] }
  0x57   :  { %428 = vmatpush.msra.mxu2 %v280_v14  ;;  %448 = vmatpush.msra.mxu3 %v344_v15  ;;  %v281_v48 = vld [vmem:[#allocation8 + $0x28] sm:$0xff]  ;;  %v387_v1 = vld [vmem:[#allocation8 + $0x378] sm:$0xff]  ;;  %v302_v10 = vld [vmem:[#allocation8 + $0xd0] sm:$0xff] }
  0x58   :  { %459 = vmatpush.msrb.mxu0 %v317_v12  ;;  %479 = vmatpush.msrb.mxu1 %v381_v13  ;;  %v345_v49 = vld [vmem:[#allocation8 + $0x228] sm:$0xff]  ;;  %v319_v2 = vld [vmem:[#allocation8 + $0x158] sm:$0xff]  ;;  %v366_v11 = vld [vmem:[#allocation8 + $0x2d0] sm:$0xff] }
  0x59   :  { %429 = vmatpush.msra.mxu2 %v276_v18  ;;  %449 = vmatpush.msra.mxu3 %v340_v19  ;;  %v277_v52 = vld [vmem:[#allocation8 + $0x8] sm:$0xff]  ;;  %v383_v3 = vld [vmem:[#allocation8 + $0x358] sm:$0xff]  ;;  %v298_v14 = vld [vmem:[#allocation8 + $0xb0] sm:$0xff] }
  0x5a   :  { %460 = vmatpush.msrb.mxu0 %v313_v16  ;;  %480 = vmatpush.msrb.mxu1 %v377_v17  ;;  %v341_v53 = vld [vmem:[#allocation8 + $0x208] sm:$0xff]  ;;  %v315_v4 = vld [vmem:[#allocation8 + $0x138] sm:$0xff]  ;;  %v362_v15 = vld [vmem:[#allocation8 + $0x2b0] sm:$0xff] }
  0x5b   :  { %494 = vmatpush.msrb.mxu2 %v338_v22  ;;  %514 = vmatpush.msrb.mxu3 %v402_v23  ;;  %v379_v5 = vld [vmem:[#allocation8 + $0x338] sm:$0xff]  ;;  %v294_v18 = vld [vmem:[#allocation8 + $0x90] sm:$0xff] }
  0x5c   :  { %461 = vmatpush.msrb.mxu0 %v309_v20  ;;  %481 = vmatpush.msrb.mxu1 %v373_v21  ;;  %v311_v6 = vld [vmem:[#allocation8 + $0x118] sm:$0xff]  ;;  %v358_v19 = vld [vmem:[#allocation8 + $0x290] sm:$0xff] }
  0x5d   :  { %495 = vmatpush.msrb.mxu2 %v334_v26  ;;  %515 = vmatpush.msrb.mxu3 %v398_v27  ;;  %v375_v7 = vld [vmem:[#allocation8 + $0x318] sm:$0xff]  ;;  %v290_v22 = vld [vmem:[#allocation8 + $0x70] sm:$0xff] }
  0x5e   :  { %462 = vmatpush.msrb.mxu0 %v305_v24  ;;  %482 = vmatpush.msrb.mxu1 %v369_v25  ;;  %v307_v8 = vld [vmem:[#allocation8 + $0xf8] sm:$0xff]  ;;  %v354_v23 = vld [vmem:[#allocation8 + $0x270] sm:$0xff] }
  0x5f   :  { %496 = vmatpush.msrb.mxu2 %v330_v30  ;;  %516 = vmatpush.msrb.mxu3 %v394_v31  ;;  %v371_v9 = vld [vmem:[#allocation8 + $0x2f8] sm:$0xff]  ;;  %v286_v26 = vld [vmem:[#allocation8 + $0x50] sm:$0xff] }
  0x60   :  { %463 = vmatpush.msrb.mxu0 %v301_v28  ;;  %483 = vmatpush.msrb.mxu1 %v365_v29  ;;  %v303_v12 = vld [vmem:[#allocation8 + $0xd8] sm:$0xff]  ;;  %v350_v27 = vld [vmem:[#allocation8 + $0x250] sm:$0xff] }
  0x61   :  { %497 = vmatpush.msrb.mxu2 %v326_v34  ;;  %517 = vmatpush.msrb.mxu3 %v390_v35  ;;  %v367_v13 = vld [vmem:[#allocation8 + $0x2d8] sm:$0xff]  ;;  %v282_v30 = vld [vmem:[#allocation8 + $0x30] sm:$0xff] }
  0x62   :  { %464 = vmatpush.msrb.mxu0 %v297_v32  ;;  %484 = vmatpush.msrb.mxu1 %v361_v33  ;;  %v299_v16 = vld [vmem:[#allocation8 + $0xb8] sm:$0xff]  ;;  %v346_v31 = vld [vmem:[#allocation8 + $0x230] sm:$0xff] }
  0x63   :  { %498 = vmatpush.msrb.mxu2 %v322_v38  ;;  %518 = vmatpush.msrb.mxu3 %v386_v39  ;;  %v363_v17 = vld [vmem:[#allocation8 + $0x2b8] sm:$0xff]  ;;  %v278_v34 = vld [vmem:[#allocation8 + $0x10] sm:$0xff] }
  0x64   :  { %465 = vmatpush.msrb.mxu0 %v293_v36  ;;  %485 = vmatpush.msrb.mxu1 %v357_v37  ;;  %v295_v20 = vld [vmem:[#allocation8 + $0x98] sm:$0xff]  ;;  %v342_v35 = vld [vmem:[#allocation8 + $0x210] sm:$0xff] }
  0x65   :  { %499 = vmatpush.msrb.mxu2 %v318_v42  ;;  %519 = vmatpush.msrb.mxu3 %v382_v43  ;;  %v359_v21 = vld [vmem:[#allocation8 + $0x298] sm:$0xff] }
  0x66   :  { %466 = vmatpush.msrb.mxu0 %v289_v40  ;;  %486 = vmatpush.msrb.mxu1 %v353_v41  ;;  %v291_v24 = vld [vmem:[#allocation8 + $0x78] sm:$0xff] }
  0x67   :  { %500 = vmatpush.msrb.mxu2 %v314_v46  ;;  %520 = vmatpush.msrb.mxu3 %v378_v47  ;;  %v355_v25 = vld [vmem:[#allocation8 + $0x278] sm:$0xff] }
  0x68   :  { %467 = vmatpush.msrb.mxu0 %v285_v44  ;;  %487 = vmatpush.msrb.mxu1 %v349_v45  ;;  %v287_v28 = vld [vmem:[#allocation8 + $0x58] sm:$0xff] }
  0x69   :  { %501 = vmatpush.msrb.mxu2 %v310_v50  ;;  %521 = vmatpush.msrb.mxu3 %v374_v51  ;;  %v351_v29 = vld [vmem:[#allocation8 + $0x258] sm:$0xff]  ;;  %v638_v51 = vld [vmem:[#allocation11 + $0x1e0] sm:$0xff] }
  0x6a   :  { %468 = vmatpush.msrb.mxu0 %v281_v48  ;;  %488 = vmatpush.msrb.mxu1 %v345_v49  ;;  %v283_v32 = vld [vmem:[#allocation8 + $0x38] sm:$0xff] }
  0x6b   :  { %502 = vmatpush.msrb.mxu2 %v306_v56  ;;  %522 = vmatpush.msrb.mxu3 %v370_v57  ;;  %v347_v33 = vld [vmem:[#allocation8 + $0x238] sm:$0xff] }
  0x6c   :  { %469 = vmatpush.msrb.mxu0 %v277_v52  ;;  %489 = vmatpush.msrb.mxu1 %v341_v53  ;;  %v279_v36 = vld [vmem:[#allocation8 + $0x18] sm:$0xff]  ;;  %v606_v52 = vld [vmem:[#allocation11 + $0xe0] sm:$0xff] }
  0x6d   :  { %503 = vmatpush.msrb.mxu2 %v302_v10  ;;  %523 = vmatpush.msrb.mxu3 %v366_v11  ;;  %v343_v37 = vld [vmem:[#allocation8 + $0x218] sm:$0xff]  ;;  %v702_v53 = vld [vmem:[#allocation11 + $0x3e0] sm:$0xff] }
  0x6e   :  { %534 = vmatpush.msra.mxu0 %v339_v54  ;;  %554 = vmatpush.msra.mxu1 %v403_v55  ;;  %v228_v38 = vld [vmem:[#allocation7] sm:$0x3]  ;;  %v640_v47 = vld [vmem:[#allocation11 + $0x1f0] sm:$0xff]  ;;  %v670_v54 = vld [vmem:[#allocation11 + $0x2e0] sm:$0xff] }
  0x6f   :  { %504 = vmatpush.msrb.mxu2 %v298_v14  ;;  %524 = vmatpush.msrb.mxu3 %v362_v15  ;;  %v230_v39 = vperm.slane %v228_v38, 0  ;;  %v231_v40 = vperm.slane %v228_v38, 1  ;;  %v608_v48 = vld [vmem:[#allocation11 + $0xf0] sm:$0xff]  ;;  %v626_v11 = vld [vmem:[#allocation11 + $0x180] sm:$0xff] }
  0x70   :  { %535 = vmatpush.msra.mxu0 %v335_v58  ;;  %555 = vmatpush.msra.mxu1 %v399_v59  ;;  %v704_v49 = vld [vmem:[#allocation11 + $0x3f0] sm:$0xff]  ;;  %v634_v59 = vld [vmem:[#allocation11 + $0x1c0] sm:$0xff] }
  0x71   :  { %505 = vmatpush.msrb.mxu2 %v294_v18  ;;  %525 = vmatpush.msrb.mxu3 %v358_v19  ;;  %v672_v50 = vld [vmem:[#allocation11 + $0x2f0] sm:$0xff]  ;;  %v658_v14 = vld [vmem:[#allocation11 + $0x280] sm:$0xff] }
  0x72   :  { %536 = vmatpush.msra.mxu0 %v331_v60  ;;  %556 = vmatpush.msra.mxu1 %v395_v61  ;;  %v636_v55 = vld [vmem:[#allocation11 + $0x1d0] sm:$0xff]  ;;  %v602_v60 = vld [vmem:[#allocation11 + $0xc0] sm:$0xff] }
  0x73   :  { %506 = vmatpush.msrb.mxu2 %v290_v22  ;;  %526 = vmatpush.msrb.mxu3 %v354_v23  ;;  %v604_v56 = vld [vmem:[#allocation11 + $0xd0] sm:$0xff]  ;;  %v698_v61 = vld [vmem:[#allocation11 + $0x3c0] sm:$0xff] }
  0x74   :  { %537 = vmatpush.msra.mxu0 %v327_v62  ;;  %557 = vmatpush.msra.mxu1 %v391_v63  ;;  %v700_v57 = vld [vmem:[#allocation11 + $0x3d0] sm:$0xff]  ;;  %v666_v62 = vld [vmem:[#allocation11 + $0x2c0] sm:$0xff] }
  0x75   :  { %507 = vmatpush.msrb.mxu2 %v286_v26  ;;  %527 = vmatpush.msrb.mxu3 %v350_v27  ;;  %v668_v58 = vld [vmem:[#allocation11 + $0x2d0] sm:$0xff]  ;;  %v622_v19 = vld [vmem:[#allocation11 + $0x160] sm:$0xff] }
  0x76   :  { %538 = vmatpush.msra.mxu0 %v323_v0  ;;  %558 = vmatpush.msra.mxu1 %v387_v1  ;;  %v632_v63 = vld [vmem:[#allocation11 + $0x1b0] sm:$0xff]  ;;  %v654_v22 = vld [vmem:[#allocation11 + $0x260] sm:$0xff] }
  0x77   :  { %508 = vmatpush.msrb.mxu2 %v282_v30  ;;  %528 = vmatpush.msrb.mxu3 %v346_v31  ;;  %v600_v0 = vld [vmem:[#allocation11 + $0xb0] sm:$0xff]  ;;  %v618_v27 = vld [vmem:[#allocation11 + $0x140] sm:$0xff] }
  0x78   :  { %539 = vmatpush.msra.mxu0 %v319_v2  ;;  %559 = vmatpush.msra.mxu1 %v383_v3  ;;  %v696_v1 = vld [vmem:[#allocation11 + $0x3b0] sm:$0xff]  ;;  %v630_v3 = vld [vmem:[#allocation11 + $0x1a0] sm:$0xff] }
  0x79   :  { %509 = vmatpush.msrb.mxu2 %v278_v34  ;;  %529 = vmatpush.msrb.mxu3 %v342_v35  ;;  %v664_v2 = vld [vmem:[#allocation11 + $0x2b0] sm:$0xff]  ;;  %v650_v30 = vld [vmem:[#allocation11 + $0x240] sm:$0xff] }
  0x7a   :  { %540 = vmatpush.msra.mxu0 %v315_v4  ;;  %560 = vmatpush.msra.mxu1 %v379_v5  ;;  %v598_v4 = vld [vmem:[#allocation11 + $0xa0] sm:$0xff]  ;;  %v660_v10 = vld [vmem:[#allocation11 + $0x290] sm:$0xff] }
  0x7b   :  { %v694_v5 = vld [vmem:[#allocation11 + $0x3a0] sm:$0xff]  ;;  %v624_v15 = vld [vmem:[#allocation11 + $0x170] sm:$0xff] }
  0x7c   :  { %541 = vmatpush.msra.mxu0 %v311_v6  ;;  %561 = vmatpush.msra.mxu1 %v375_v7  ;;  %v662_v6 = vld [vmem:[#allocation11 + $0x2a0] sm:$0xff]  ;;  %v628_v7 = vld [vmem:[#allocation11 + $0x190] sm:$0xff] }
  0x7d   :  { %v656_v18 = vld [vmem:[#allocation11 + $0x270] sm:$0xff]  ;;  %v614_v35 = vld [vmem:[#allocation11 + $0x120] sm:$0xff] }
  0x7e   :  { %542 = vmatpush.msra.mxu0 %v307_v8  ;;  %562 = vmatpush.msra.mxu1 %v371_v9  ;;  %v596_v8 = vld [vmem:[#allocation11 + $0x90] sm:$0xff]  ;;  %v646_v38 = vld [vmem:[#allocation11 + $0x220] sm:$0xff] }
  0x7f   :  { %v692_v9 = vld [vmem:[#allocation11 + $0x390] sm:$0xff] }
  0x80   :  { %543 = vmatpush.msra.mxu0 %v303_v12  ;;  %563 = vmatpush.msra.mxu1 %v367_v13  ;;  %v594_v12 = vld [vmem:[#allocation11 + $0x80] sm:$0xff]  ;;  %v620_v23 = vld [vmem:[#allocation11 + $0x150] sm:$0xff] }
  0x81   :  { %v690_v13 = vld [vmem:[#allocation11 + $0x380] sm:$0xff]  ;;  %v652_v26 = vld [vmem:[#allocation11 + $0x250] sm:$0xff] }
  0x82   :  { %544 = vmatpush.msra.mxu0 %v299_v16  ;;  %564 = vmatpush.msra.mxu1 %v363_v17  ;;  %v592_v16 = vld [vmem:[#allocation11 + $0x70] sm:$0xff] }
  0x83   :  { %v688_v17 = vld [vmem:[#allocation11 + $0x370] sm:$0xff] }
  0x84   :  { %545 = vmatpush.msra.mxu0 %v295_v20  ;;  %565 = vmatpush.msra.mxu1 %v359_v21  ;;  %v590_v20 = vld [vmem:[#allocation11 + $0x60] sm:$0xff]  ;;  %v616_v31 = vld [vmem:[#allocation11 + $0x130] sm:$0xff] }
  0x85   :  { %v686_v21 = vld [vmem:[#allocation11 + $0x360] sm:$0xff]  ;;  %v648_v34 = vld [vmem:[#allocation11 + $0x230] sm:$0xff] }
  0x86   :  { %546 = vmatpush.msra.mxu0 %v291_v24  ;;  %566 = vmatpush.msra.mxu1 %v355_v25  ;;  %v588_v24 = vld [vmem:[#allocation11 + $0x50] sm:$0xff] }
  0x87   :  { %v684_v25 = vld [vmem:[#allocation11 + $0x350] sm:$0xff] }
  0x88   :  { %547 = vmatpush.msra.mxu0 %v287_v28  ;;  %567 = vmatpush.msra.mxu1 %v351_v29  ;;  %v586_v28 = vld [vmem:[#allocation11 + $0x40] sm:$0xff] }
  0x89   :  { %v682_v29 = vld [vmem:[#allocation11 + $0x340] sm:$0xff] }
  0x8a   :  { %548 = vmatpush.msra.mxu0 %v283_v32  ;;  %568 = vmatpush.msra.mxu1 %v347_v33  ;;  %v584_v32 = vld [vmem:[#allocation11 + $0x30] sm:$0xff] }
  0x8b   :  { %v680_v33 = vld [vmem:[#allocation11 + $0x330] sm:$0xff] }
  0x8c   :  { %549 = vmatpush.msra.mxu0 %v279_v36  ;;  %569 = vmatpush.msra.mxu1 %v343_v37  ;;  %v582_v36 = vld [vmem:[#allocation11 + $0x20] sm:$0xff] }
  0x8d   :  { %v678_v37 = vld [vmem:[#allocation11 + $0x320] sm:$0xff] }
  0xca   :  { %v251_v41 = vpop.f32.mrf.mxu0  ;;  %v271_v42 = vpop.f32.mrf.mxu1 }
  0xcb   :  { %v252_v43 = vadd.f32 %v251_v41, %v230_v39  ;;  %v272_v44 = vadd.f32 %v271_v42, %v231_v40  ;;  %v612_v39 = vld [vmem:[#allocation11 + $0x110] sm:$0xff] }
  0xcc   :  { %v580_v40 = vld [vmem:[#allocation11 + $0x10] sm:$0xff] }
  0xcd   :  { %v274_v45 = vmax.f32 %v252_v43, 0.0  ;;  %v275_v46 = vmax.f32 %v272_v44, 0.0  ;;  %v676_v41 = vld [vmem:[#allocation11 + $0x310] sm:$0xff]  ;;  %v610_v43 = vld [vmem:[#allocation11 + $0x100] sm:$0xff] }
  0xce   :  { %v644_v42 = vld [vmem:[#allocation11 + $0x210] sm:$0xff]  ;;  %v578_v44 = vld [vmem:[#allocation11] sm:$0xff] }
  0xcf   :  { %430 = vmatmul.f32.vlgmr.msra.gmra.mxu2 %v274_v45  ;;  %450 = vmatmul.f32.vlgmr.msra.gmra.mxu3 %v275_v46 }
  0xd0   :  { %470 = vmatmul.f32.vlgmr.msrb.gmra.mxu0 %v274_v45  ;;  %490 = vmatmul.f32.vlgmr.msrb.gmra.mxu1 %v275_v46 }
  0xd1   :  { %732 = vmatpush.msra.mxu3 %v640_v47  ;;  %712 = vmatpush.msra.mxu2 %v608_v48  ;;  %v674_v47 = vld [vmem:[#allocation11 + $0x300] sm:$0xff] }
  0xd2   :  { %772 = vmatpush.msrb.mxu1 %v704_v49  ;;  %752 = vmatpush.msrb.mxu0 %v672_v50  ;;  %v642_v48 = vld [vmem:[#allocation11 + $0x200] sm:$0xff]  ;;  %v639_v49 = vld [vmem:[#allocation11 + $0x1e8] sm:$0xff] }
  0xd3   :  { %733 = vmatpush.msra.mxu3 %v638_v51  ;;  %713 = vmatpush.msra.mxu2 %v606_v52  ;;  %v607_v50 = vld [vmem:[#allocation11 + $0xe8] sm:$0xff]  ;;  %v705_v51 = vld [vmem:[#allocation11 + $0x3f8] sm:$0xff] }
  0xd4   :  { %773 = vmatpush.msrb.mxu1 %v702_v53  ;;  %753 = vmatpush.msrb.mxu0 %v670_v54  ;;  %v673_v52 = vld [vmem:[#allocation11 + $0x2f8] sm:$0xff] }
  0xd5   :  { %734 = vmatpush.msra.mxu3 %v636_v55  ;;  %714 = vmatpush.msra.mxu2 %v604_v56  ;;  %v637_v53 = vld [vmem:[#allocation11 + $0x1d8] sm:$0xff]  ;;  %v703_v55 = vld [vmem:[#allocation11 + $0x3e8] sm:$0xff] }
  0xd6   :  { %774 = vmatpush.msrb.mxu1 %v700_v57  ;;  %754 = vmatpush.msrb.mxu0 %v668_v58  ;;  %v605_v54 = vld [vmem:[#allocation11 + $0xd8] sm:$0xff]  ;;  %v635_v56 = vld [vmem:[#allocation11 + $0x1c8] sm:$0xff] }
  0xd7   :  { %510 = vmatmul.f32.vlgmr.msrb.gmra.mxu2 %v274_v45  ;;  %530 = vmatmul.f32.vlgmr.msrb.gmra.mxu3 %v275_v46  ;;  %v603_v57 = vld [vmem:[#allocation11 + $0xc8] sm:$0xff]  ;;  %v701_v58 = vld [vmem:[#allocation11 + $0x3d8] sm:$0xff] }
  0xd8   :  { %550 = vmatmul.f32.vlgmr.msra.gmra.mxu0 %v274_v45  ;;  %570 = vmatmul.f32.vlgmr.msra.gmra.mxu1 %v275_v46  ;;  %v641_v45 = vld [vmem:[#allocation11 + $0x1f8] sm:$0xff] }
  0xd9   :  { %735 = vmatpush.msra.mxu3 %v634_v59  ;;  %715 = vmatpush.msra.mxu2 %v602_v60  ;;  %v609_v46 = vld [vmem:[#allocation11 + $0xf8] sm:$0xff] }
  0xda   :  { %775 = vmatpush.msrb.mxu1 %v698_v61  ;;  %755 = vmatpush.msrb.mxu0 %v666_v62  ;;  %v633_v59 = vld [vmem:[#allocation11 + $0x1b8] sm:$0xff]  ;;  %v699_v61 = vld [vmem:[#allocation11 + $0x3c8] sm:$0xff] }
  0xdb   :  { %736 = vmatpush.msra.mxu3 %v632_v63  ;;  %716 = vmatpush.msra.mxu2 %v600_v0  ;;  %v601_v60 = vld [vmem:[#allocation11 + $0xb8] sm:$0xff]  ;;  %v631_v62 = vld [vmem:[#allocation11 + $0x1a8] sm:$0xff] }
  0xdc   :  { %776 = vmatpush.msrb.mxu1 %v696_v1  ;;  %756 = vmatpush.msrb.mxu0 %v664_v2  ;;  %v629_v63 = vld [vmem:[#allocation11 + $0x198] sm:$0xff]  ;;  %v627_v0 = vld [vmem:[#allocation11 + $0x188] sm:$0xff] }
  0xdd   :  { %737 = vmatpush.msra.mxu3 %v630_v3  ;;  %717 = vmatpush.msra.mxu2 %v598_v4  ;;  %v599_v1 = vld [vmem:[#allocation11 + $0xa8] sm:$0xff]  ;;  %v625_v2 = vld [vmem:[#allocation11 + $0x178] sm:$0xff] }
  0xde   :  { %777 = vmatpush.msrb.mxu1 %v694_v5  ;;  %757 = vmatpush.msrb.mxu0 %v662_v6  ;;  %v671_v3 = vld [vmem:[#allocation11 + $0x2e8] sm:$0xff]  ;;  %v697_v4 = vld [vmem:[#allocation11 + $0x3b8] sm:$0xff] }
  0xdf   :  { %738 = vmatpush.msra.mxu3 %v628_v7  ;;  %718 = vmatpush.msra.mxu2 %v596_v8  ;;  %v597_v5 = vld [vmem:[#allocation11 + $0x98] sm:$0xff]  ;;  %v623_v6 = vld [vmem:[#allocation11 + $0x168] sm:$0xff] }
  0xe0   :  { %778 = vmatpush.msrb.mxu1 %v692_v9  ;;  %758 = vmatpush.msrb.mxu0 %v660_v10  ;;  %v669_v7 = vld [vmem:[#allocation11 + $0x2d8] sm:$0xff]  ;;  %v695_v8 = vld [vmem:[#allocation11 + $0x3a8] sm:$0xff] }
  0xe1   :  { %739 = vmatpush.msra.mxu3 %v626_v11  ;;  %719 = vmatpush.msra.mxu2 %v594_v12  ;;  %v595_v9 = vld [vmem:[#allocation11 + $0x88] sm:$0xff]  ;;  %v621_v10 = vld [vmem:[#allocation11 + $0x158] sm:$0xff] }
  0xe2   :  { %779 = vmatpush.msrb.mxu1 %v690_v13  ;;  %759 = vmatpush.msrb.mxu0 %v658_v14  ;;  %v667_v11 = vld [vmem:[#allocation11 + $0x2c8] sm:$0xff]  ;;  %v693_v12 = vld [vmem:[#allocation11 + $0x398] sm:$0xff] }
  0xe3   :  { %740 = vmatpush.msra.mxu3 %v624_v15  ;;  %720 = vmatpush.msra.mxu2 %v592_v16  ;;  %v593_v13 = vld [vmem:[#allocation11 + $0x78] sm:$0xff]  ;;  %v619_v14 = vld [vmem:[#allocation11 + $0x148] sm:$0xff] }
  0xe4   :  { %780 = vmatpush.msrb.mxu1 %v688_v17  ;;  %760 = vmatpush.msrb.mxu0 %v656_v18  ;;  %v665_v15 = vld [vmem:[#allocation11 + $0x2b8] sm:$0xff]  ;;  %v691_v16 = vld [vmem:[#allocation11 + $0x388] sm:$0xff] }
  0xe5   :  { %741 = vmatpush.msra.mxu3 %v622_v19  ;;  %721 = vmatpush.msra.mxu2 %v590_v20  ;;  %v591_v17 = vld [vmem:[#allocation11 + $0x68] sm:$0xff]  ;;  %v617_v18 = vld [vmem:[#allocation11 + $0x138] sm:$0xff] }
  0xe6   :  { %781 = vmatpush.msrb.mxu1 %v686_v21  ;;  %761 = vmatpush.msrb.mxu0 %v654_v22  ;;  %v663_v19 = vld [vmem:[#allocation11 + $0x2a8] sm:$0xff]  ;;  %v689_v20 = vld [vmem:[#allocation11 + $0x378] sm:$0xff] }
  0xe7   :  { %742 = vmatpush.msra.mxu3 %v620_v23  ;;  %722 = vmatpush.msra.mxu2 %v588_v24  ;;  %v589_v21 = vld [vmem:[#allocation11 + $0x58] sm:$0xff]  ;;  %v615_v22 = vld [vmem:[#allocation11 + $0x128] sm:$0xff] }
  0xe8   :  { %782 = vmatpush.msrb.mxu1 %v684_v25  ;;  %762 = vmatpush.msrb.mxu0 %v652_v26  ;;  %v661_v23 = vld [vmem:[#allocation11 + $0x298] sm:$0xff]  ;;  %v687_v24 = vld [vmem:[#allocation11 + $0x368] sm:$0xff] }
  0xe9   :  { %743 = vmatpush.msra.mxu3 %v618_v27  ;;  %723 = vmatpush.msra.mxu2 %v586_v28  ;;  %v587_v25 = vld [vmem:[#allocation11 + $0x48] sm:$0xff]  ;;  %v613_v26 = vld [vmem:[#allocation11 + $0x118] sm:$0xff] }
  0xea   :  { %783 = vmatpush.msrb.mxu1 %v682_v29  ;;  %763 = vmatpush.msrb.mxu0 %v650_v30  ;;  %v659_v27 = vld [vmem:[#allocation11 + $0x288] sm:$0xff]  ;;  %v685_v28 = vld [vmem:[#allocation11 + $0x358] sm:$0xff] }
  0xeb   :  { %744 = vmatpush.msra.mxu3 %v616_v31  ;;  %724 = vmatpush.msra.mxu2 %v584_v32  ;;  %v585_v29 = vld [vmem:[#allocation11 + $0x38] sm:$0xff]  ;;  %v611_v30 = vld [vmem:[#allocation11 + $0x108] sm:$0xff] }
  0xec   :  { %784 = vmatpush.msrb.mxu1 %v680_v33  ;;  %764 = vmatpush.msrb.mxu0 %v648_v34  ;;  %v657_v31 = vld [vmem:[#allocation11 + $0x278] sm:$0xff]  ;;  %v683_v32 = vld [vmem:[#allocation11 + $0x348] sm:$0xff] }
  0xed   :  { %745 = vmatpush.msra.mxu3 %v614_v35  ;;  %725 = vmatpush.msra.mxu2 %v582_v36  ;;  %v583_v33 = vld [vmem:[#allocation11 + $0x28] sm:$0xff]  ;;  %v681_v35 = vld [vmem:[#allocation11 + $0x338] sm:$0xff] }
  0xee   :  { %785 = vmatpush.msrb.mxu1 %v678_v37  ;;  %765 = vmatpush.msrb.mxu0 %v646_v38  ;;  %v655_v34 = vld [vmem:[#allocation11 + $0x268] sm:$0xff]  ;;  %v581_v36 = vld [vmem:[#allocation11 + $0x18] sm:$0xff] }
  0xef   :  { %746 = vmatpush.msra.mxu3 %v612_v39  ;;  %726 = vmatpush.msra.mxu2 %v580_v40  ;;  %v653_v37 = vld [vmem:[#allocation11 + $0x258] sm:$0xff]  ;;  %v679_v38 = vld [vmem:[#allocation11 + $0x328] sm:$0xff] }
  0xf0   :  { %786 = vmatpush.msrb.mxu1 %v676_v41  ;;  %766 = vmatpush.msrb.mxu0 %v644_v42  ;;  %v579_v39 = vld [vmem:[#allocation11 + $0x8] sm:$0xff]  ;;  %v677_v41 = vld [vmem:[#allocation11 + $0x318] sm:$0xff] }
  0xf1   :  { %747 = vmatpush.msra.mxu3 %v610_v43  ;;  %727 = vmatpush.msra.mxu2 %v578_v44  ;;  %v651_v40 = vld [vmem:[#allocation11 + $0x248] sm:$0xff]  ;;  %v649_v42 = vld [vmem:[#allocation11 + $0x238] sm:$0xff] }
  0xf2   :  { %787 = vmatpush.msrb.mxu1 %v674_v47  ;;  %767 = vmatpush.msrb.mxu0 %v642_v48  ;;  %v675_v43 = vld [vmem:[#allocation11 + $0x308] sm:$0xff] }
  0xf3   :  { %812 = vmatpush.msrb.mxu3 %v641_v45  ;;  %792 = vmatpush.msrb.mxu2 %v609_v46  ;;  %v647_v44 = vld [vmem:[#allocation11 + $0x228] sm:$0xff]  ;;  %v645_v45 = vld [vmem:[#allocation11 + $0x218] sm:$0xff] }
  0xf4   :  { %852 = vmatpush.msra.mxu1 %v705_v51  ;;  %832 = vmatpush.msra.mxu0 %v673_v52  ;;  %v404_v46 = vld [vmem:[#allocation10] sm:$0xf]  ;;  %v643_v47 = vld [vmem:[#allocation11 + $0x208] sm:$0xff] }
  0xf5   :  { %813 = vmatpush.msrb.mxu3 %v639_v49  ;;  %793 = vmatpush.msrb.mxu2 %v607_v50  ;;  %v407_v48 = vperm.slane %v404_v46, 1  ;;  %v406_v52 = vperm.slane %v404_v46, 0 }
  0xf6   :  { %853 = vmatpush.msra.mxu1 %v703_v55  ;;  %833 = vmatpush.msra.mxu0 %v671_v3  ;;  %v408_v3 = vperm.slane %v404_v46, 2 }
  0xf7   :  { %814 = vmatpush.msrb.mxu3 %v637_v53  ;;  %794 = vmatpush.msrb.mxu2 %v605_v54 }
  0xf8   :  { %854 = vmatpush.msra.mxu1 %v701_v58  ;;  %834 = vmatpush.msra.mxu0 %v669_v7  ;;  %v905_v58 = vld [vmem:[#allocation14 + $0xf8] sm:$0xff] }
  0xf9   :  { %815 = vmatpush.msrb.mxu3 %v635_v56  ;;  %795 = vmatpush.msrb.mxu2 %v603_v57  ;;  %v409_v57 = vperm.slane %v404_v46, 3  ;;  %v961_v46 = vld [vmem:[%s1493_s10 + $0x50] sm:$0xff] }
  0xfa   :  { %855 = vmatpush.msra.mxu1 %v699_v61  ;;  %835 = vmatpush.msra.mxu0 %v667_v11  ;;  %v887_v11 = vld [vmem:[#allocation14 + $0x68] sm:$0xff] }
  0xfb   :  { %816 = vmatpush.msrb.mxu3 %v633_v59  ;;  %796 = vmatpush.msrb.mxu2 %v601_v60  ;;  %v904_v60 = vld [vmem:[#allocation14 + $0xf0] sm:$0xff] }
  0xfc   :  { %856 = vmatpush.msra.mxu1 %v697_v4  ;;  %836 = vmatpush.msra.mxu0 %v665_v15  ;;  %v889_v4 = vld [vmem:[#allocation14 + $0x78] sm:$0xff] }
  0xfd   :  { %817 = vmatpush.msrb.mxu3 %v631_v62  ;;  %797 = vmatpush.msrb.mxu2 %v599_v1  ;;  %v885_v15 = vld [vmem:[#allocation14 + $0x58] sm:$0xff] }
  0xfe   :  { %857 = vmatpush.msra.mxu1 %v695_v8  ;;  %837 = vmatpush.msra.mxu0 %v663_v19  ;;  %v888_v8 = vld [vmem:[#allocation14 + $0x70] sm:$0xff]  ;;  %v902_v19 = vld [vmem:[#allocation14 + $0xe0] sm:$0xff] }
  0xff   :  { %818 = vmatpush.msrb.mxu3 %v629_v63  ;;  %798 = vmatpush.msrb.mxu2 %v597_v5 }
 0x100   :  { %858 = vmatpush.msra.mxu1 %v693_v12  ;;  %838 = vmatpush.msra.mxu0 %v661_v23  ;;  %v900_v23 = vld [vmem:[#allocation14 + $0xd0] sm:$0xff] }
 0x101   :  { %819 = vmatpush.msrb.mxu3 %v627_v0  ;;  %799 = vmatpush.msrb.mxu2 %v595_v9  ;;  %v903_v0 = vld [vmem:[#allocation14 + $0xe8] sm:$0xff] }
 0x102   :  { %859 = vmatpush.msra.mxu1 %v691_v16  ;;  %839 = vmatpush.msra.mxu0 %v659_v27  ;;  %v884_v16 = vld [vmem:[#allocation14 + $0x50] sm:$0xff]  ;;  %v898_v27 = vld [vmem:[#allocation14 + $0xc0] sm:$0xff] }
 0x103   :  { %820 = vmatpush.msrb.mxu3 %v625_v2  ;;  %800 = vmatpush.msrb.mxu2 %v593_v13 }
 0x104   :  { %860 = vmatpush.msra.mxu1 %v689_v20  ;;  %840 = vmatpush.msra.mxu0 %v657_v31  ;;  %v881_v20 = vld [vmem:[#allocation14 + $0x38] sm:$0xff]  ;;  %v896_v31 = vld [vmem:[#allocation14 + $0xb0] sm:$0xff] }
 0x105   :  { %821 = vmatpush.msrb.mxu3 %v623_v6  ;;  %801 = vmatpush.msrb.mxu2 %v591_v17  ;;  %v883_v17 = vld [vmem:[#allocation14 + $0x48] sm:$0xff] }
 0x106   :  { %861 = vmatpush.msra.mxu1 %v687_v24  ;;  %841 = vmatpush.msra.mxu0 %v655_v34  ;;  %v879_v24 = vld [vmem:[#allocation14 + $0x28] sm:$0xff]  ;;  %v874_v34 = vld [vmem:[#allocation14] sm:$0xff] }
 0x107   :  { %822 = vmatpush.msrb.mxu3 %v621_v10  ;;  %802 = vmatpush.msrb.mxu2 %v589_v21  ;;  %v901_v21 = vld [vmem:[#allocation14 + $0xd8] sm:$0xff] }
 0x108   :  { %862 = vmatpush.msra.mxu1 %v685_v28  ;;  %842 = vmatpush.msra.mxu0 %v653_v37  ;;  %v877_v28 = vld [vmem:[#allocation14 + $0x18] sm:$0xff]  ;;  %v892_v37 = vld [vmem:[#allocation14 + $0x90] sm:$0xff] }
 0x109   :  { %823 = vmatpush.msrb.mxu3 %v619_v14  ;;  %803 = vmatpush.msrb.mxu2 %v587_v25  ;;  %v886_v14 = vld [vmem:[#allocation14 + $0x60] sm:$0xff]  ;;  %v899_v25 = vld [vmem:[#allocation14 + $0xc8] sm:$0xff] }
 0x10a   :  { %863 = vmatpush.msra.mxu1 %v683_v32  ;;  %843 = vmatpush.msra.mxu0 %v651_v40  ;;  %v875_v32 = vld [vmem:[#allocation14 + $0x8] sm:$0xff] }
 0x10b   :  { %824 = vmatpush.msrb.mxu3 %v617_v18  ;;  %804 = vmatpush.msrb.mxu2 %v585_v29  ;;  %v882_v18 = vld [vmem:[#allocation14 + $0x40] sm:$0xff]  ;;  %v897_v29 = vld [vmem:[#allocation14 + $0xb8] sm:$0xff]  ;;  %v966_v40 = vld [vmem:[%s1493_s10 + $0x78] sm:$0xff] }
 0x10c   :  { %864 = vmatpush.msra.mxu1 %v681_v35  ;;  %844 = vmatpush.msra.mxu0 %v649_v42  ;;  %v894_v35 = vld [vmem:[#allocation14 + $0xa0] sm:$0xff] }
 0x10d   :  { %825 = vmatpush.msrb.mxu3 %v615_v22  ;;  %805 = vmatpush.msrb.mxu2 %v583_v33  ;;  %v880_v22 = vld [vmem:[#allocation14 + $0x30] sm:$0xff]  ;;  %v895_v33 = vld [vmem:[#allocation14 + $0xa8] sm:$0xff]  ;;  %v964_v42 = vld [vmem:[%s1493_s10 + $0x68] sm:$0xff] }
 0x10e   :  { %865 = vmatpush.msra.mxu1 %v679_v38  ;;  %845 = vmatpush.msra.mxu0 %v647_v44  ;;  %v891_v38 = vld [vmem:[#allocation14 + $0x88] sm:$0xff] }
 0x10f   :  { %826 = vmatpush.msrb.mxu3 %v613_v26  ;;  %806 = vmatpush.msrb.mxu2 %v581_v36  ;;  %v878_v26 = vld [vmem:[#allocation14 + $0x20] sm:$0xff]  ;;  %v893_v36 = vld [vmem:[#allocation14 + $0x98] sm:$0xff]  ;;  %v962_v44 = vld [vmem:[%s1493_s10 + $0x58] sm:$0xff] }
 0x110   :  { %866 = vmatpush.msra.mxu1 %v677_v41  ;;  %846 = vmatpush.msra.mxu0 %v645_v45  ;;  %v965_v41 = vld [vmem:[%s1493_s10 + $0x70] sm:$0xff]  ;;  %v706_v45 = vld [vmem:[#allocation13] sm:$0x3] }
 0x111   :  { %827 = vmatpush.msrb.mxu3 %v611_v30  ;;  %807 = vmatpush.msrb.mxu2 %v579_v39  ;;  %v876_v30 = vld [vmem:[#allocation14 + $0x10] sm:$0xff]  ;;  %v890_v39 = vld [vmem:[#allocation14 + $0x80] sm:$0xff] }
 0x112   :  { %867 = vmatpush.msra.mxu1 %v675_v43  ;;  %847 = vmatpush.msra.mxu0 %v643_v47  ;;  %v963_v43 = vld [vmem:[%s1493_s10 + $0x60] sm:$0xff]  ;;  %v708_v47 = vperm.slane %v706_v45, 0 }
 0x14d   :  { %v471_v49 = vpop.f32.mrf.mxu0  ;;  %v491_v50 = vpop.f32.mrf.mxu1 }
 0x14e   :  { %v472_v51 = vadd.f32 %v471_v49, %v407_v48  ;;  %v960_v48 = vld [vmem:[%s1493_s10 + $0x48] sm:$0xff]  ;;  %v959_v49 = vld [vmem:[%s1493_s10 + $0x40] sm:$0xff] }
 0x150   :  { %v492_v53 = vadd.f32 %v491_v50, %v472_v51 }
 0x152   :  { %v575_v54 = vmax.f32 %v492_v53, 0.0  ;;  %v431_v55 = vpop.f32.mrf.mxu2  ;;  %v451_v56 = vpop.f32.mrf.mxu3  ;;  %v958_v53 = vld [vmem:[%s1493_s10 + $0x38] sm:$0xff] }
 0x153   :  { %v432_v59 = vadd.f32 %v431_v55, %v406_v52 }
 0x154   :  { %748 = vmatmul.f32.vlgmr.msra.gmra.mxu3 %v575_v54 }
 0x155   :  { %v452_v61 = vadd.f32 %v451_v56, %v432_v59  ;;  %v551_v62 = vpop.f32.mrf.mxu0  ;;  %930 = vmatpush.msra.mxu3 %v905_v58  ;;  %v571_v2 = vpop.f32.mrf.mxu1  ;;  %v709_v58 = vperm.slane %v706_v45, 1 }
 0x156   :  { %v552_v63 = vadd.f32 %v551_v62, %v409_v57 }
 0x157   :  { %v574_v1 = vmax.f32 %v452_v61, 0.0  ;;  %931 = vmatpush.msra.mxu3 %v904_v60 }
 0x158   :  { %v572_v5 = vadd.f32 %v571_v2, %v552_v63 }
 0x159   :  { %728 = vmatmul.f32.vlgmr.msra.gmra.mxu2 %v574_v1  ;;  %932 = vmatpush.msra.mxu3 %v903_v0 }
 0x15a   :  { %v577_v6 = vmax.f32 %v572_v5, 0.0  ;;  %v511_v7 = vpop.f32.mrf.mxu2  ;;  %910 = vmatpush.msra.mxu2 %v889_v4  ;;  %v531_v10 = vpop.f32.mrf.mxu3 }
 0x15b   :  { %v512_v9 = vadd.f32 %v511_v7, %v408_v3  ;;  %933 = vmatpush.msra.mxu3 %v902_v19  ;;  %v956_v7 = vld [vmem:[%s1493_s10 + $0x28] sm:$0xff] }
 0x15c   :  { %788 = vmatmul.f32.vlgmr.msrb.gmra.mxu1 %v577_v6  ;;  %828 = vmatmul.f32.vlgmr.msrb.gmra.mxu3 %v575_v54  ;;  %v1035_v19 = vld [vmem:[#allocation17] ss:$0 sm:$0xff] }
 0x15d   :  { %v532_v12 = vadd.f32 %v531_v10, %v512_v9  ;;  %911 = vmatpush.msra.mxu2 %v888_v8  ;;  %934 = vmatpush.msra.mxu3 %v901_v21  ;;  %v955_v8 = vld [vmem:[%s1493_s10 + $0x20] sm:$0xff]  ;;  %v954_v9 = vld [vmem:[%s1493_s10 + $0x18] sm:$0xff]  ;;  %v953_v10 = vld [vmem:[%s1493_s10 + $0x10] sm:$0xff] }
 0x15f   :  { %v576_v13 = vmax.f32 %v532_v12, 0.0  ;;  %912 = vmatpush.msra.mxu2 %v887_v11  ;;  %935 = vmatpush.msra.mxu3 %v900_v23  ;;  %v952_v11 = vld [vmem:[%s1493_s10 + $0x8] sm:$0xff]  ;;  %v951_v12 = vld [vmem:[%s1493_s10] sm:$0xff] }
 0x161   :  { %768 = vmatmul.f32.vlgmr.msrb.gmra.mxu0 %v576_v13  ;;  %808 = vmatmul.f32.vlgmr.msrb.gmra.mxu2 %v574_v1 }
 0x162   :  { %913 = vmatpush.msra.mxu2 %v886_v14  ;;  %936 = vmatpush.msra.mxu3 %v899_v25 }
 0x163   :  { %971 = vmatpush.msrb.mxu0 %v966_v40 }
 0x164   :  { %868 = vmatmul.f32.vlgmr.msra.gmra.mxu1 %v577_v6  ;;  %914 = vmatpush.msra.mxu2 %v885_v15  ;;  %v957_v6 = vld [vmem:[%s1493_s10 + $0x30] sm:$0xff] }
 0x165   :  { %937 = vmatpush.msra.mxu3 %v898_v27  ;;  %972 = vmatpush.msrb.mxu0 %v965_v41 }
 0x166   :  { %915 = vmatpush.msra.mxu2 %v884_v16 }
 0x167   :  { %938 = vmatpush.msra.mxu3 %v897_v29  ;;  %973 = vmatpush.msrb.mxu0 %v964_v42 }
 0x168   :  { %916 = vmatpush.msra.mxu2 %v883_v17 }
 0x169   :  { %848 = vmatmul.f32.vlgmr.msra.gmra.mxu0 %v576_v13  ;;  %939 = vmatpush.msra.mxu3 %v896_v31  ;;  %v1034_v13 = vld [vmem:[#allocation16] ss:$0 sm:$0xff] }
 0x16a   :  { %917 = vmatpush.msra.mxu2 %v882_v18  ;;  %974 = vmatpush.msrb.mxu0 %v963_v43 }
 0x16b   :  { %940 = vmatpush.msra.mxu3 %v895_v33 }
 0x16c   :  { %918 = vmatpush.msra.mxu2 %v881_v20  ;;  %975 = vmatpush.msrb.mxu0 %v962_v44 }
 0x16d   :  { %941 = vmatpush.msra.mxu3 %v894_v35 }
 0x16e   :  { %919 = vmatpush.msra.mxu2 %v880_v22  ;;  %976 = vmatpush.msrb.mxu0 %v961_v46 }
 0x16f   :  { %942 = vmatpush.msra.mxu3 %v893_v36 }
 0x170   :  { %920 = vmatpush.msra.mxu2 %v879_v24  ;;  %977 = vmatpush.msrb.mxu0 %v960_v48 }
 0x171   :  { %943 = vmatpush.msra.mxu3 %v892_v37 }
 0x172   :  { %921 = vmatpush.msra.mxu2 %v878_v26  ;;  %978 = vmatpush.msrb.mxu0 %v959_v49 }
 0x173   :  { %944 = vmatpush.msra.mxu3 %v891_v38 }
 0x174   :  { %922 = vmatpush.msra.mxu2 %v877_v28  ;;  %979 = vmatpush.msrb.mxu0 %v958_v53 }
 0x175   :  { %945 = vmatpush.msra.mxu3 %v890_v39 }
 0x176   :  { %923 = vmatpush.msra.mxu2 %v876_v30  ;;  %980 = vmatpush.msrb.mxu0 %v957_v6 }
 0x178   :  { %924 = vmatpush.msra.mxu2 %v875_v32  ;;  %981 = vmatpush.msrb.mxu0 %v956_v7 }
 0x17a   :  { %925 = vmatpush.msra.mxu2 %v874_v34  ;;  %982 = vmatpush.msrb.mxu0 %v955_v8 }
 0x17c   :  { %983 = vmatpush.msrb.mxu0 %v954_v9 }
 0x17e   :  { %984 = vmatpush.msrb.mxu0 %v953_v10 }
 0x180   :  { %985 = vmatpush.msrb.mxu0 %v952_v11 }
 0x182   :  { %986 = vmatpush.msrb.mxu0 %v951_v12 }
 0x1d7   :  { %v749_v50 = vpop.f32.mrf.mxu3 }
 0x1d9   :  { %v789_v56 = vpop.f32.mrf.mxu1 }
 0x1dc   :  { %v729_v51 = vpop.f32.mrf.mxu2 }
 0x1dd   :  { %v730_v52 = vadd.f32 %v729_v51, %v708_v47 }
 0x1de   :  { %v769_v54 = vpop.f32.mrf.mxu0 }
 0x1df   :  { %v750_v55 = vadd.f32 %v749_v50, %v730_v52  ;;  %v829_v63 = vpop.f32.mrf.mxu3 }
 0x1e1   :  { %v770_v57 = vadd.f32 %v769_v54, %v750_v55  ;;  %v869_v3 = vpop.f32.mrf.mxu1 }
 0x1e3   :  { %v790_v59 = vadd.f32 %v789_v56, %v770_v57 }
 0x1e4   :  { %v809_v60 = vpop.f32.mrf.mxu2 }
 0x1e5   :  { %v872_v61 = vmax.f32 %v790_v59, 0.0  ;;  %v810_v62 = vadd.f32 %v809_v60, %v709_v58 }
 0x1e6   :  { %v849_v1 = vpop.f32.mrf.mxu0 }
 0x1e7   :  { %v830_v0 = vadd.f32 %v829_v63, %v810_v62  ;;  %926 = vmatmul.f32.vlgmr.msra.gmra.mxu2 %v872_v61 }
 0x1e9   :  { %v850_v2 = vadd.f32 %v849_v1, %v830_v0 }
 0x1eb   :  { %v870_v4 = vadd.f32 %v869_v3, %v850_v2 }
 0x1ed   :  { %v873_v5 = vmax.f32 %v870_v4, 0.0 }
 0x1ef   :  { %946 = vmatmul.f32.vlgmr.msra.gmra.mxu3 %v873_v5 }
 0x26a   :  { %v927_v14 = vpop.f32.mrf.mxu2 }
 0x26b   :  { %v928_v15 = vadd.f32 %v1034_v13, %v927_v14 }
 0x272   :  { %v947_v16 = vpop.f32.mrf.mxu3 }
 0x273   :  { %v948_v17 = vadd.f32 %v947_v16, %v928_v15 }
 0x275   :  { %v950_v18 = vmax.f32 %v948_v17, 0.0 }
 0x277   :  { %987 = vmatmul.f32.vlgmr.msrb.gmra.mxu0 %v950_v18 }
 0x2f4   :  { %v988_v20 = vpop.f32.mrf.mxu0 }
 0x2f5   :  { %v989_v21 = vadd.f32 %v1035_v19, %v988_v20 }
 0x2f7   :  { %992 = vst.msk [vmem:[#allocation19] sm:$0x3] %vm991_vm0, %v989_v21 }
 0x2f8   :  { %1003 = dma.vmem_to_hbm [thread:$0]  %s999_s30, 32, %s1001_s18, [#allocation4]  }
 0x2f9   :  { %1312 = dma.done.wait [#allocation4], 32  }
 0x2fa   :  { %1313 = vsyncadd [#allocation4], 4294967264 }
 0x2fb   :  { %1008 = vsyncpa [#allocation3], 1 }
 0x2fc   :  { %1009 = vsyncpa [#allocation6], 1 }
 0x2fd   :  { %1010 = vsyncpa [#allocation9], 1 }
 0x2fe   :  { %1011 = vsyncpa [#allocation12], 1 }
 0x2ff   :  { %1012 = vsyncpa [#allocation15], 1 }
 0x300   :  { %1013 = vsyncpa [#allocation18], 1 }
 0x301   :  { %1014 = vsyncpa [#allocation4], 1 }

// kernel: mlp_forward.2
= control target key start
LH: loop header
LB: loop body
LE: loop exit
PB: predicated region body
PF: predicated region fallthrough
CT: control target
= control target key end

     0   :  { %7 = vsyncpa [#allocation3], 0  ;;  %s15708_s0 = inlined_call_operand.vmem [shape: bf16[2,30208], index: 0, kind: input, shape index: {}]   ;;  %s15709_s1 = inlined_call_operand.hbm [shape: bf16[30208,128], index: 1, kind: input, shape index: {}]   ;;  %s15710_s2 = inlined_call_operand.vmem [shape: f32[2,2,128], index: 2, kind: output, shape index: {}]  }
   0x1   :  { %9 = vsyncpa [#allocation3 + $0x1], 0  ;;  %s14481_s9 = smov 0   ;;  %s14483_s10 = smov 0  }
   0x2   :  { %s14485_s11 = smov 0   ;;  %s14487_s12 = smov 0  }
   0x3 LB: > { %s14500_s13 = sadd.s32 4294967295, %s14462_s12   ;;  %s14503_s14 = sadd.s32 1, %s14462_s12   ;;  %s14462_s12 = sphi %s14487_s12, %s15716_s12   ;;  %s14458_s11 = sphi %s14485_s11, %s15715_s11   ;;  %s14454_s10 = sphi %s14483_s10, %s15714_s10   ;;  %s14450_s9 = sphi %s14481_s9, %s15713_s9  }
   0x4   : > { %s45_s15 = ssub.s32 %s14462_s12, %s14503_s14  ;;  %s48_s16 = sadd.s32 1, %s14458_s11 }
   0x5   : > { %p46_p0 = scmp.eq.s32.totalorder %s45_s15, 0  ;;  %p55_p1 = scmp.ne.s32.totalorder %s14458_s11, %s14454_s10 }
   0x6   : > { %p56_p2 = scmp.eq.s32.totalorder %s14462_s12, 0  ;;  %p61_p3 = scmp.ne.s32.totalorder %s14454_s10, %s14450_s9 }
   0x7   : > { %s14513_s17 = scalar_select %p46_p0, %s14458_s11, %s48_s16  }
   0x8   : > { %p57_p4 = por %p56_p2, %p55_p1  ;;  %p62_p5 = scmp.eq.s32.totalorder %s14500_s13, 0 }
   0x9   : > { %p14363_p6 = scmp.lt.s32.totalorder %s14462_s12, 2  ;;  %s119_s19 = sand.u32 1, %s14458_s11  }
   0xa   : > { %p14517_p7 = por %p62_p5, %p61_p3  ;;  %s14355_s20 = smul.u32 7552, %s119_s19 }
   0xb   : > { %s13410_s21 = smul.u32 7552, %s14462_s12  ;;  %p14523_p8 = pnand %p14363_p6, %p57_p4 }
   0xc   : > { %s123_s26 = scalar_lea.vmem [#allocation2], %s14355_s20  ;;  %p9630_p9 = scmp.ge.s32.totalorder %s14462_s12, 1 }
   0xd   : > { %s128_s25 = scalar_lea.hbm %s15709_s1, %s13410_s21  ;;  %s131_s27 = sshll.u32 %s123_s26, 4  ;;  %s132_s27 = int_to_ptr.vmem [resolvable:$true] %s131_s27 }
   0xe   : > { %s129_s28 = sshll.u32 %s128_s25, 4  ;;  %s120_s29 = scalar_lea.sflag [#allocation3], %s119_s19  ;;  %s130_s28 = int_to_ptr.hbm [resolvable:$true] %s129_s28 }
   0xf   : > { %s14398_s30 = sshra.s32 %s130_s28, 4  ;;  %p14402_p11 = pneg %p14523_p8  ;;  %s14399_s30 = int_to_ptr.hbm [resolvable:$true] %s14398_s30 }
  0x10   : > { %s14400_s3 = scalar_lea.hbm %s14399_s30, 7552  ;;  %s14405_s6 = scalar_lea.hbm %s15709_s1, 15104 }
  0x11   : > { %p14401_p10 = scmp.ne.s32.totalorder %s14399_s30, %s14400_s3  ;;  %p14406_p0 = scmp.lt.s32.totalorder %s14399_s30, %s15709_s1 }
  0x12   : > { %p14407_p1 = scmp.lt.s32.totalorder %s14405_s6, %s14400_s3 }
  0x13   : > { %p14403_p12 = pnand %p14402_p11, %p14401_p10 }
  0x14   : > { %p14408_p2 = por %p14407_p1, %p14406_p0 }
  0x15   : > { %p14404_p13 = pneg %p14403_p12 }
  0x17   : > { %p14409_p3 = pnand %p14408_p2, %p14404_p13 }
  0x19   : > { %14412 = shalt.err (!%p14409_p3)
}
  0x1a   : > { %s14464_s9 = smov 64   ;;  %s14465_s15 = smov 4  }
  0x1b   : > { %14362 = dma.hbm_to_vmem [thread:$0]  (!%p14523_p8), %s130_s28, 120832, %s132_s27, %s120_s29, %s14464_s9, %s14464_s9, %s14465_s15  }
  0x1c   : > { %p139_p4 = scmp.lt.s32.totalorder %s14462_s12, 3 }
  0x1e   : > { %p140_p5 = pnand %p9630_p9, %p139_p4 }
  0x1f   : > { %s145_s16 = sand.u32 (!%p140_p5), 1, %s14454_s10  }
  0x20   : > { %143 = sbr.rel (%p140_p5) target bundleno = 1133 (0x46d), region = 28  ;;  %s146_s20 = scalar_lea.sflag (!%p140_p5), [#allocation3], %s145_s16 }
  0x21   : > { %s14356_s19 = smul.u32 (!%p140_p5), 7552, %s145_s16 }
  0x23   : > { %s14545_s21 = scalar_lea.vmem (!%p140_p5), [#allocation2], %s14356_s19 }
  0x25   : > { %14445 = dma.done.wait (%p14517_p7), %s146_s20, 120832  }
  0x26   : > { %14447 = vsyncadd (%p14517_p7), %s146_s20, 4294846464  ;;  %v13418_v0 = vld [vmem:[%s14545_s21 + $0x38] sm:$0xff]  ;;  %v13417_v4 = vld [vmem:[%s14545_s21 + $0x30] sm:$0xff]  ;;  %s174_s12 = smul.u32 118, %s14500_s13  ;;  %p180_p7 = scmp.lt.s32.totalorder %s14500_s13, 1 }
  0x27   : > { %v13426_v1 = vld [vmem:[%s14545_s21 + $0x78] sm:$0xff]  ;;  %8017 = vmatpush.bf16.msra.mxu0 %v13418_v0  ;;  %v13425_v5 = vld [vmem:[%s14545_s21 + $0x70] sm:$0xff]  ;;  %v13416_v8 = vld [vmem:[%s14545_s21 + $0x28] sm:$0xff] }
  0x28   : > { %v13434_v2 = vld [vmem:[%s14545_s21 + $0xb8] sm:$0xff]  ;;  %8030 = vmatpush.bf16.msra.mxu1 %v13426_v1  ;;  %v13433_v6 = vld [vmem:[%s14545_s21 + $0xb0] sm:$0xff]  ;;  %v13424_v9 = vld [vmem:[%s14545_s21 + $0x68] sm:$0xff]  ;;  %p175_p6 = scmp.lt.s32.totalorder %s174_s12, 235  ;;  %s15720_s13 = smov (!%p180_p7, %s14500_s13), 1 }
  0x29   : > { %v13442_v3 = vld [vmem:[%s14545_s21 + $0xf8] sm:$0xff]  ;;  %8043 = vmatpush.bf16.msra.mxu2 %v13434_v2  ;;  %v13441_v7 = vld [vmem:[%s14545_s21 + $0xf0] sm:$0xff]  ;;  %v13432_v10 = vld [vmem:[%s14545_s21 + $0xa8] sm:$0xff]  ;;  %s9631_s24 = sshll.u32 %s15720_s13, 1 }
  0x2a   : > { %8056 = vmatpush.bf16.msra.mxu3 %v13442_v3  ;;  %v13440_v11 = vld [vmem:[%s14545_s21 + $0xe8] sm:$0xff]  ;;  %v13415_v12 = vld [vmem:[%s14545_s21 + $0x20] sm:$0xff]  ;;  %s15718_s12 = smov (!%p175_p6, %s174_s12), 235  ;;  %v13414_v16 = vld [vmem:[%s14545_s21 + $0x18] sm:$0xff]  ;;  %s183_s27 = scalar_lea.vmem %s15710_s2, %s9631_s24 }
  0x2b   : > { %8018 = vmatpush.bf16.msra.mxu0 %v13417_v4  ;;  %v13423_v13 = vld [vmem:[%s14545_s21 + $0x60] sm:$0xff]  ;;  %v13422_v17 = vld [vmem:[%s14545_s21 + $0x58] sm:$0xff]  ;;  %s14573_s23 = scalar_lea.vmem %s15708_s0, %s15718_s12  ;;  %v13413_v21 = vld [vmem:[%s14545_s21 + $0x10] sm:$0xff] }
  0x2c   : > { %8031 = vmatpush.bf16.msra.mxu1 %v13425_v5  ;;  %v13431_v14 = vld [vmem:[%s14545_s21 + $0xa0] sm:$0xff]  ;;  %v13430_v18 = vld [vmem:[%s14545_s21 + $0x98] sm:$0xff]  ;;  %v13421_v22 = vld [vmem:[%s14545_s21 + $0x50] sm:$0xff] }
  0x2d   : > { %8044 = vmatpush.bf16.msra.mxu2 %v13433_v6  ;;  %v13439_v15 = vld [vmem:[%s14545_s21 + $0xe0] sm:$0xff]  ;;  %v13438_v19 = vld [vmem:[%s14545_s21 + $0xd8] sm:$0xff]  ;;  %v13429_v23 = vld [vmem:[%s14545_s21 + $0x90] sm:$0xff] }
  0x2e   : > { %8057 = vmatpush.bf16.msra.mxu3 %v13441_v7  ;;  %v184_v20 = vld [vmem:[%s14573_s23] sm:$0xff]  ;;  %v13437_v24 = vld [vmem:[%s14545_s21 + $0xd0] sm:$0xff]  ;;  %v13412_v25 = vld [vmem:[%s14545_s21 + $0x8] sm:$0xff] }
  0x2f   : > { %8019 = vmatpush.bf16.msra.mxu0 %v13416_v8  ;;  %2088 = vst [vmem:[#allocation1] ss:$9 sm:$0xff] %v184_v20  ;;  %v13420_v26 = vld [vmem:[%s14545_s21 + $0x48] sm:$0xff]  ;;  %v13411_v29 = vld [vmem:[%s14545_s21] sm:$0xff]  ;;  %v13450_v32 = vld [vmem:[%s14545_s21 + $0x138] sm:$0xff] }
  0x30   : > { %8032 = vmatpush.bf16.msra.mxu1 %v13424_v9  ;;  %v13428_v27 = vld [vmem:[%s14545_s21 + $0x88] sm:$0xff]  ;;  %v13419_v30 = vld [vmem:[%s14545_s21 + $0x40] sm:$0xff]  ;;  %v13458_v33 = vld [vmem:[%s14545_s21 + $0x178] sm:$0xff] }
  0x31   : > { %8045 = vmatpush.bf16.msra.mxu2 %v13432_v10  ;;  %v13436_v28 = vld [vmem:[%s14545_s21 + $0xc8] sm:$0xff]  ;;  %v13427_v31 = vld [vmem:[%s14545_s21 + $0x80] sm:$0xff]  ;;  %v13466_v34 = vld [vmem:[%s14545_s21 + $0x1b8] sm:$0xff] }
  0x32   : > { %8058 = vmatpush.bf16.msra.mxu3 %v13440_v11  ;;  %v13435_v35 = vld [vmem:[%s14545_s21 + $0xc0] sm:$0xff]  ;;  %v13474_v36 = vld [vmem:[%s14545_s21 + $0x1f8] sm:$0xff]  ;;  %v13449_v38 = vld [vmem:[%s14545_s21 + $0x130] sm:$0xff] }
  0x33   : > { %8020 = vmatpush.bf16.msra.mxu0 %v13415_v12  ;;  %v13457_v40 = vld [vmem:[%s14545_s21 + $0x170] sm:$0xff]  ;;  %v13448_v45 = vld [vmem:[%s14545_s21 + $0x128] sm:$0xff]  ;;  %v13447_v49 = vld [vmem:[%s14545_s21 + $0x120] sm:$0xff] }
  0x34   : > { %8033 = vmatpush.bf16.msra.mxu1 %v13423_v13  ;;  %v13465_v41 = vld [vmem:[%s14545_s21 + $0x1b0] sm:$0xff]  ;;  %v13456_v46 = vld [vmem:[%s14545_s21 + $0x168] sm:$0xff]  ;;  %v13455_v50 = vld [vmem:[%s14545_s21 + $0x160] sm:$0xff] }
  0x35   : > { %8046 = vmatpush.bf16.msra.mxu2 %v13431_v14  ;;  %v13473_v43 = vld [vmem:[%s14545_s21 + $0x1f0] sm:$0xff]  ;;  %v13464_v47 = vld [vmem:[%s14545_s21 + $0x1a8] sm:$0xff]  ;;  %v13463_v51 = vld [vmem:[%s14545_s21 + $0x1a0] sm:$0xff] }
  0x36   : > { %8059 = vmatpush.bf16.msra.mxu3 %v13439_v15  ;;  %v2089_v37 = vld [vmem:[#allocation1] sm:$0xff]  ;;  %v2091_v39 = vld [vmem:[#allocation1 + $0x12] sm:$0xff]  ;;  %v2090_v42 = vld [vmem:[#allocation1 + $0x9] sm:$0xff] }
  0x37   : > { %8021 = vmatpush.bf16.msra.mxu0 %v13414_v16  ;;  %v2092_v44 = vld [vmem:[#allocation1 + $0x1b] sm:$0xff]  ;;  %v13472_v48 = vld [vmem:[%s14545_s21 + $0x1e8] sm:$0xff]  ;;  %v13471_v52 = vld [vmem:[%s14545_s21 + $0x1e0] sm:$0xff] }
  0x38   : > { %8034 = vmatpush.bf16.msra.mxu1 %v13422_v17  ;;  %v13446_v53 = vld [vmem:[%s14545_s21 + $0x118] sm:$0xff]  ;;  %v13445_v57 = vld [vmem:[%s14545_s21 + $0x110] sm:$0xff]  ;;  %v13444_v61 = vld [vmem:[%s14545_s21 + $0x108] sm:$0xff] }
  0x39   : > { %8047 = vmatpush.bf16.msra.mxu2 %v13430_v18  ;;  %v13454_v54 = vld [vmem:[%s14545_s21 + $0x158] sm:$0xff]  ;;  %v13453_v58 = vld [vmem:[%s14545_s21 + $0x150] sm:$0xff]  ;;  %v13452_v62 = vld [vmem:[%s14545_s21 + $0x148] sm:$0xff] }
  0x3a   : > { %8060 = vmatpush.bf16.msra.mxu3 %v13438_v19  ;;  %v13462_v55 = vld [vmem:[%s14545_s21 + $0x198] sm:$0xff]  ;;  %v13461_v59 = vld [vmem:[%s14545_s21 + $0x190] sm:$0xff]  ;;  %v13460_v63 = vld [vmem:[%s14545_s21 + $0x188] sm:$0xff] }
  0x3b   : > { %8022 = vmatpush.bf16.msra.mxu0 %v13413_v21  ;;  %v13470_v56 = vld [vmem:[%s14545_s21 + $0x1d8] sm:$0xff]  ;;  %v13469_v60 = vld [vmem:[%s14545_s21 + $0x1d0] sm:$0xff]  ;;  %v2094_v3 = vld [vmem:[#allocation1 + $0x2d] sm:$0xff] }
  0x3c   : > { %8035 = vmatpush.bf16.msra.mxu1 %v13421_v22  ;;  %v2095_v0 = vld [vmem:[#allocation1 + $0x36] sm:$0xff]  ;;  %v2093_v1 = vld [vmem:[#allocation1 + $0x24] sm:$0xff] }
  0x3d   : > { %8048 = vmatpush.bf16.msra.mxu2 %v13429_v23  ;;  %v2096_v2 = vld [vmem:[#allocation1 + $0x3f] sm:$0xff]  ;;  %v185_v4 = vld [vmem:[%s14573_s23 + $0x8] sm:$0xff]  ;;  %v13468_v5 = vld [vmem:[%s14545_s21 + $0x1c8] sm:$0xff] }
  0x3e   : > { %8061 = vmatpush.bf16.msra.mxu3 %v13437_v24  ;;  %2098 = vst [vmem:[#allocation1] ss:$9 sm:$0xff] %v185_v4  ;;  %v13443_v6 = vld [vmem:[%s14545_s21 + $0x100] sm:$0xff]  ;;  %v13482_v9 = vld [vmem:[%s14545_s21 + $0x238] sm:$0xff]  ;;  %v13481_v14 = vld [vmem:[%s14545_s21 + $0x230] sm:$0xff] }
  0x3f   : > { %8023 = vmatpush.bf16.msra.mxu0 %v13412_v25  ;;  %v13451_v7 = vld [vmem:[%s14545_s21 + $0x140] sm:$0xff]  ;;  %v13490_v10 = vld [vmem:[%s14545_s21 + $0x278] sm:$0xff]  ;;  %v13489_v15 = vld [vmem:[%s14545_s21 + $0x270] sm:$0xff] }
  0x40   : > { %8036 = vmatpush.bf16.msra.mxu1 %v13420_v26  ;;  %v13459_v8 = vld [vmem:[%s14545_s21 + $0x180] sm:$0xff]  ;;  %v13498_v11 = vld [vmem:[%s14545_s21 + $0x2b8] sm:$0xff]  ;;  %v13497_v16 = vld [vmem:[%s14545_s21 + $0x2b0] sm:$0xff] }
  0x41   : > { %8049 = vmatpush.bf16.msra.mxu2 %v13428_v27  ;;  %v13467_v12 = vld [vmem:[%s14545_s21 + $0x1c0] sm:$0xff]  ;;  %v13506_v13 = vld [vmem:[%s14545_s21 + $0x2f8] sm:$0xff]  ;;  %v13505_v17 = vld [vmem:[%s14545_s21 + $0x2f0] sm:$0xff] }
  0x42   : > { %8062 = vmatpush.bf16.msra.mxu3 %v13436_v28  ;;  %v13480_v18 = vld [vmem:[%s14545_s21 + $0x228] sm:$0xff]  ;;  %v13479_v22 = vld [vmem:[%s14545_s21 + $0x220] sm:$0xff]  ;;  %v13478_v26 = vld [vmem:[%s14545_s21 + $0x218] sm:$0xff] }
  0x43   : > { %8024 = vmatpush.bf16.msra.mxu0 %v13411_v29  ;;  %v13488_v19 = vld [vmem:[%s14545_s21 + $0x268] sm:$0xff]  ;;  %v13487_v23 = vld [vmem:[%s14545_s21 + $0x260] sm:$0xff]  ;;  %v13486_v27 = vld [vmem:[%s14545_s21 + $0x258] sm:$0xff] }
  0x44   : > { %8037 = vmatpush.bf16.msra.mxu1 %v13419_v30  ;;  %v13496_v20 = vld [vmem:[%s14545_s21 + $0x2a8] sm:$0xff]  ;;  %v13495_v24 = vld [vmem:[%s14545_s21 + $0x2a0] sm:$0xff]  ;;  %v13494_v28 = vld [vmem:[%s14545_s21 + $0x298] sm:$0xff] }
  0x45   : > { %8050 = vmatpush.bf16.msra.mxu2 %v13427_v31  ;;  %v13504_v21 = vld [vmem:[%s14545_s21 + $0x2e8] sm:$0xff]  ;;  %v13503_v25 = vld [vmem:[%s14545_s21 + $0x2e0] sm:$0xff]  ;;  %v13502_v29 = vld [vmem:[%s14545_s21 + $0x2d8] sm:$0xff] }
  0x46   : > { %8063 = vmatpush.bf16.msra.mxu3 %v13435_v35  ;;  %8025 = vmatmul.bf16.vlgmr.msra.gmra.mxu0 %v2089_v37  ;;  %v13477_v30 = vld [vmem:[%s14545_s21 + $0x210] sm:$0xff]  ;;  %v13484_v35 = vld [vmem:[%s14545_s21 + $0x248] sm:$0xff] }
  0x47   : > { %8069 = vmatpush.bf16.msrb.mxu0 %v13450_v32  ;;  %8038 = vmatmul.bf16.vlgmr.msra.gmra.mxu1 %v2090_v42  ;;  %v13485_v31 = vld [vmem:[%s14545_s21 + $0x250] sm:$0xff]  ;;  %v13500_v37 = vld [vmem:[%s14545_s21 + $0x2c8] sm:$0xff]  ;;  %v13522_v42 = vld [vmem:[%s14545_s21 + $0x378] sm:$0xff] }
  0x48   : > { %8082 = vmatpush.bf16.msrb.mxu1 %v13458_v33  ;;  %8051 = vmatmul.bf16.vlgmr.msra.gmra.mxu2 %v2091_v39  ;;  %v13493_v32 = vld [vmem:[%s14545_s21 + $0x290] sm:$0xff]  ;;  %v13483_v39 = vld [vmem:[%s14545_s21 + $0x240] sm:$0xff] }
  0x49   : > { %8095 = vmatpush.bf16.msrb.mxu2 %v13466_v34  ;;  %8064 = vmatmul.bf16.vlgmr.msra.gmra.mxu3 %v2092_v44  ;;  %v13501_v33 = vld [vmem:[%s14545_s21 + $0x2d0] sm:$0xff]  ;;  %v13476_v34 = vld [vmem:[%s14545_s21 + $0x208] sm:$0xff]  ;;  %v13499_v44 = vld [vmem:[%s14545_s21 + $0x2c0] sm:$0xff] }
  0x4a   : > { %8108 = vmatpush.bf16.msrb.mxu3 %v13474_v36  ;;  %v13492_v36 = vld [vmem:[%s14545_s21 + $0x288] sm:$0xff]  ;;  %v13525_v4 = vld [vmem:[%s14545_s21 + $0x390] sm:$0xff] }
  0x4b   : > { %8070 = vmatpush.bf16.msrb.mxu0 %v13449_v38  ;;  %v13475_v38 = vld [vmem:[%s14545_s21 + $0x200] sm:$0xff] }
  0x4c   : > { %8083 = vmatpush.bf16.msrb.mxu1 %v13457_v40  ;;  %v13491_v40 = vld [vmem:[%s14545_s21 + $0x280] sm:$0xff] }
  0x4d   : > { %8096 = vmatpush.bf16.msrb.mxu2 %v13465_v41  ;;  %v13514_v41 = vld [vmem:[%s14545_s21 + $0x338] sm:$0xff] }
  0x4e   : > { %8109 = vmatpush.bf16.msrb.mxu3 %v13473_v43  ;;  %v13530_v43 = vld [vmem:[%s14545_s21 + $0x3b8] sm:$0xff] }
  0x4f   : > { %8071 = vmatpush.bf16.msrb.mxu0 %v13448_v45  ;;  %v2099_v45 = vld [vmem:[#allocation1] sm:$0xff] }
  0x50   : > { %8084 = vmatpush.bf16.msrb.mxu1 %v13456_v46  ;;  %v13538_v46 = vld [vmem:[%s14545_s21 + $0x3f8] sm:$0xff] }
  0x51   : > { %8097 = vmatpush.bf16.msrb.mxu2 %v13464_v47  ;;  %v2101_v47 = vld [vmem:[#allocation1 + $0x12] sm:$0xff] }
  0x52   : > { %8110 = vmatpush.bf16.msrb.mxu3 %v13472_v48  ;;  %v13513_v48 = vld [vmem:[%s14545_s21 + $0x330] sm:$0xff] }
  0x53   : > { %8072 = vmatpush.bf16.msrb.mxu0 %v13447_v49  ;;  %v2100_v49 = vld [vmem:[#allocation1 + $0x9] sm:$0xff] }
  0x54   : > { %8085 = vmatpush.bf16.msrb.mxu1 %v13455_v50  ;;  %v13521_v50 = vld [vmem:[%s14545_s21 + $0x370] sm:$0xff] }
  0x55   : > { %8098 = vmatpush.bf16.msrb.mxu2 %v13463_v51  ;;  %v2102_v51 = vld [vmem:[#allocation1 + $0x1b] sm:$0xff] }
  0x56   : > { %8111 = vmatpush.bf16.msrb.mxu3 %v13471_v52  ;;  %v13529_v52 = vld [vmem:[%s14545_s21 + $0x3b0] sm:$0xff] }
  0x57   : > { %8073 = vmatpush.bf16.msrb.mxu0 %v13446_v53  ;;  %v13537_v53 = vld [vmem:[%s14545_s21 + $0x3f0] sm:$0xff] }
  0x58   : > { %8086 = vmatpush.bf16.msrb.mxu1 %v13454_v54  ;;  %v13512_v54 = vld [vmem:[%s14545_s21 + $0x328] sm:$0xff] }
  0x59   : > { %8099 = vmatpush.bf16.msrb.mxu2 %v13462_v55  ;;  %v13520_v55 = vld [vmem:[%s14545_s21 + $0x368] sm:$0xff] }
  0x5a   : > { %8112 = vmatpush.bf16.msrb.mxu3 %v13470_v56  ;;  %v13528_v56 = vld [vmem:[%s14545_s21 + $0x3a8] sm:$0xff] }
  0x5b   : > { %8074 = vmatpush.bf16.msrb.mxu0 %v13445_v57  ;;  %v13536_v57 = vld [vmem:[%s14545_s21 + $0x3e8] sm:$0xff] }
  0x5c   : > { %8087 = vmatpush.bf16.msrb.mxu1 %v13453_v58  ;;  %v13511_v58 = vld [vmem:[%s14545_s21 + $0x320] sm:$0xff] }
  0x5d   : > { %8100 = vmatpush.bf16.msrb.mxu2 %v13461_v59  ;;  %v13519_v59 = vld [vmem:[%s14545_s21 + $0x360] sm:$0xff] }
  0x5e   : > { %8113 = vmatpush.bf16.msrb.mxu3 %v13469_v60  ;;  %v13527_v60 = vld [vmem:[%s14545_s21 + $0x3a0] sm:$0xff] }
  0x5f   : > { %8075 = vmatpush.bf16.msrb.mxu0 %v13444_v61  ;;  %v13535_v61 = vld [vmem:[%s14545_s21 + $0x3e0] sm:$0xff] }
  0x60   : > { %8088 = vmatpush.bf16.msrb.mxu1 %v13452_v62  ;;  %v13510_v62 = vld [vmem:[%s14545_s21 + $0x318] sm:$0xff] }
  0x61   : > { %8101 = vmatpush.bf16.msrb.mxu2 %v13460_v63  ;;  %v13518_v63 = vld [vmem:[%s14545_s21 + $0x358] sm:$0xff] }
  0x62   : > { %8114 = vmatpush.bf16.msrb.mxu3 %v13468_v5  ;;  %v13533_v5 = vld [vmem:[%s14545_s21 + $0x3d0] sm:$0xff] }
  0x63   : > { %8076 = vmatpush.bf16.msrb.mxu0 %v13443_v6  ;;  %v13508_v6 = vld [vmem:[%s14545_s21 + $0x308] sm:$0xff] }
  0x64   : > { %8089 = vmatpush.bf16.msrb.mxu1 %v13451_v7  ;;  %v13516_v7 = vld [vmem:[%s14545_s21 + $0x348] sm:$0xff] }
  0x65   : > { %8102 = vmatpush.bf16.msrb.mxu2 %v13459_v8  ;;  %v13524_v8 = vld [vmem:[%s14545_s21 + $0x388] sm:$0xff] }
  0x66   : > { %8115 = vmatpush.bf16.msrb.mxu3 %v13467_v12  ;;  %8077 = vmatmul.bf16.vlgmr.msrb.gmra.mxu0 %v2093_v1  ;;  %v13534_v1 = vld [vmem:[%s14545_s21 + $0x3d8] sm:$0xff] }
  0x67   : > { %8121 = vmatpush.bf16.msra.mxu0 %v13482_v9  ;;  %8090 = vmatmul.bf16.vlgmr.msrb.gmra.mxu1 %v2094_v3  ;;  %v13517_v3 = vld [vmem:[%s14545_s21 + $0x350] sm:$0xff]  ;;  %v2103_v9 = vld [vmem:[#allocation1 + $0x24] sm:$0xff] }
  0x68   : > { %8134 = vmatpush.bf16.msra.mxu1 %v13490_v10  ;;  %8103 = vmatmul.bf16.vlgmr.msrb.gmra.mxu2 %v2095_v0  ;;  %v13526_v0 = vld [vmem:[%s14545_s21 + $0x398] sm:$0xff]  ;;  %v2105_v10 = vld [vmem:[#allocation1 + $0x36] sm:$0xff] }
  0x69   : > { %8147 = vmatpush.bf16.msra.mxu2 %v13498_v11  ;;  %8116 = vmatmul.bf16.vlgmr.msrb.gmra.mxu3 %v2096_v2  ;;  %v13509_v2 = vld [vmem:[%s14545_s21 + $0x310] sm:$0xff]  ;;  %v2104_v11 = vld [vmem:[#allocation1 + $0x2d] sm:$0xff] }
  0x6a   : > { %8160 = vmatpush.bf16.msra.mxu3 %v13506_v13  ;;  %v2106_v12 = vld [vmem:[#allocation1 + $0x3f] sm:$0xff]  ;;  %v186_v13 = vld [vmem:[%s14573_s23 + $0x10] sm:$0xff] }
  0x6b   : > { %8122 = vmatpush.bf16.msra.mxu0 %v13481_v14  ;;  %v13532_v14 = vld [vmem:[%s14545_s21 + $0x3c8] sm:$0xff]  ;;  %2108 = vst [vmem:[#allocation1] ss:$9 sm:$0xff] %v186_v13  ;;  %v13599_v13 = vld [vmem:[%s14545_s21 + $0x5e0] sm:$0xff] }
  0x6c   : > { %8135 = vmatpush.bf16.msra.mxu1 %v13489_v15  ;;  %v13507_v15 = vld [vmem:[%s14545_s21 + $0x300] sm:$0xff] }
  0x6d   : > { %8148 = vmatpush.bf16.msra.mxu2 %v13497_v16  ;;  %v13515_v16 = vld [vmem:[%s14545_s21 + $0x340] sm:$0xff] }
  0x6e   : > { %8161 = vmatpush.bf16.msra.mxu3 %v13505_v17  ;;  %v13546_v17 = vld [vmem:[%s14545_s21 + $0x438] sm:$0xff] }
  0x6f   : > { %8123 = vmatpush.bf16.msra.mxu0 %v13480_v18  ;;  %v13523_v18 = vld [vmem:[%s14545_s21 + $0x380] sm:$0xff] }
  0x70   : > { %8136 = vmatpush.bf16.msra.mxu1 %v13488_v19  ;;  %v13554_v19 = vld [vmem:[%s14545_s21 + $0x478] sm:$0xff] }
  0x71   : > { %8149 = vmatpush.bf16.msra.mxu2 %v13496_v20  ;;  %v13562_v20 = vld [vmem:[%s14545_s21 + $0x4b8] sm:$0xff] }
  0x72   : > { %8162 = vmatpush.bf16.msra.mxu3 %v13504_v21  ;;  %v13531_v21 = vld [vmem:[%s14545_s21 + $0x3c0] sm:$0xff] }
  0x73   : > { %8124 = vmatpush.bf16.msra.mxu0 %v13479_v22  ;;  %v13570_v22 = vld [vmem:[%s14545_s21 + $0x4f8] sm:$0xff] }
  0x74   : > { %8137 = vmatpush.bf16.msra.mxu1 %v13487_v23  ;;  %v13545_v23 = vld [vmem:[%s14545_s21 + $0x430] sm:$0xff] }
  0x75   : > { %8150 = vmatpush.bf16.msra.mxu2 %v13495_v24  ;;  %v13553_v24 = vld [vmem:[%s14545_s21 + $0x470] sm:$0xff] }
  0x76   : > { %8163 = vmatpush.bf16.msra.mxu3 %v13503_v25  ;;  %v13561_v25 = vld [vmem:[%s14545_s21 + $0x4b0] sm:$0xff] }
  0x77   : > { %8125 = vmatpush.bf16.msra.mxu0 %v13478_v26  ;;  %v13569_v26 = vld [vmem:[%s14545_s21 + $0x4f0] sm:$0xff] }
  0x78   : > { %8138 = vmatpush.bf16.msra.mxu1 %v13486_v27  ;;  %v13544_v27 = vld [vmem:[%s14545_s21 + $0x428] sm:$0xff] }
  0x79   : > { %8151 = vmatpush.bf16.msra.mxu2 %v13494_v28  ;;  %v13552_v28 = vld [vmem:[%s14545_s21 + $0x468] sm:$0xff] }
  0x7a   : > { %8164 = vmatpush.bf16.msra.mxu3 %v13502_v29  ;;  %v13560_v29 = vld [vmem:[%s14545_s21 + $0x4a8] sm:$0xff] }
  0x7b   : > { %8126 = vmatpush.bf16.msra.mxu0 %v13477_v30  ;;  %v13568_v30 = vld [vmem:[%s14545_s21 + $0x4e8] sm:$0xff] }
  0x7c   : > { %8139 = vmatpush.bf16.msra.mxu1 %v13485_v31  ;;  %v13543_v31 = vld [vmem:[%s14545_s21 + $0x420] sm:$0xff] }
  0x7d   : > { %8152 = vmatpush.bf16.msra.mxu2 %v13493_v32  ;;  %v13551_v32 = vld [vmem:[%s14545_s21 + $0x460] sm:$0xff] }
  0x7e   : > { %8165 = vmatpush.bf16.msra.mxu3 %v13501_v33  ;;  %v13559_v33 = vld [vmem:[%s14545_s21 + $0x4a0] sm:$0xff] }
  0x7f   : > { %8127 = vmatpush.bf16.msra.mxu0 %v13476_v34  ;;  %v13567_v34 = vld [vmem:[%s14545_s21 + $0x4e0] sm:$0xff] }
  0x80   : > { %8140 = vmatpush.bf16.msra.mxu1 %v13484_v35  ;;  %v13542_v35 = vld [vmem:[%s14545_s21 + $0x418] sm:$0xff] }
  0x81   : > { %8153 = vmatpush.bf16.msra.mxu2 %v13492_v36  ;;  %v13550_v36 = vld [vmem:[%s14545_s21 + $0x458] sm:$0xff] }
  0x82   : > { %8166 = vmatpush.bf16.msra.mxu3 %v13500_v37  ;;  %v13558_v37 = vld [vmem:[%s14545_s21 + $0x498] sm:$0xff] }
  0x83   : > { %8128 = vmatpush.bf16.msra.mxu0 %v13475_v38  ;;  %v13566_v38 = vld [vmem:[%s14545_s21 + $0x4d8] sm:$0xff] }
  0x84   : > { %8141 = vmatpush.bf16.msra.mxu1 %v13483_v39  ;;  %v13541_v39 = vld [vmem:[%s14545_s21 + $0x410] sm:$0xff] }
  0x85   : > { %8154 = vmatpush.bf16.msra.mxu2 %v13491_v40  ;;  %v13549_v40 = vld [vmem:[%s14545_s21 + $0x450] sm:$0xff] }
  0x86   : > { %8167 = vmatpush.bf16.msra.mxu3 %v13499_v44  ;;  %8129 = vmatmul.bf16.vlgmr.msra.gmra.mxu0 %v2099_v45  ;;  %v13548_v44 = vld [vmem:[%s14545_s21 + $0x448] sm:$0xff] }
  0x87   : > { %8173 = vmatpush.bf16.msrb.mxu0 %v13514_v41  ;;  %8142 = vmatmul.bf16.vlgmr.msra.gmra.mxu1 %v2100_v49  ;;  %v13557_v41 = vld [vmem:[%s14545_s21 + $0x490] sm:$0xff]  ;;  %v13556_v45 = vld [vmem:[%s14545_s21 + $0x488] sm:$0xff]  ;;  %v13555_v49 = vld [vmem:[%s14545_s21 + $0x480] sm:$0xff] }
  0x88   : > { %8186 = vmatpush.bf16.msrb.mxu1 %v13522_v42  ;;  %8155 = vmatmul.bf16.vlgmr.msra.gmra.mxu2 %v2101_v47  ;;  %v13565_v42 = vld [vmem:[%s14545_s21 + $0x4d0] sm:$0xff]  ;;  %v13539_v47 = vld [vmem:[%s14545_s21 + $0x400] sm:$0xff] }
  0x89   : > { %8199 = vmatpush.bf16.msrb.mxu2 %v13530_v43  ;;  %8168 = vmatmul.bf16.vlgmr.msra.gmra.mxu3 %v2102_v51  ;;  %v13540_v43 = vld [vmem:[%s14545_s21 + $0x408] sm:$0xff]  ;;  %v13586_v51 = vld [vmem:[%s14545_s21 + $0x578] sm:$0xff] }
  0x8a   : > { %8212 = vmatpush.bf16.msrb.mxu3 %v13538_v46  ;;  %v13564_v46 = vld [vmem:[%s14545_s21 + $0x4c8] sm:$0xff] }
  0x8b   : > { %8174 = vmatpush.bf16.msrb.mxu0 %v13513_v48  ;;  %v13547_v48 = vld [vmem:[%s14545_s21 + $0x440] sm:$0xff] }
  0x8c   : > { %8187 = vmatpush.bf16.msrb.mxu1 %v13521_v50  ;;  %v13578_v50 = vld [vmem:[%s14545_s21 + $0x538] sm:$0xff] }
  0x8d   : > { %8200 = vmatpush.bf16.msrb.mxu2 %v13529_v52  ;;  %v187_v52 = vld [vmem:[%s14573_s23 + $0x18] sm:$0xff] }
  0x8e   : > { %8213 = vmatpush.bf16.msrb.mxu3 %v13537_v53  ;;  %v13594_v53 = vld [vmem:[%s14545_s21 + $0x5b8] sm:$0xff] }
  0x8f   : > { %8175 = vmatpush.bf16.msrb.mxu0 %v13512_v54  ;;  %v13563_v54 = vld [vmem:[%s14545_s21 + $0x4c0] sm:$0xff] }
  0x90   : > { %8188 = vmatpush.bf16.msrb.mxu1 %v13520_v55  ;;  %v2109_v55 = vld [vmem:[#allocation1] sm:$0xff] }
  0x91   : > { %8201 = vmatpush.bf16.msrb.mxu2 %v13528_v56  ;;  %v2111_v56 = vld [vmem:[#allocation1 + $0x12] sm:$0xff] }
  0x92   : > { %8214 = vmatpush.bf16.msrb.mxu3 %v13536_v57  ;;  %v13602_v57 = vld [vmem:[%s14545_s21 + $0x5f8] sm:$0xff] }
  0x93   : > { %8176 = vmatpush.bf16.msrb.mxu0 %v13511_v58  ;;  %v2110_v58 = vld [vmem:[#allocation1 + $0x9] sm:$0xff] }
  0x94   : > { %8189 = vmatpush.bf16.msrb.mxu1 %v13519_v59  ;;  %v2112_v59 = vld [vmem:[#allocation1 + $0x1b] sm:$0xff] }
  0x95   : > { %8202 = vmatpush.bf16.msrb.mxu2 %v13527_v60  ;;  %v13577_v60 = vld [vmem:[%s14545_s21 + $0x530] sm:$0xff] }
  0x96   : > { %8215 = vmatpush.bf16.msrb.mxu3 %v13535_v61  ;;  %v13585_v61 = vld [vmem:[%s14545_s21 + $0x570] sm:$0xff] }
  0x97   : > { %8177 = vmatpush.bf16.msrb.mxu0 %v13510_v62  ;;  %v13593_v62 = vld [vmem:[%s14545_s21 + $0x5b0] sm:$0xff] }
  0x98   : > { %8190 = vmatpush.bf16.msrb.mxu1 %v13518_v63  ;;  %v14728_v63 = vld [vmem:[#allocation1 + $0x24] sm:$0xff] }
  0x99   : > { %8203 = vmatpush.bf16.msrb.mxu2 %v13526_v0  ;;  %v14730_v0 = vld [vmem:[#allocation1 + $0x36] sm:$0xff] }
  0x9a   : > { %8216 = vmatpush.bf16.msrb.mxu3 %v13534_v1  ;;  %v14732_v1 = vld [vmem:[#allocation1 + $0x2d] sm:$0xff] }
  0x9b   : > { %8178 = vmatpush.bf16.msrb.mxu0 %v13509_v2  ;;  %v14734_v2 = vld [vmem:[#allocation1 + $0x3f] sm:$0xff] }
  0x9c   : > { %8191 = vmatpush.bf16.msrb.mxu1 %v13517_v3  ;;  %2118 = vst [vmem:[#allocation1] ss:$9 sm:$0xff] %v187_v52  ;;  %v13601_v3 = vld [vmem:[%s14545_s21 + $0x5f0] sm:$0xff]  ;;  %v13615_v52 = vld [vmem:[%s14545_s21 + $0x660] sm:$0xff] }
  0x9d   : > { %8204 = vmatpush.bf16.msrb.mxu2 %v13525_v4  ;;  %v13576_v4 = vld [vmem:[%s14545_s21 + $0x528] sm:$0xff] }
  0x9e   : > { %8217 = vmatpush.bf16.msrb.mxu3 %v13533_v5  ;;  %v13584_v5 = vld [vmem:[%s14545_s21 + $0x568] sm:$0xff] }
  0x9f   : > { %8179 = vmatpush.bf16.msrb.mxu0 %v13508_v6  ;;  %v13592_v6 = vld [vmem:[%s14545_s21 + $0x5a8] sm:$0xff] }
  0xa0   : > { %8192 = vmatpush.bf16.msrb.mxu1 %v13516_v7  ;;  %v13600_v7 = vld [vmem:[%s14545_s21 + $0x5e8] sm:$0xff] }
  0xa1   : > { %8205 = vmatpush.bf16.msrb.mxu2 %v13524_v8  ;;  %v13575_v8 = vld [vmem:[%s14545_s21 + $0x520] sm:$0xff] }
  0xa2   : > { %8218 = vmatpush.bf16.msrb.mxu3 %v13532_v14 }
  0xa3   : > { %8180 = vmatpush.bf16.msrb.mxu0 %v13507_v15  ;;  %v13574_v15 = vld [vmem:[%s14545_s21 + $0x518] sm:$0xff] }
  0xa4   : > { %8193 = vmatpush.bf16.msrb.mxu1 %v13515_v16  ;;  %v13582_v16 = vld [vmem:[%s14545_s21 + $0x558] sm:$0xff] }
  0xa5   : > { %8206 = vmatpush.bf16.msrb.mxu2 %v13523_v18  ;;  %v13598_v18 = vld [vmem:[%s14545_s21 + $0x5d8] sm:$0xff] }
  0xa6   : > { %8219 = vmatpush.bf16.msrb.mxu3 %v13531_v21  ;;  %8181 = vmatmul.bf16.vlgmr.msrb.gmra.mxu0 %v2103_v9 }
  0xa7   : > { %8225 = vmatpush.bf16.msra.mxu0 %v13546_v17  ;;  %8194 = vmatmul.bf16.vlgmr.msrb.gmra.mxu1 %v2104_v11  ;;  %v13591_v11 = vld [vmem:[%s14545_s21 + $0x5a0] sm:$0xff]  ;;  %v13590_v17 = vld [vmem:[%s14545_s21 + $0x598] sm:$0xff] }
  0xa8   : > { %8238 = vmatpush.bf16.msra.mxu1 %v13554_v19  ;;  %8207 = vmatmul.bf16.vlgmr.msrb.gmra.mxu2 %v2105_v10  ;;  %v13583_v10 = vld [vmem:[%s14545_s21 + $0x560] sm:$0xff] }
  0xa9   : > { %8251 = vmatpush.bf16.msra.mxu2 %v13562_v20  ;;  %8220 = vmatmul.bf16.vlgmr.msrb.gmra.mxu3 %v2106_v12  ;;  %v13573_v20 = vld [vmem:[%s14545_s21 + $0x510] sm:$0xff] }
  0xaa   : > { %8264 = vmatpush.bf16.msra.mxu3 %v13570_v22 }
  0xab   : > { %8226 = vmatpush.bf16.msra.mxu0 %v13545_v23  ;;  %v13581_v23 = vld [vmem:[%s14545_s21 + $0x550] sm:$0xff] }
  0xac   : > { %8239 = vmatpush.bf16.msra.mxu1 %v13553_v24  ;;  %v13589_v24 = vld [vmem:[%s14545_s21 + $0x590] sm:$0xff] }
  0xad   : > { %8252 = vmatpush.bf16.msra.mxu2 %v13561_v25 }
  0xae   : > { %8265 = vmatpush.bf16.msra.mxu3 %v13569_v26 }
  0xaf   : > { %8227 = vmatpush.bf16.msra.mxu0 %v13544_v27  ;;  %v13597_v27 = vld [vmem:[%s14545_s21 + $0x5d0] sm:$0xff] }
  0xb0   : > { %8240 = vmatpush.bf16.msra.mxu1 %v13552_v28 }
  0xb1   : > { %8253 = vmatpush.bf16.msra.mxu2 %v13560_v29  ;;  %v13572_v29 = vld [vmem:[%s14545_s21 + $0x508] sm:$0xff] }
  0xb2   : > { %8266 = vmatpush.bf16.msra.mxu3 %v13568_v30  ;;  %v13580_v30 = vld [vmem:[%s14545_s21 + $0x548] sm:$0xff] }
  0xb3   : > { %8228 = vmatpush.bf16.msra.mxu0 %v13543_v31  ;;  %v13588_v31 = vld [vmem:[%s14545_s21 + $0x588] sm:$0xff] }
  0xb4   : > { %8241 = vmatpush.bf16.msra.mxu1 %v13551_v32  ;;  %v13596_v32 = vld [vmem:[%s14545_s21 + $0x5c8] sm:$0xff] }
  0xb5   : > { %8254 = vmatpush.bf16.msra.mxu2 %v13559_v33 }
  0xb6   : > { %8267 = vmatpush.bf16.msra.mxu3 %v13567_v34  ;;  %v13571_v34 = vld [vmem:[%s14545_s21 + $0x500] sm:$0xff] }
  0xb7   : > { %8229 = vmatpush.bf16.msra.mxu0 %v13542_v35  ;;  %v13579_v35 = vld [vmem:[%s14545_s21 + $0x540] sm:$0xff] }
  0xb8   : > { %8242 = vmatpush.bf16.msra.mxu1 %v13550_v36  ;;  %v13587_v36 = vld [vmem:[%s14545_s21 + $0x580] sm:$0xff] }
  0xb9   : > { %8255 = vmatpush.bf16.msra.mxu2 %v13558_v37  ;;  %v13610_v37 = vld [vmem:[%s14545_s21 + $0x638] sm:$0xff] }
  0xba   : > { %8268 = vmatpush.bf16.msra.mxu3 %v13566_v38  ;;  %v13618_v38 = vld [vmem:[%s14545_s21 + $0x678] sm:$0xff] }
  0xbb   : > { %8230 = vmatpush.bf16.msra.mxu0 %v13541_v39 }
  0xbc   : > { %8243 = vmatpush.bf16.msra.mxu1 %v13549_v40  ;;  %v13626_v40 = vld [vmem:[%s14545_s21 + $0x6b8] sm:$0xff] }
  0xbd   : > { %8256 = vmatpush.bf16.msra.mxu2 %v13557_v41  ;;  %v13595_v41 = vld [vmem:[%s14545_s21 + $0x5c0] sm:$0xff] }
  0xbe   : > { %8269 = vmatpush.bf16.msra.mxu3 %v13565_v42  ;;  %v13634_v42 = vld [vmem:[%s14545_s21 + $0x6f8] sm:$0xff] }
  0xbf   : > { %8231 = vmatpush.bf16.msra.mxu0 %v13540_v43  ;;  %v13609_v43 = vld [vmem:[%s14545_s21 + $0x630] sm:$0xff] }
  0xc0   : > { %8244 = vmatpush.bf16.msra.mxu1 %v13548_v44  ;;  %v13617_v44 = vld [vmem:[%s14545_s21 + $0x670] sm:$0xff] }
  0xc1   : > { %8257 = vmatpush.bf16.msra.mxu2 %v13556_v45  ;;  %v13625_v45 = vld [vmem:[%s14545_s21 + $0x6b0] sm:$0xff] }
  0xc2   : > { %8270 = vmatpush.bf16.msra.mxu3 %v13564_v46  ;;  %v13633_v46 = vld [vmem:[%s14545_s21 + $0x6f0] sm:$0xff] }
  0xc3   : > { %8232 = vmatpush.bf16.msra.mxu0 %v13539_v47  ;;  %v8026_v9 = vpop.f32.mrf.mxu0  ;;  %v13608_v47 = vld [vmem:[%s14545_s21 + $0x628] sm:$0xff] }
  0xc4   : > { %8245 = vmatpush.bf16.msra.mxu1 %v13547_v48  ;;  %v8039_v12 = vpop.f32.mrf.mxu1  ;;  %v13616_v48 = vld [vmem:[%s14545_s21 + $0x668] sm:$0xff] }
  0xc5   : > { %8258 = vmatpush.bf16.msra.mxu2 %v13555_v49  ;;  %v8040_v14 = vadd.f32 %v8039_v12, %v8026_v9  ;;  %v13624_v49 = vld [vmem:[%s14545_s21 + $0x6a8] sm:$0xff] }
  0xc6   : > { %8271 = vmatpush.bf16.msra.mxu3 %v13563_v54  ;;  %8233 = vmatmul.bf16.vlgmr.msra.gmra.mxu0 %v2109_v55  ;;  %v13604_v9 = vld [vmem:[%s14545_s21 + $0x608] sm:$0xff] }
  0xc7   : > { %8277 = vmatpush.bf16.msrb.mxu0 %v13578_v50  ;;  %8246 = vmatmul.bf16.vlgmr.msra.gmra.mxu1 %v2110_v58  ;;  %v13632_v50 = vld [vmem:[%s14545_s21 + $0x6e8] sm:$0xff]  ;;  %v13606_v58 = vld [vmem:[%s14545_s21 + $0x618] sm:$0xff] }
  0xc8   : > { %8290 = vmatpush.bf16.msrb.mxu1 %v13586_v51  ;;  %8259 = vmatmul.bf16.vlgmr.msra.gmra.mxu2 %v2111_v56  ;;  %v13607_v51 = vld [vmem:[%s14545_s21 + $0x620] sm:$0xff] }
  0xc9   : > { %8303 = vmatpush.bf16.msrb.mxu2 %v13594_v53  ;;  %8272 = vmatmul.bf16.vlgmr.msra.gmra.mxu3 %v2112_v59  ;;  %v13623_v53 = vld [vmem:[%s14545_s21 + $0x6a0] sm:$0xff] }
  0xca   : > { %8316 = vmatpush.bf16.msrb.mxu3 %v13602_v57  ;;  %v13631_v57 = vld [vmem:[%s14545_s21 + $0x6e0] sm:$0xff] }
  0xcb   : > { %8278 = vmatpush.bf16.msrb.mxu0 %v13577_v60  ;;  %v8052_v19 = vpop.f32.mrf.mxu2  ;;  %v8028_v22 = vpop.f32.mrf.mxu0  ;;  %v13614_v60 = vld [vmem:[%s14545_s21 + $0x658] sm:$0xff] }
  0xcc   : > { %8291 = vmatpush.bf16.msrb.mxu1 %v13585_v61  ;;  %v8053_v21 = vadd.f32 %v8052_v19, %v8040_v14  ;;  %v8065_v25 = vpop.f32.mrf.mxu3  ;;  %v8041_v26 = vpop.f32.mrf.mxu1  ;;  %v13622_v61 = vld [vmem:[%s14545_s21 + $0x698] sm:$0xff]  ;;  %v13603_v14 = vld [vmem:[%s14545_s21 + $0x600] sm:$0xff] }
  0xcd   : > { %8304 = vmatpush.bf16.msrb.mxu2 %v13593_v62  ;;  %v13650_v19 = vld [vmem:[%s14545_s21 + $0x778] sm:$0xff]  ;;  %v13627_v22 = vld [vmem:[%s14545_s21 + $0x6c0] sm:$0xff] }
  0xce   : > { %8317 = vmatpush.bf16.msrb.mxu3 %v13601_v3  ;;  %v8066_v28 = vadd.f32 %v8065_v25, %v8053_v21  ;;  %v13621_v3 = vld [vmem:[%s14545_s21 + $0x690] sm:$0xff]  ;;  %v13658_v21 = vld [vmem:[%s14545_s21 + $0x7b8] sm:$0xff]  ;;  %v2120_v26 = vld [vmem:[#allocation1 + $0x9] sm:$0xff] }
  0xcf   : > { %8279 = vmatpush.bf16.msrb.mxu0 %v13576_v4  ;;  %v13666_v25 = vld [vmem:[%s14545_s21 + $0x7f8] sm:$0xff] }
  0xd0   : > { %8292 = vmatpush.bf16.msrb.mxu1 %v13584_v5 }
  0xd1   : > { %8305 = vmatpush.bf16.msrb.mxu2 %v13592_v6 }
  0xd2   : > { %8318 = vmatpush.bf16.msrb.mxu3 %v13600_v7 }
  0xd3   : > { %8280 = vmatpush.bf16.msrb.mxu0 %v13575_v8  ;;  %v8054_v33 = vpop.f32.mrf.mxu2  ;;  %v13629_v8 = vld [vmem:[%s14545_s21 + $0x6d0] sm:$0xff] }
  0xd4   : > { %8293 = vmatpush.bf16.msrb.mxu1 %v13583_v10  ;;  %v8067_v39 = vpop.f32.mrf.mxu3  ;;  %v13612_v10 = vld [vmem:[%s14545_s21 + $0x648] sm:$0xff] }
  0xd5   : > { %8306 = vmatpush.bf16.msrb.mxu2 %v13591_v11  ;;  %v13620_v11 = vld [vmem:[%s14545_s21 + $0x688] sm:$0xff] }
  0xd6   : > { %8319 = vmatpush.bf16.msrb.mxu3 %v13599_v13  ;;  %v13628_v13 = vld [vmem:[%s14545_s21 + $0x6c8] sm:$0xff] }
  0xd7   : > { %8281 = vmatpush.bf16.msrb.mxu0 %v13574_v15  ;;  %v13611_v15 = vld [vmem:[%s14545_s21 + $0x640] sm:$0xff]  ;;  %v13664_v39 = vld [vmem:[%s14545_s21 + $0x7e8] sm:$0xff] }
  0xd8   : > { %8294 = vmatpush.bf16.msrb.mxu1 %v13582_v16  ;;  %v13619_v16 = vld [vmem:[%s14545_s21 + $0x680] sm:$0xff] }
  0xd9   : > { %8307 = vmatpush.bf16.msrb.mxu2 %v13590_v17  ;;  %v14809_v33 = vld [vmem:[#allocation1 + $0x2d] sm:$0xff] }
  0xda   : > { %8320 = vmatpush.bf16.msrb.mxu3 %v13598_v18  ;;  %v13642_v18 = vld [vmem:[%s14545_s21 + $0x738] sm:$0xff] }
  0xdb   : > { %8282 = vmatpush.bf16.msrb.mxu0 %v13573_v20  ;;  %v188_v20 = vld [vmem:[%s14573_s23 + $0x20] sm:$0xff] }
  0xdc   : > { %8295 = vmatpush.bf16.msrb.mxu1 %v13581_v23  ;;  %v2119_v23 = vld [vmem:[#allocation1] sm:$0xff] }
  0xdd   : > { %8308 = vmatpush.bf16.msrb.mxu2 %v13589_v24  ;;  %v2121_v24 = vld [vmem:[#allocation1 + $0x12] sm:$0xff] }
  0xde   : > { %8321 = vmatpush.bf16.msrb.mxu3 %v13597_v27  ;;  %v2122_v27 = vld [vmem:[#allocation1 + $0x1b] sm:$0xff] }
  0xdf   : > { %8283 = vmatpush.bf16.msrb.mxu0 %v13572_v29  ;;  %v13649_v29 = vld [vmem:[%s14545_s21 + $0x770] sm:$0xff] }
  0xe0   : > { %8296 = vmatpush.bf16.msrb.mxu1 %v13580_v30  ;;  %v13657_v30 = vld [vmem:[%s14545_s21 + $0x7b0] sm:$0xff] }
  0xe1   : > { %8309 = vmatpush.bf16.msrb.mxu2 %v13588_v31  ;;  %v14805_v31 = vld [vmem:[#allocation1 + $0x24] sm:$0xff] }
  0xe2   : > { %8322 = vmatpush.bf16.msrb.mxu3 %v13596_v32  ;;  %v14807_v32 = vld [vmem:[#allocation1 + $0x36] sm:$0xff] }
  0xe3   : > { %8284 = vmatpush.bf16.msrb.mxu0 %v13571_v34  ;;  %v8078_v54 = vpop.f32.mrf.mxu0  ;;  %v14811_v34 = vld [vmem:[#allocation1 + $0x3f] sm:$0xff] }
  0xe4   : > { %8297 = vmatpush.bf16.msrb.mxu1 %v13579_v35  ;;  %v8091_v55 = vpop.f32.mrf.mxu1  ;;  %v8079_v56 = vadd.f32 %v8078_v54, %v8066_v28  ;;  %v13641_v28 = vld [vmem:[%s14545_s21 + $0x730] sm:$0xff]  ;;  %2128 = vst [vmem:[#allocation1] ss:$9 sm:$0xff] %v188_v20 }
  0xe5   : > { %8310 = vmatpush.bf16.msrb.mxu2 %v13587_v36  ;;  %v13665_v35 = vld [vmem:[%s14545_s21 + $0x7f0] sm:$0xff]  ;;  %v13640_v36 = vld [vmem:[%s14545_s21 + $0x728] sm:$0xff] }
  0xe6   : > { %8323 = vmatpush.bf16.msrb.mxu3 %v13595_v41  ;;  %8285 = vmatmul.bf16.vlgmr.msrb.gmra.mxu0 %v14728_v63  ;;  %v8092_v59 = vadd.f32 %v8091_v55, %v8079_v56  ;;  %v13630_v63 = vld [vmem:[%s14545_s21 + $0x6d8] sm:$0xff]  ;;  %v13637_v56 = vld [vmem:[%s14545_s21 + $0x710] sm:$0xff] }
  0xe7   : > { %8329 = vmatpush.bf16.msra.mxu0 %v13610_v37  ;;  %8298 = vmatmul.bf16.vlgmr.msrb.gmra.mxu1 %v14732_v1  ;;  %v13605_v1 = vld [vmem:[%s14545_s21 + $0x610] sm:$0xff]  ;;  %v13648_v37 = vld [vmem:[%s14545_s21 + $0x768] sm:$0xff] }
  0xe8   : > { %8342 = vmatpush.bf16.msra.mxu1 %v13618_v38  ;;  %8311 = vmatmul.bf16.vlgmr.msrb.gmra.mxu2 %v14730_v0  ;;  %v13656_v38 = vld [vmem:[%s14545_s21 + $0x7a8] sm:$0xff] }
  0xe9   : > { %8355 = vmatpush.bf16.msra.mxu2 %v13626_v40  ;;  %8324 = vmatmul.bf16.vlgmr.msrb.gmra.mxu3 %v14734_v2  ;;  %v13613_v2 = vld [vmem:[%s14545_s21 + $0x650] sm:$0xff] }
  0xea   : > { %8368 = vmatpush.bf16.msra.mxu3 %v13634_v42  ;;  %v13639_v42 = vld [vmem:[%s14545_s21 + $0x720] sm:$0xff] }
  0xeb   : > { %8330 = vmatpush.bf16.msra.mxu0 %v13609_v43  ;;  %v8104_v62 = vpop.f32.mrf.mxu2  ;;  %v8080_v5 = vpop.f32.mrf.mxu0  ;;  %v13647_v43 = vld [vmem:[%s14545_s21 + $0x760] sm:$0xff] }
  0xec   : > { %8343 = vmatpush.bf16.msra.mxu1 %v13617_v44  ;;  %v8105_v0 = vadd.f32 %v8104_v62, %v8092_v59  ;;  %v8117_v4 = vpop.f32.mrf.mxu3  ;;  %v8093_v7 = vpop.f32.mrf.mxu1  ;;  %v13655_v44 = vld [vmem:[%s14545_s21 + $0x7a0] sm:$0xff]  ;;  %v13653_v59 = vld [vmem:[%s14545_s21 + $0x790] sm:$0xff]  ;;  %v13636_v62 = vld [vmem:[%s14545_s21 + $0x708] sm:$0xff] }
  0xed   : > { %8356 = vmatpush.bf16.msra.mxu2 %v13625_v45  ;;  %v13643_v5 = vld [vmem:[%s14545_s21 + $0x740] sm:$0xff]  ;;  %v13674_v7 = vld [vmem:[%s14545_s21 + $0x838] sm:$0xff] }
  0xee   : > { %8369 = vmatpush.bf16.msra.mxu3 %v13633_v46  ;;  %v8118_v6 = vadd.f32 %v8117_v4, %v8105_v0  ;;  %v13652_v0 = vld [vmem:[%s14545_s21 + $0x788] sm:$0xff] }
  0xef   : > { %8331 = vmatpush.bf16.msra.mxu0 %v13608_v47  ;;  %v13663_v47 = vld [vmem:[%s14545_s21 + $0x7e0] sm:$0xff] }
  0xf0   : > { %8344 = vmatpush.bf16.msra.mxu1 %v13616_v48  ;;  %v13638_v48 = vld [vmem:[%s14545_s21 + $0x718] sm:$0xff] }
  0xf1   : > { %8357 = vmatpush.bf16.msra.mxu2 %v13624_v49  ;;  %v13646_v49 = vld [vmem:[%s14545_s21 + $0x758] sm:$0xff] }
  0xf2   : > { %8370 = vmatpush.bf16.msra.mxu3 %v13632_v50  ;;  %v13654_v50 = vld [vmem:[%s14545_s21 + $0x798] sm:$0xff] }
  0xf3   : > { %8332 = vmatpush.bf16.msra.mxu0 %v13607_v51  ;;  %v8106_v12 = vpop.f32.mrf.mxu2 }
  0xf4   : > { %8345 = vmatpush.bf16.msra.mxu1 %v13615_v52  ;;  %v8119_v17 = vpop.f32.mrf.mxu3  ;;  %v13673_v12 = vld [vmem:[%s14545_s21 + $0x830] sm:$0xff] }
  0xf5   : > { %8358 = vmatpush.bf16.msra.mxu2 %v13623_v53  ;;  %v13662_v53 = vld [vmem:[%s14545_s21 + $0x7d8] sm:$0xff]  ;;  %v13680_v17 = vld [vmem:[%s14545_s21 + $0x868] sm:$0xff] }
  0xf6   : > { %8371 = vmatpush.bf16.msra.mxu3 %v13631_v57 }
  0xf7   : > { %8333 = vmatpush.bf16.msra.mxu0 %v13606_v58  ;;  %v13645_v58 = vld [vmem:[%s14545_s21 + $0x750] sm:$0xff] }
  0xf8   : > { %8346 = vmatpush.bf16.msra.mxu1 %v13614_v60 }
  0xf9   : > { %8359 = vmatpush.bf16.msra.mxu2 %v13622_v61  ;;  %v13661_v61 = vld [vmem:[%s14545_s21 + $0x7d0] sm:$0xff] }
  0xfa   : > { %8372 = vmatpush.bf16.msra.mxu3 %v13630_v63  ;;  %v13644_v63 = vld [vmem:[%s14545_s21 + $0x748] sm:$0xff] }
  0xfb   : > { %8334 = vmatpush.bf16.msra.mxu0 %v13605_v1 }
  0xfc   : > { %8347 = vmatpush.bf16.msra.mxu1 %v13613_v2  ;;  %v13660_v2 = vld [vmem:[%s14545_s21 + $0x7c8] sm:$0xff] }
  0xfd   : > { %8360 = vmatpush.bf16.msra.mxu2 %v13621_v3  ;;  %v13635_v3 = vld [vmem:[%s14545_s21 + $0x700] sm:$0xff] }
  0xfe   : > { %8373 = vmatpush.bf16.msra.mxu3 %v13629_v8  ;;  %v13682_v8 = vld [vmem:[%s14545_s21 + $0x878] sm:$0xff] }
  0xff   : > { %8335 = vmatpush.bf16.msra.mxu0 %v13604_v9  ;;  %v13690_v9 = vld [vmem:[%s14545_s21 + $0x8b8] sm:$0xff] }
 0x100   : > { %8348 = vmatpush.bf16.msra.mxu1 %v13612_v10  ;;  %v13659_v10 = vld [vmem:[%s14545_s21 + $0x7c0] sm:$0xff] }
 0x101   : > { %8361 = vmatpush.bf16.msra.mxu2 %v13620_v11  ;;  %v13698_v11 = vld [vmem:[%s14545_s21 + $0x8f8] sm:$0xff] }
 0x102   : > { %8374 = vmatpush.bf16.msra.mxu3 %v13628_v13  ;;  %v13681_v13 = vld [vmem:[%s14545_s21 + $0x870] sm:$0xff] }
 0x103   : > { %8336 = vmatpush.bf16.msra.mxu0 %v13603_v14  ;;  %v8130_v40 = vpop.f32.mrf.mxu0  ;;  %v13689_v14 = vld [vmem:[%s14545_s21 + $0x8b0] sm:$0xff] }
 0x104   : > { %8349 = vmatpush.bf16.msra.mxu1 %v13611_v15  ;;  %v8131_v41 = vadd.f32 %v8130_v40, %v8118_v6  ;;  %v8143_v45 = vpop.f32.mrf.mxu1  ;;  %v13651_v6 = vld [vmem:[%s14545_s21 + $0x780] sm:$0xff]  ;;  %v13697_v15 = vld [vmem:[%s14545_s21 + $0x8f0] sm:$0xff] }
 0x105   : > { %8362 = vmatpush.bf16.msra.mxu2 %v13619_v16  ;;  %v13672_v16 = vld [vmem:[%s14545_s21 + $0x828] sm:$0xff]  ;;  %v13685_v40 = vld [vmem:[%s14545_s21 + $0x890] sm:$0xff] }
 0x106   : > { %8375 = vmatpush.bf16.msra.mxu3 %v13627_v22  ;;  %8337 = vmatmul.bf16.vlgmr.msra.gmra.mxu0 %v2119_v23  ;;  %v8144_v46 = vadd.f32 %v8143_v45, %v8131_v41  ;;  %v13671_v22 = vld [vmem:[%s14545_s21 + $0x820] sm:$0xff]  ;;  %v13693_v41 = vld [vmem:[%s14545_s21 + $0x8d0] sm:$0xff] }
 0x107   : > { %8381 = vmatpush.bf16.msrb.mxu0 %v13642_v18  ;;  %8350 = vmatmul.bf16.vlgmr.msra.gmra.mxu1 %v2120_v26  ;;  %v13688_v18 = vld [vmem:[%s14545_s21 + $0x8a8] sm:$0xff] }
 0x108   : > { %8394 = vmatpush.bf16.msrb.mxu1 %v13650_v19  ;;  %8363 = vmatmul.bf16.vlgmr.msra.gmra.mxu2 %v2121_v24  ;;  %v13696_v19 = vld [vmem:[%s14545_s21 + $0x8e8] sm:$0xff]  ;;  %v13679_v24 = vld [vmem:[%s14545_s21 + $0x860] sm:$0xff] }
 0x109   : > { %8407 = vmatpush.bf16.msrb.mxu2 %v13658_v21  ;;  %8376 = vmatmul.bf16.vlgmr.msra.gmra.mxu3 %v2122_v27  ;;  %v13695_v27 = vld [vmem:[%s14545_s21 + $0x8e0] sm:$0xff] }
 0x10a   : > { %8420 = vmatpush.bf16.msrb.mxu3 %v13666_v25  ;;  %v13687_v25 = vld [vmem:[%s14545_s21 + $0x8a0] sm:$0xff] }
 0x10b   : > { %8382 = vmatpush.bf16.msrb.mxu0 %v13641_v28  ;;  %v8156_v51 = vpop.f32.mrf.mxu2  ;;  %v8132_v54 = vpop.f32.mrf.mxu0  ;;  %v13670_v28 = vld [vmem:[%s14545_s21 + $0x818] sm:$0xff] }
 0x10c   : > { %8395 = vmatpush.bf16.msrb.mxu1 %v13649_v29  ;;  %v8157_v52 = vadd.f32 %v8156_v51, %v8144_v46  ;;  %v8169_v55 = vpop.f32.mrf.mxu3  ;;  %v8145_v60 = vpop.f32.mrf.mxu1  ;;  %v13678_v29 = vld [vmem:[%s14545_s21 + $0x858] sm:$0xff]  ;;  %v13692_v46 = vld [vmem:[%s14545_s21 + $0x8c8] sm:$0xff] }
 0x10d   : > { %8408 = vmatpush.bf16.msrb.mxu2 %v13657_v30  ;;  %v13686_v30 = vld [vmem:[%s14545_s21 + $0x898] sm:$0xff] }
 0x10e   : > { %8421 = vmatpush.bf16.msrb.mxu3 %v13665_v35  ;;  %v8170_v57 = vadd.f32 %v8169_v55, %v8157_v52  ;;  %v13706_v51 = vld [vmem:[%s14545_s21 + $0x938] sm:$0xff]  ;;  %v13691_v55 = vld [vmem:[%s14545_s21 + $0x8c0] sm:$0xff] }
 0x10f   : > { %8383 = vmatpush.bf16.msrb.mxu0 %v13640_v36  ;;  %v13669_v36 = vld [vmem:[%s14545_s21 + $0x810] sm:$0xff]  ;;  %v13714_v52 = vld [vmem:[%s14545_s21 + $0x978] sm:$0xff] }
 0x110   : > { %8396 = vmatpush.bf16.msrb.mxu1 %v13648_v37  ;;  %v13722_v54 = vld [vmem:[%s14545_s21 + $0x9b8] sm:$0xff] }
 0x111   : > { %8409 = vmatpush.bf16.msrb.mxu2 %v13656_v38  ;;  %v2132_v60 = vld [vmem:[#allocation1 + $0x1b] sm:$0xff] }
 0x112   : > { %8422 = vmatpush.bf16.msrb.mxu3 %v13664_v39  ;;  %v13677_v39 = vld [vmem:[%s14545_s21 + $0x850] sm:$0xff] }
 0x113   : > { %8384 = vmatpush.bf16.msrb.mxu0 %v13639_v42  ;;  %v8158_v1 = vpop.f32.mrf.mxu2  ;;  %v13668_v42 = vld [vmem:[%s14545_s21 + $0x808] sm:$0xff] }
 0x114   : > { %8397 = vmatpush.bf16.msrb.mxu1 %v13647_v43  ;;  %v8171_v4 = vpop.f32.mrf.mxu3  ;;  %v13676_v43 = vld [vmem:[%s14545_s21 + $0x848] sm:$0xff] }
 0x115   : > { %8410 = vmatpush.bf16.msrb.mxu2 %v13655_v44  ;;  %v13684_v44 = vld [vmem:[%s14545_s21 + $0x888] sm:$0xff]  ;;  %v13729_v4 = vld [vmem:[%s14545_s21 + $0x9f0] sm:$0xff] }
 0x116   : > { %8423 = vmatpush.bf16.msrb.mxu3 %v13663_v47  ;;  %v14886_v1 = vld [vmem:[#allocation1 + $0x36] sm:$0xff] }
 0x117   : > { %8385 = vmatpush.bf16.msrb.mxu0 %v13638_v48  ;;  %v13667_v48 = vld [vmem:[%s14545_s21 + $0x800] sm:$0xff] }
 0x118   : > { %8398 = vmatpush.bf16.msrb.mxu1 %v13646_v49  ;;  %v13675_v49 = vld [vmem:[%s14545_s21 + $0x840] sm:$0xff] }
 0x119   : > { %8411 = vmatpush.bf16.msrb.mxu2 %v13654_v50  ;;  %v13683_v50 = vld [vmem:[%s14545_s21 + $0x880] sm:$0xff] }
 0x11a   : > { %8424 = vmatpush.bf16.msrb.mxu3 %v13662_v53  ;;  %v189_v53 = vld [vmem:[%s14573_s23 + $0x28] sm:$0xff] }
 0x11b   : > { %8386 = vmatpush.bf16.msrb.mxu0 %v13637_v56  ;;  %v2129_v56 = vld [vmem:[#allocation1] sm:$0xff] }
 0x11c   : > { %8399 = vmatpush.bf16.msrb.mxu1 %v13645_v58  ;;  %v13730_v58 = vld [vmem:[%s14545_s21 + $0x9f8] sm:$0xff] }
 0x11d   : > { %8412 = vmatpush.bf16.msrb.mxu2 %v13653_v59  ;;  %v2130_v59 = vld [vmem:[#allocation1 + $0x9] sm:$0xff] }
 0x11e   : > { %8425 = vmatpush.bf16.msrb.mxu3 %v13661_v61  ;;  %v13705_v61 = vld [vmem:[%s14545_s21 + $0x930] sm:$0xff] }
 0x11f   : > { %8387 = vmatpush.bf16.msrb.mxu0 %v13636_v62  ;;  %v13713_v62 = vld [vmem:[%s14545_s21 + $0x970] sm:$0xff] }
 0x120   : > { %8400 = vmatpush.bf16.msrb.mxu1 %v13644_v63  ;;  %v13721_v63 = vld [vmem:[%s14545_s21 + $0x9b0] sm:$0xff] }
 0x121   : > { %8413 = vmatpush.bf16.msrb.mxu2 %v13652_v0  ;;  %v14884_v0 = vld [vmem:[#allocation1 + $0x24] sm:$0xff] }
 0x122   : > { %8426 = vmatpush.bf16.msrb.mxu3 %v13660_v2  ;;  %v14888_v2 = vld [vmem:[#allocation1 + $0x2d] sm:$0xff] }
 0x123   : > { %8388 = vmatpush.bf16.msrb.mxu0 %v13635_v3  ;;  %v8182_v20 = vpop.f32.mrf.mxu0  ;;  %v14890_v3 = vld [vmem:[#allocation1 + $0x3f] sm:$0xff] }
 0x124   : > { %8401 = vmatpush.bf16.msrb.mxu1 %v13643_v5  ;;  %v8183_v21 = vadd.f32 %v8182_v20, %v8170_v57  ;;  %v8195_v23 = vpop.f32.mrf.mxu1  ;;  %v2131_v57 = vld [vmem:[#allocation1 + $0x12] sm:$0xff] }
 0x125   : > { %8414 = vmatpush.bf16.msrb.mxu2 %v13651_v6  ;;  %2138 = vst [vmem:[#allocation1] ss:$9 sm:$0xff] %v189_v53  ;;  %v13704_v5 = vld [vmem:[%s14545_s21 + $0x928] sm:$0xff] }
 0x126   : > { %8427 = vmatpush.bf16.msrb.mxu3 %v13659_v10  ;;  %8389 = vmatmul.bf16.vlgmr.msrb.gmra.mxu0 %v14805_v31  ;;  %v8196_v26 = vadd.f32 %v8195_v23, %v8183_v21  ;;  %v13712_v6 = vld [vmem:[%s14545_s21 + $0x968] sm:$0xff] }
 0x127   : > { %8433 = vmatpush.bf16.msra.mxu0 %v13674_v7  ;;  %8402 = vmatmul.bf16.vlgmr.msrb.gmra.mxu1 %v14809_v33  ;;  %v13694_v33 = vld [vmem:[%s14545_s21 + $0x8d8] sm:$0xff]  ;;  %v13720_v7 = vld [vmem:[%s14545_s21 + $0x9a8] sm:$0xff] }
 0x128   : > { %8446 = vmatpush.bf16.msra.mxu1 %v13682_v8  ;;  %8415 = vmatmul.bf16.vlgmr.msrb.gmra.mxu2 %v14807_v32  ;;  %v13728_v8 = vld [vmem:[%s14545_s21 + $0x9e8] sm:$0xff] }
 0x129   : > { %8459 = vmatpush.bf16.msra.mxu2 %v13690_v9  ;;  %8428 = vmatmul.bf16.vlgmr.msrb.gmra.mxu3 %v14811_v34 }
 0x12a   : > { %8472 = vmatpush.bf16.msra.mxu3 %v13698_v11  ;;  %v13703_v11 = vld [vmem:[%s14545_s21 + $0x920] sm:$0xff] }
 0x12b   : > { %8434 = vmatpush.bf16.msra.mxu0 %v13673_v12  ;;  %v8208_v31 = vpop.f32.mrf.mxu2  ;;  %v8184_v35 = vpop.f32.mrf.mxu0 }
 0x12c   : > { %8447 = vmatpush.bf16.msra.mxu1 %v13681_v13  ;;  %v8209_v32 = vadd.f32 %v8208_v31, %v8196_v26  ;;  %v8221_v34 = vpop.f32.mrf.mxu3  ;;  %v8197_v37 = vpop.f32.mrf.mxu1  ;;  %v13711_v13 = vld [vmem:[%s14545_s21 + $0x960] sm:$0xff]  ;;  %v13701_v26 = vld [vmem:[%s14545_s21 + $0x910] sm:$0xff]  ;;  %v13700_v31 = vld [vmem:[%s14545_s21 + $0x908] sm:$0xff] }
 0x12d   : > { %8460 = vmatpush.bf16.msra.mxu2 %v13689_v14  ;;  %v13719_v14 = vld [vmem:[%s14545_s21 + $0x9a0] sm:$0xff]  ;;  %v13724_v35 = vld [vmem:[%s14545_s21 + $0x9c8] sm:$0xff] }
 0x12e   : > { %8473 = vmatpush.bf16.msra.mxu3 %v13697_v15  ;;  %v14863_v38 = vadd.f32 %v8221_v34, %v8209_v32  ;;  %v13708_v32 = vld [vmem:[%s14545_s21 + $0x948] sm:$0xff]  ;;  %v13699_v37 = vld [vmem:[%s14545_s21 + $0x900] sm:$0xff] }
 0x12f   : > { %8435 = vmatpush.bf16.msra.mxu0 %v13672_v16  ;;  %v13727_v16 = vld [vmem:[%s14545_s21 + $0x9e0] sm:$0xff] }
 0x130   : > { %8448 = vmatpush.bf16.msra.mxu1 %v13680_v17  ;;  %v13702_v17 = vld [vmem:[%s14545_s21 + $0x918] sm:$0xff] }
 0x131   : > { %8461 = vmatpush.bf16.msra.mxu2 %v13688_v18  ;;  %v13710_v18 = vld [vmem:[%s14545_s21 + $0x958] sm:$0xff] }
 0x132   : > { %8474 = vmatpush.bf16.msra.mxu3 %v13696_v19  ;;  %v13718_v19 = vld [vmem:[%s14545_s21 + $0x998] sm:$0xff] }
 0x133   : > { %8436 = vmatpush.bf16.msra.mxu0 %v13671_v22  ;;  %v8210_v45 = vpop.f32.mrf.mxu2  ;;  %v13726_v22 = vld [vmem:[%s14545_s21 + $0x9d8] sm:$0xff] }
 0x134   : > { %8449 = vmatpush.bf16.msra.mxu1 %v13679_v24  ;;  %v8223_v47 = vpop.f32.mrf.mxu3  ;;  %v13737_v45 = vld [vmem:[%s14545_s21 + $0xa30] sm:$0xff] }
 0x135   : > { %8462 = vmatpush.bf16.msra.mxu2 %v13687_v25  ;;  %v13753_v47 = vld [vmem:[%s14545_s21 + $0xab0] sm:$0xff] }
 0x136   : > { %8475 = vmatpush.bf16.msra.mxu3 %v13695_v27 }
 0x137   : > { %8437 = vmatpush.bf16.msra.mxu0 %v13670_v28  ;;  %v13709_v28 = vld [vmem:[%s14545_s21 + $0x950] sm:$0xff] }
 0x138   : > { %8450 = vmatpush.bf16.msra.mxu1 %v13678_v29  ;;  %v13717_v29 = vld [vmem:[%s14545_s21 + $0x990] sm:$0xff] }
 0x139   : > { %8463 = vmatpush.bf16.msra.mxu2 %v13686_v30  ;;  %v13725_v30 = vld [vmem:[%s14545_s21 + $0x9d0] sm:$0xff] }
 0x13a   : > { %8476 = vmatpush.bf16.msra.mxu3 %v13694_v33  ;;  %v13716_v33 = vld [vmem:[%s14545_s21 + $0x988] sm:$0xff] }
 0x13b   : > { %8438 = vmatpush.bf16.msra.mxu0 %v13669_v36 }
 0x13c   : > { %8451 = vmatpush.bf16.msra.mxu1 %v13677_v39  ;;  %v13715_v39 = vld [vmem:[%s14545_s21 + $0x980] sm:$0xff] }
 0x13d   : > { %8464 = vmatpush.bf16.msra.mxu2 %v13685_v40  ;;  %v13738_v40 = vld [vmem:[%s14545_s21 + $0xa38] sm:$0xff] }
 0x13e   : > { %8477 = vmatpush.bf16.msra.mxu3 %v13693_v41  ;;  %v13746_v41 = vld [vmem:[%s14545_s21 + $0xa78] sm:$0xff] }
 0x13f   : > { %8439 = vmatpush.bf16.msra.mxu0 %v13668_v42  ;;  %v13754_v42 = vld [vmem:[%s14545_s21 + $0xab8] sm:$0xff] }
 0x140   : > { %8452 = vmatpush.bf16.msra.mxu1 %v13676_v43  ;;  %v13723_v43 = vld [vmem:[%s14545_s21 + $0x9c0] sm:$0xff] }
 0x141   : > { %8465 = vmatpush.bf16.msra.mxu2 %v13684_v44  ;;  %v13762_v44 = vld [vmem:[%s14545_s21 + $0xaf8] sm:$0xff] }
 0x142   : > { %8478 = vmatpush.bf16.msra.mxu3 %v13692_v46  ;;  %v13745_v46 = vld [vmem:[%s14545_s21 + $0xa70] sm:$0xff] }
 0x143   : > { %8440 = vmatpush.bf16.msra.mxu0 %v13667_v48  ;;  %v8234_v9 = vpop.f32.mrf.mxu0  ;;  %v13761_v48 = vld [vmem:[%s14545_s21 + $0xaf0] sm:$0xff] }
 0x144   : > { %8453 = vmatpush.bf16.msra.mxu1 %v13675_v49  ;;  %v8235_v10 = vadd.f32 %v8234_v9, %v14863_v38  ;;  %v8247_v12 = vpop.f32.mrf.mxu1  ;;  %v13707_v38 = vld [vmem:[%s14545_s21 + $0x940] sm:$0xff]  ;;  %v13736_v49 = vld [vmem:[%s14545_s21 + $0xa28] sm:$0xff]  ;;  %v13749_v9 = vld [vmem:[%s14545_s21 + $0xa90] sm:$0xff] }
 0x145   : > { %8466 = vmatpush.bf16.msra.mxu2 %v13683_v50  ;;  %v13744_v50 = vld [vmem:[%s14545_s21 + $0xa68] sm:$0xff] }
 0x146   : > { %8479 = vmatpush.bf16.msra.mxu3 %v13691_v55  ;;  %8441 = vmatmul.bf16.vlgmr.msra.gmra.mxu0 %v2129_v56  ;;  %v8248_v15 = vadd.f32 %v8247_v12, %v8235_v10  ;;  %v13735_v55 = vld [vmem:[%s14545_s21 + $0xa20] sm:$0xff]  ;;  %v13757_v10 = vld [vmem:[%s14545_s21 + $0xad0] sm:$0xff]  ;;  %v13740_v12 = vld [vmem:[%s14545_s21 + $0xa48] sm:$0xff] }
 0x147   : > { %8485 = vmatpush.bf16.msrb.mxu0 %v13706_v51  ;;  %8454 = vmatmul.bf16.vlgmr.msra.gmra.mxu1 %v2130_v59  ;;  %v13752_v51 = vld [vmem:[%s14545_s21 + $0xaa8] sm:$0xff] }
 0x148   : > { %8498 = vmatpush.bf16.msrb.mxu1 %v13714_v52  ;;  %8467 = vmatmul.bf16.vlgmr.msra.gmra.mxu2 %v2131_v57  ;;  %v13760_v52 = vld [vmem:[%s14545_s21 + $0xae8] sm:$0xff]  ;;  %v13743_v57 = vld [vmem:[%s14545_s21 + $0xa60] sm:$0xff] }
 0x149   : > { %8511 = vmatpush.bf16.msrb.mxu2 %v13722_v54  ;;  %8480 = vmatmul.bf16.vlgmr.msra.gmra.mxu3 %v2132_v60  ;;  %v13759_v60 = vld [vmem:[%s14545_s21 + $0xae0] sm:$0xff] }
 0x14a   : > { %8524 = vmatpush.bf16.msrb.mxu3 %v13730_v58  ;;  %v13751_v58 = vld [vmem:[%s14545_s21 + $0xaa0] sm:$0xff] }
 0x14b   : > { %8486 = vmatpush.bf16.msrb.mxu0 %v13705_v61  ;;  %v8260_v20 = vpop.f32.mrf.mxu2  ;;  %v8236_v24 = vpop.f32.mrf.mxu0  ;;  %v13734_v61 = vld [vmem:[%s14545_s21 + $0xa18] sm:$0xff] }
 0x14c   : > { %8499 = vmatpush.bf16.msrb.mxu1 %v13713_v62  ;;  %v8261_v21 = vadd.f32 %v8260_v20, %v8248_v15  ;;  %v8273_v23 = vpop.f32.mrf.mxu3  ;;  %v8249_v27 = vpop.f32.mrf.mxu1  ;;  %v13742_v62 = vld [vmem:[%s14545_s21 + $0xa58] sm:$0xff]  ;;  %v13756_v15 = vld [vmem:[%s14545_s21 + $0xac8] sm:$0xff]  ;;  %v13755_v24 = vld [vmem:[%s14545_s21 + $0xac0] sm:$0xff] }
 0x14d   : > { %8512 = vmatpush.bf16.msrb.mxu2 %v13721_v63  ;;  %v13750_v63 = vld [vmem:[%s14545_s21 + $0xa98] sm:$0xff] }
 0x14e   : > { %8525 = vmatpush.bf16.msrb.mxu3 %v13729_v4  ;;  %v8274_v25 = vadd.f32 %v8273_v23, %v8261_v21  ;;  %v13770_v20 = vld [vmem:[%s14545_s21 + $0xb38] sm:$0xff] }
 0x14f   : > { %8487 = vmatpush.bf16.msrb.mxu0 %v13704_v5  ;;  %v13778_v21 = vld [vmem:[%s14545_s21 + $0xb78] sm:$0xff] }
 0x150   : > { %8500 = vmatpush.bf16.msrb.mxu1 %v13712_v6  ;;  %v13733_v6 = vld [vmem:[%s14545_s21 + $0xa10] sm:$0xff]  ;;  %v13786_v23 = vld [vmem:[%s14545_s21 + $0xbb8] sm:$0xff] }
 0x151   : > { %8513 = vmatpush.bf16.msrb.mxu2 %v13720_v7  ;;  %v13794_v27 = vld [vmem:[%s14545_s21 + $0xbf8] sm:$0xff] }
 0x152   : > { %8526 = vmatpush.bf16.msrb.mxu3 %v13728_v8  ;;  %v13741_v8 = vld [vmem:[%s14545_s21 + $0xa50] sm:$0xff] }
 0x153   : > { %8488 = vmatpush.bf16.msrb.mxu0 %v13703_v11  ;;  %v8262_v34 = vpop.f32.mrf.mxu2  ;;  %v13732_v11 = vld [vmem:[%s14545_s21 + $0xa08] sm:$0xff] }
 0x154   : > { %8501 = vmatpush.bf16.msrb.mxu1 %v13711_v13  ;;  %v8275_v36 = vpop.f32.mrf.mxu3  ;;  %v13748_v13 = vld [vmem:[%s14545_s21 + $0xa88] sm:$0xff] }
 0x155   : > { %8514 = vmatpush.bf16.msrb.mxu2 %v13719_v14  ;;  %v14966_v34 = vld [vmem:[#allocation1 + $0x36] sm:$0xff]  ;;  %v14970_v36 = vld [vmem:[#allocation1 + $0x3f] sm:$0xff] }
 0x156   : > { %8527 = vmatpush.bf16.msrb.mxu3 %v13727_v16 }
 0x157   : > { %8489 = vmatpush.bf16.msrb.mxu0 %v13702_v17  ;;  %v13731_v17 = vld [vmem:[%s14545_s21 + $0xa00] sm:$0xff] }
 0x158   : > { %8502 = vmatpush.bf16.msrb.mxu1 %v13710_v18  ;;  %v13739_v18 = vld [vmem:[%s14545_s21 + $0xa40] sm:$0xff] }
 0x159   : > { %8515 = vmatpush.bf16.msrb.mxu2 %v13718_v19  ;;  %v13747_v19 = vld [vmem:[%s14545_s21 + $0xa80] sm:$0xff] }
 0x15a   : > { %8528 = vmatpush.bf16.msrb.mxu3 %v13726_v22  ;;  %v190_v22 = vld [vmem:[%s14573_s23 + $0x30] sm:$0xff] }
 0x15b   : > { %8490 = vmatpush.bf16.msrb.mxu0 %v13701_v26  ;;  %v2141_v26 = vld [vmem:[#allocation1 + $0x12] sm:$0xff] }
 0x15c   : > { %8503 = vmatpush.bf16.msrb.mxu1 %v13709_v28  ;;  %v2140_v28 = vld [vmem:[#allocation1 + $0x9] sm:$0xff] }
 0x15d   : > { %8516 = vmatpush.bf16.msrb.mxu2 %v13717_v29  ;;  %v2142_v29 = vld [vmem:[#allocation1 + $0x1b] sm:$0xff] }
 0x15e   : > { %8529 = vmatpush.bf16.msrb.mxu3 %v13725_v30  ;;  %v13769_v30 = vld [vmem:[%s14545_s21 + $0xb30] sm:$0xff] }
 0x15f   : > { %8491 = vmatpush.bf16.msrb.mxu0 %v13700_v31  ;;  %v13777_v31 = vld [vmem:[%s14545_s21 + $0xb70] sm:$0xff] }
 0x160   : > { %8504 = vmatpush.bf16.msrb.mxu1 %v13708_v32  ;;  %v13785_v32 = vld [vmem:[%s14545_s21 + $0xbb0] sm:$0xff] }
 0x161   : > { %8517 = vmatpush.bf16.msrb.mxu2 %v13716_v33  ;;  %v14964_v33 = vld [vmem:[#allocation1 + $0x24] sm:$0xff] }
 0x162   : > { %8530 = vmatpush.bf16.msrb.mxu3 %v13724_v35  ;;  %v14968_v35 = vld [vmem:[#allocation1 + $0x2d] sm:$0xff] }
 0x163   : > { %8492 = vmatpush.bf16.msrb.mxu0 %v13699_v37  ;;  %v8286_v53 = vpop.f32.mrf.mxu0  ;;  %v13793_v37 = vld [vmem:[%s14545_s21 + $0xbf0] sm:$0xff] }
 0x164   : > { %8505 = vmatpush.bf16.msrb.mxu1 %v13707_v38  ;;  %v8287_v54 = vadd.f32 %v8286_v53, %v8274_v25  ;;  %v8299_v56 = vpop.f32.mrf.mxu1  ;;  %v2139_v25 = vld [vmem:[#allocation1] sm:$0xff]  ;;  %v13768_v38 = vld [vmem:[%s14545_s21 + $0xb28] sm:$0xff] }
 0x165   : > { %8518 = vmatpush.bf16.msrb.mxu2 %v13715_v39  ;;  %2148 = vst [vmem:[#allocation1] ss:$9 sm:$0xff] %v190_v22  ;;  %v13776_v39 = vld [vmem:[%s14545_s21 + $0xb68] sm:$0xff] }
 0x166   : > { %8531 = vmatpush.bf16.msrb.mxu3 %v13723_v43  ;;  %8493 = vmatmul.bf16.vlgmr.msrb.gmra.mxu0 %v14884_v0  ;;  %v8300_v59 = vadd.f32 %v8299_v56, %v8287_v54 }
 0x167   : > { %8537 = vmatpush.bf16.msra.mxu0 %v13738_v40  ;;  %8506 = vmatmul.bf16.vlgmr.msrb.gmra.mxu1 %v14888_v2  ;;  %v13758_v2 = vld [vmem:[%s14545_s21 + $0xad8] sm:$0xff]  ;;  %v13784_v40 = vld [vmem:[%s14545_s21 + $0xba8] sm:$0xff] }
 0x168   : > { %8550 = vmatpush.bf16.msra.mxu1 %v13746_v41  ;;  %8519 = vmatmul.bf16.vlgmr.msrb.gmra.mxu2 %v14886_v1  ;;  %v13792_v41 = vld [vmem:[%s14545_s21 + $0xbe8] sm:$0xff] }
 0x169   : > { %8563 = vmatpush.bf16.msra.mxu2 %v13754_v42  ;;  %8532 = vmatmul.bf16.vlgmr.msrb.gmra.mxu3 %v14890_v3 }
 0x16a   : > { %8576 = vmatpush.bf16.msra.mxu3 %v13762_v44  ;;  %v13767_v44 = vld [vmem:[%s14545_s21 + $0xb20] sm:$0xff] }
 0x16b   : > { %8538 = vmatpush.bf16.msra.mxu0 %v13737_v45  ;;  %v8312_v0 = vpop.f32.mrf.mxu2  ;;  %v8288_v4 = vpop.f32.mrf.mxu0 }
 0x16c   : > { %8551 = vmatpush.bf16.msra.mxu1 %v13745_v46  ;;  %v8313_v1 = vadd.f32 %v8312_v0, %v8300_v59  ;;  %v8325_v3 = vpop.f32.mrf.mxu3  ;;  %v8301_v7 = vpop.f32.mrf.mxu1  ;;  %v13775_v46 = vld [vmem:[%s14545_s21 + $0xb60] sm:$0xff]  ;;  %v13765_v59 = vld [vmem:[%s14545_s21 + $0xb10] sm:$0xff]  ;;  %v13764_v0 = vld [vmem:[%s14545_s21 + $0xb08] sm:$0xff] }
 0x16d   : > { %8564 = vmatpush.bf16.msra.mxu2 %v13753_v47  ;;  %v13783_v47 = vld [vmem:[%s14545_s21 + $0xba0] sm:$0xff]  ;;  %v13788_v4 = vld [vmem:[%s14545_s21 + $0xbc8] sm:$0xff] }
 0x16e   : > { %8577 = vmatpush.bf16.msra.mxu3 %v13761_v48  ;;  %v14942_v5 = vadd.f32 %v8325_v3, %v8313_v1  ;;  %v13772_v1 = vld [vmem:[%s14545_s21 + $0xb48] sm:$0xff]  ;;  %v13771_v7 = vld [vmem:[%s14545_s21 + $0xb40] sm:$0xff] }
 0x16f   : > { %8539 = vmatpush.bf16.msra.mxu0 %v13736_v49  ;;  %v13791_v49 = vld [vmem:[%s14545_s21 + $0xbe0] sm:$0xff] }
 0x170   : > { %8552 = vmatpush.bf16.msra.mxu1 %v13744_v50  ;;  %v13766_v50 = vld [vmem:[%s14545_s21 + $0xb18] sm:$0xff] }
 0x171   : > { %8565 = vmatpush.bf16.msra.mxu2 %v13752_v51  ;;  %v13774_v51 = vld [vmem:[%s14545_s21 + $0xb58] sm:$0xff] }
 0x172   : > { %8578 = vmatpush.bf16.msra.mxu3 %v13760_v52  ;;  %v13782_v52 = vld [vmem:[%s14545_s21 + $0xb98] sm:$0xff] }
 0x173   : > { %8540 = vmatpush.bf16.msra.mxu0 %v13735_v55  ;;  %v8314_v14 = vpop.f32.mrf.mxu2  ;;  %v13790_v55 = vld [vmem:[%s14545_s21 + $0xbd8] sm:$0xff] }
 0x174   : > { %8553 = vmatpush.bf16.msra.mxu1 %v13743_v57  ;;  %v8327_v16 = vpop.f32.mrf.mxu3  ;;  %v13801_v14 = vld [vmem:[%s14545_s21 + $0xc30] sm:$0xff] }
 0x175   : > { %8566 = vmatpush.bf16.msra.mxu2 %v13751_v58  ;;  %v13817_v16 = vld [vmem:[%s14545_s21 + $0xcb0] sm:$0xff] }
 0x176   : > { %8579 = vmatpush.bf16.msra.mxu3 %v13759_v60 }
 0x177   : > { %8541 = vmatpush.bf16.msra.mxu0 %v13734_v61  ;;  %v13773_v61 = vld [vmem:[%s14545_s21 + $0xb50] sm:$0xff] }
 0x178   : > { %8554 = vmatpush.bf16.msra.mxu1 %v13742_v62  ;;  %v13781_v62 = vld [vmem:[%s14545_s21 + $0xb90] sm:$0xff] }
 0x179   : > { %8567 = vmatpush.bf16.msra.mxu2 %v13750_v63  ;;  %v13789_v63 = vld [vmem:[%s14545_s21 + $0xbd0] sm:$0xff] }
 0x17a   : > { %8580 = vmatpush.bf16.msra.mxu3 %v13758_v2  ;;  %v13780_v2 = vld [vmem:[%s14545_s21 + $0xb88] sm:$0xff] }
 0x17b   : > { %8542 = vmatpush.bf16.msra.mxu0 %v13733_v6  ;;  %v13763_v6 = vld [vmem:[%s14545_s21 + $0xb00] sm:$0xff] }
 0x17c   : > { %8555 = vmatpush.bf16.msra.mxu1 %v13741_v8  ;;  %v13779_v8 = vld [vmem:[%s14545_s21 + $0xb80] sm:$0xff] }
 0x17d   : > { %8568 = vmatpush.bf16.msra.mxu2 %v13749_v9  ;;  %v13802_v9 = vld [vmem:[%s14545_s21 + $0xc38] sm:$0xff] }
 0x17e   : > { %8581 = vmatpush.bf16.msra.mxu3 %v13757_v10  ;;  %v13810_v10 = vld [vmem:[%s14545_s21 + $0xc78] sm:$0xff] }
 0x17f   : > { %8543 = vmatpush.bf16.msra.mxu0 %v13732_v11  ;;  %v13818_v11 = vld [vmem:[%s14545_s21 + $0xcb8] sm:$0xff] }
 0x180   : > { %8556 = vmatpush.bf16.msra.mxu1 %v13740_v12  ;;  %v13787_v12 = vld [vmem:[%s14545_s21 + $0xbc0] sm:$0xff] }
 0x181   : > { %8569 = vmatpush.bf16.msra.mxu2 %v13748_v13  ;;  %v13826_v13 = vld [vmem:[%s14545_s21 + $0xcf8] sm:$0xff] }
 0x182   : > { %8582 = vmatpush.bf16.msra.mxu3 %v13756_v15  ;;  %v13809_v15 = vld [vmem:[%s14545_s21 + $0xc70] sm:$0xff] }
 0x183   : > { %8544 = vmatpush.bf16.msra.mxu0 %v13731_v17  ;;  %v8338_v42 = vpop.f32.mrf.mxu0  ;;  %v13825_v17 = vld [vmem:[%s14545_s21 + $0xcf0] sm:$0xff] }
 0x184   : > { %8557 = vmatpush.bf16.msra.mxu1 %v13739_v18  ;;  %v8339_v43 = vadd.f32 %v8338_v42, %v14942_v5  ;;  %v8351_v45 = vpop.f32.mrf.mxu1  ;;  %v13800_v18 = vld [vmem:[%s14545_s21 + $0xc28] sm:$0xff]  ;;  %v13813_v42 = vld [vmem:[%s14545_s21 + $0xc90] sm:$0xff] }
 0x185   : > { %8570 = vmatpush.bf16.msra.mxu2 %v13747_v19  ;;  %v13808_v19 = vld [vmem:[%s14545_s21 + $0xc68] sm:$0xff] }
 0x186   : > { %8583 = vmatpush.bf16.msra.mxu3 %v13755_v24  ;;  %8545 = vmatmul.bf16.vlgmr.msra.gmra.mxu0 %v2139_v25  ;;  %v8352_v48 = vadd.f32 %v8351_v45, %v8339_v43  ;;  %v13799_v24 = vld [vmem:[%s14545_s21 + $0xc20] sm:$0xff]  ;;  %v13821_v43 = vld [vmem:[%s14545_s21 + $0xcd0] sm:$0xff]  ;;  %v13804_v45 = vld [vmem:[%s14545_s21 + $0xc48] sm:$0xff] }
 0x187   : > { %8589 = vmatpush.bf16.msrb.mxu0 %v13770_v20  ;;  %8558 = vmatmul.bf16.vlgmr.msra.gmra.mxu1 %v2140_v28  ;;  %v13816_v20 = vld [vmem:[%s14545_s21 + $0xca8] sm:$0xff] }
 0x188   : > { %8602 = vmatpush.bf16.msrb.mxu1 %v13778_v21  ;;  %8571 = vmatmul.bf16.vlgmr.msra.gmra.mxu2 %v2141_v26  ;;  %v13824_v21 = vld [vmem:[%s14545_s21 + $0xce8] sm:$0xff]  ;;  %v13807_v26 = vld [vmem:[%s14545_s21 + $0xc60] sm:$0xff] }
 0x189   : > { %8615 = vmatpush.bf16.msrb.mxu2 %v13786_v23  ;;  %8584 = vmatmul.bf16.vlgmr.msra.gmra.mxu3 %v2142_v29  ;;  %v13823_v29 = vld [vmem:[%s14545_s21 + $0xce0] sm:$0xff] }
 0x18a   : > { %8628 = vmatpush.bf16.msrb.mxu3 %v13794_v27  ;;  %v13815_v27 = vld [vmem:[%s14545_s21 + $0xca0] sm:$0xff] }
 0x18b   : > { %8590 = vmatpush.bf16.msrb.mxu0 %v13769_v30  ;;  %v8364_v53 = vpop.f32.mrf.mxu2  ;;  %v8340_v57 = vpop.f32.mrf.mxu0  ;;  %v13798_v30 = vld [vmem:[%s14545_s21 + $0xc18] sm:$0xff] }
 0x18c   : > { %8603 = vmatpush.bf16.msrb.mxu1 %v13777_v31  ;;  %v8365_v54 = vadd.f32 %v8364_v53, %v8352_v48  ;;  %v8377_v56 = vpop.f32.mrf.mxu3  ;;  %v8353_v60 = vpop.f32.mrf.mxu1  ;;  %v13806_v31 = vld [vmem:[%s14545_s21 + $0xc58] sm:$0xff]  ;;  %v13820_v48 = vld [vmem:[%s14545_s21 + $0xcc8] sm:$0xff]  ;;  %v13819_v57 = vld [vmem:[%s14545_s21 + $0xcc0] sm:$0xff] }
 0x18d   : > { %8616 = vmatpush.bf16.msrb.mxu2 %v13785_v32  ;;  %v13814_v32 = vld [vmem:[%s14545_s21 + $0xc98] sm:$0xff] }
 0x18e   : > { %8629 = vmatpush.bf16.msrb.mxu3 %v13793_v37  ;;  %v8378_v58 = vadd.f32 %v8377_v56, %v8365_v54  ;;  %v13834_v53 = vld [vmem:[%s14545_s21 + $0xd38] sm:$0xff] }
 0x18f   : > { %8591 = vmatpush.bf16.msrb.mxu0 %v13768_v38  ;;  %v13842_v54 = vld [vmem:[%s14545_s21 + $0xd78] sm:$0xff] }
 0x190   : > { %8604 = vmatpush.bf16.msrb.mxu1 %v13776_v39  ;;  %v13797_v39 = vld [vmem:[%s14545_s21 + $0xc10] sm:$0xff]  ;;  %v13850_v56 = vld [vmem:[%s14545_s21 + $0xdb8] sm:$0xff] }
 0x191   : > { %8617 = vmatpush.bf16.msrb.mxu2 %v13784_v40  ;;  %v13858_v60 = vld [vmem:[%s14545_s21 + $0xdf8] sm:$0xff] }
 0x192   : > { %8630 = vmatpush.bf16.msrb.mxu3 %v13792_v41  ;;  %v13805_v41 = vld [vmem:[%s14545_s21 + $0xc50] sm:$0xff] }
 0x193   : > { %8592 = vmatpush.bf16.msrb.mxu0 %v13767_v44  ;;  %v8366_v3 = vpop.f32.mrf.mxu2  ;;  %v13796_v44 = vld [vmem:[%s14545_s21 + $0xc08] sm:$0xff] }
 0x194   : > { %8605 = vmatpush.bf16.msrb.mxu1 %v13775_v46  ;;  %v8379_v5 = vpop.f32.mrf.mxu3  ;;  %v13812_v46 = vld [vmem:[%s14545_s21 + $0xc88] sm:$0xff] }
 0x195   : > { %8618 = vmatpush.bf16.msrb.mxu2 %v13783_v47  ;;  %v15046_v3 = vld [vmem:[#allocation1 + $0x36] sm:$0xff]  ;;  %v15050_v5 = vld [vmem:[#allocation1 + $0x3f] sm:$0xff] }
 0x196   : > { %8631 = vmatpush.bf16.msrb.mxu3 %v13791_v49 }
 0x197   : > { %8593 = vmatpush.bf16.msrb.mxu0 %v13766_v50  ;;  %v13795_v50 = vld [vmem:[%s14545_s21 + $0xc00] sm:$0xff] }
 0x198   : > { %8606 = vmatpush.bf16.msrb.mxu1 %v13774_v51  ;;  %v13803_v51 = vld [vmem:[%s14545_s21 + $0xc40] sm:$0xff] }
 0x199   : > { %8619 = vmatpush.bf16.msrb.mxu2 %v13782_v52  ;;  %v13811_v52 = vld [vmem:[%s14545_s21 + $0xc80] sm:$0xff] }
 0x19a   : > { %8632 = vmatpush.bf16.msrb.mxu3 %v13790_v55  ;;  %v191_v55 = vld [vmem:[%s14573_s23 + $0x38] sm:$0xff] }
 0x19b   : > { %8594 = vmatpush.bf16.msrb.mxu0 %v13765_v59  ;;  %v2151_v59 = vld [vmem:[#allocation1 + $0x12] sm:$0xff] }
 0x19c   : > { %8607 = vmatpush.bf16.msrb.mxu1 %v13773_v61  ;;  %v2150_v61 = vld [vmem:[#allocation1 + $0x9] sm:$0xff] }
 0x19d   : > { %8620 = vmatpush.bf16.msrb.mxu2 %v13781_v62  ;;  %v2152_v62 = vld [vmem:[#allocation1 + $0x1b] sm:$0xff] }
 0x19e   : > { %8633 = vmatpush.bf16.msrb.mxu3 %v13789_v63  ;;  %v13833_v63 = vld [vmem:[%s14545_s21 + $0xd30] sm:$0xff] }
 0x19f   : > { %8595 = vmatpush.bf16.msrb.mxu0 %v13764_v0  ;;  %v13841_v0 = vld [vmem:[%s14545_s21 + $0xd70] sm:$0xff] }
 0x1a0   : > { %8608 = vmatpush.bf16.msrb.mxu1 %v13772_v1  ;;  %v13849_v1 = vld [vmem:[%s14545_s21 + $0xdb0] sm:$0xff] }
 0x1a1   : > { %8621 = vmatpush.bf16.msrb.mxu2 %v13780_v2  ;;  %v15044_v2 = vld [vmem:[#allocation1 + $0x24] sm:$0xff] }
 0x1a2   : > { %8634 = vmatpush.bf16.msrb.mxu3 %v13788_v4  ;;  %v15048_v4 = vld [vmem:[#allocation1 + $0x2d] sm:$0xff] }
 0x1a3   : > { %8596 = vmatpush.bf16.msrb.mxu0 %v13763_v6  ;;  %v8390_v22 = vpop.f32.mrf.mxu0  ;;  %v13857_v6 = vld [vmem:[%s14545_s21 + $0xdf0] sm:$0xff] }
 0x1a4   : > { %8609 = vmatpush.bf16.msrb.mxu1 %v13771_v7  ;;  %v8391_v23 = vadd.f32 %v8390_v22, %v8378_v58  ;;  %v8403_v25 = vpop.f32.mrf.mxu1  ;;  %v2149_v58 = vld [vmem:[#allocation1] sm:$0xff]  ;;  %v13832_v7 = vld [vmem:[%s14545_s21 + $0xd28] sm:$0xff] }
 0x1a5   : > { %8622 = vmatpush.bf16.msrb.mxu2 %v13779_v8  ;;  %2158 = vst [vmem:[#allocation1] ss:$9 sm:$0xff] %v191_v55  ;;  %v13840_v8 = vld [vmem:[%s14545_s21 + $0xd68] sm:$0xff] }
 0x1a6   : > { %8635 = vmatpush.bf16.msrb.mxu3 %v13787_v12  ;;  %8597 = vmatmul.bf16.vlgmr.msrb.gmra.mxu0 %v14964_v33  ;;  %v8404_v28 = vadd.f32 %v8403_v25, %v8391_v23 }
 0x1a7   : > { %8641 = vmatpush.bf16.msra.mxu0 %v13802_v9  ;;  %8610 = vmatmul.bf16.vlgmr.msrb.gmra.mxu1 %v14968_v35  ;;  %v13822_v35 = vld [vmem:[%s14545_s21 + $0xcd8] sm:$0xff]  ;;  %v13848_v9 = vld [vmem:[%s14545_s21 + $0xda8] sm:$0xff] }
 0x1a8   : > { %8654 = vmatpush.bf16.msra.mxu1 %v13810_v10  ;;  %8623 = vmatmul.bf16.vlgmr.msrb.gmra.mxu2 %v14966_v34  ;;  %v13856_v10 = vld [vmem:[%s14545_s21 + $0xde8] sm:$0xff] }
 0x1a9   : > { %8667 = vmatpush.bf16.msra.mxu2 %v13818_v11  ;;  %8636 = vmatmul.bf16.vlgmr.msrb.gmra.mxu3 %v14970_v36 }
 0x1aa   : > { %8680 = vmatpush.bf16.msra.mxu3 %v13826_v13  ;;  %v13831_v13 = vld [vmem:[%s14545_s21 + $0xd20] sm:$0xff] }
 0x1ab   : > { %8642 = vmatpush.bf16.msra.mxu0 %v13801_v14  ;;  %v8416_v33 = vpop.f32.mrf.mxu2  ;;  %v8392_v37 = vpop.f32.mrf.mxu0 }
 0x1ac   : > { %8655 = vmatpush.bf16.msra.mxu1 %v13809_v15  ;;  %v8417_v34 = vadd.f32 %v8416_v33, %v8404_v28  ;;  %v8429_v36 = vpop.f32.mrf.mxu3  ;;  %v8405_v40 = vpop.f32.mrf.mxu1  ;;  %v13839_v15 = vld [vmem:[%s14545_s21 + $0xd60] sm:$0xff]  ;;  %v13829_v28 = vld [vmem:[%s14545_s21 + $0xd10] sm:$0xff]  ;;  %v13828_v33 = vld [vmem:[%s14545_s21 + $0xd08] sm:$0xff] }
 0x1ad   : > { %8668 = vmatpush.bf16.msra.mxu2 %v13817_v16  ;;  %v13847_v16 = vld [vmem:[%s14545_s21 + $0xda0] sm:$0xff]  ;;  %v13852_v37 = vld [vmem:[%s14545_s21 + $0xdc8] sm:$0xff] }
 0x1ae   : > { %8681 = vmatpush.bf16.msra.mxu3 %v13825_v17  ;;  %v15022_v38 = vadd.f32 %v8429_v36, %v8417_v34  ;;  %v13836_v34 = vld [vmem:[%s14545_s21 + $0xd48] sm:$0xff]  ;;  %v13835_v40 = vld [vmem:[%s14545_s21 + $0xd40] sm:$0xff] }
 0x1af   : > { %8643 = vmatpush.bf16.msra.mxu0 %v13800_v18  ;;  %v13855_v18 = vld [vmem:[%s14545_s21 + $0xde0] sm:$0xff] }
 0x1b0   : > { %8656 = vmatpush.bf16.msra.mxu1 %v13808_v19  ;;  %v13830_v19 = vld [vmem:[%s14545_s21 + $0xd18] sm:$0xff] }
 0x1b1   : > { %8669 = vmatpush.bf16.msra.mxu2 %v13816_v20  ;;  %v13838_v20 = vld [vmem:[%s14545_s21 + $0xd58] sm:$0xff] }
 0x1b2   : > { %8682 = vmatpush.bf16.msra.mxu3 %v13824_v21  ;;  %v13846_v21 = vld [vmem:[%s14545_s21 + $0xd98] sm:$0xff] }
 0x1b3   : > { %8644 = vmatpush.bf16.msra.mxu0 %v13799_v24  ;;  %v8418_v47 = vpop.f32.mrf.mxu2  ;;  %v13854_v24 = vld [vmem:[%s14545_s21 + $0xdd8] sm:$0xff] }
 0x1b4   : > { %8657 = vmatpush.bf16.msra.mxu1 %v13807_v26  ;;  %v8431_v49 = vpop.f32.mrf.mxu3  ;;  %v13865_v47 = vld [vmem:[%s14545_s21 + $0xe30] sm:$0xff] }
 0x1b5   : > { %8670 = vmatpush.bf16.msra.mxu2 %v13815_v27  ;;  %v13881_v49 = vld [vmem:[%s14545_s21 + $0xeb0] sm:$0xff] }
 0x1b6   : > { %8683 = vmatpush.bf16.msra.mxu3 %v13823_v29 }
 0x1b7   : > { %8645 = vmatpush.bf16.msra.mxu0 %v13798_v30  ;;  %v13837_v30 = vld [vmem:[%s14545_s21 + $0xd50] sm:$0xff] }
 0x1b8   : > { %8658 = vmatpush.bf16.msra.mxu1 %v13806_v31  ;;  %v13845_v31 = vld [vmem:[%s14545_s21 + $0xd90] sm:$0xff] }
 0x1b9   : > { %8671 = vmatpush.bf16.msra.mxu2 %v13814_v32  ;;  %v13853_v32 = vld [vmem:[%s14545_s21 + $0xdd0] sm:$0xff] }
 0x1ba   : > { %8684 = vmatpush.bf16.msra.mxu3 %v13822_v35  ;;  %v13844_v35 = vld [vmem:[%s14545_s21 + $0xd88] sm:$0xff] }
 0x1bb   : > { %8646 = vmatpush.bf16.msra.mxu0 %v13797_v39  ;;  %v13827_v39 = vld [vmem:[%s14545_s21 + $0xd00] sm:$0xff] }
 0x1bc   : > { %8659 = vmatpush.bf16.msra.mxu1 %v13805_v41  ;;  %v13843_v41 = vld [vmem:[%s14545_s21 + $0xd80] sm:$0xff] }
 0x1bd   : > { %8672 = vmatpush.bf16.msra.mxu2 %v13813_v42  ;;  %v13866_v42 = vld [vmem:[%s14545_s21 + $0xe38] sm:$0xff] }
 0x1be   : > { %8685 = vmatpush.bf16.msra.mxu3 %v13821_v43  ;;  %v13874_v43 = vld [vmem:[%s14545_s21 + $0xe78] sm:$0xff] }
 0x1bf   : > { %8647 = vmatpush.bf16.msra.mxu0 %v13796_v44  ;;  %v13882_v44 = vld [vmem:[%s14545_s21 + $0xeb8] sm:$0xff] }
 0x1c0   : > { %8660 = vmatpush.bf16.msra.mxu1 %v13804_v45  ;;  %v13851_v45 = vld [vmem:[%s14545_s21 + $0xdc0] sm:$0xff] }
 0x1c1   : > { %8673 = vmatpush.bf16.msra.mxu2 %v13812_v46  ;;  %v13890_v46 = vld [vmem:[%s14545_s21 + $0xef8] sm:$0xff] }
 0x1c2   : > { %8686 = vmatpush.bf16.msra.mxu3 %v13820_v48  ;;  %v13873_v48 = vld [vmem:[%s14545_s21 + $0xe70] sm:$0xff] }
 0x1c3   : > { %8648 = vmatpush.bf16.msra.mxu0 %v13795_v50  ;;  %v8442_v11 = vpop.f32.mrf.mxu0  ;;  %v13889_v50 = vld [vmem:[%s14545_s21 + $0xef0] sm:$0xff] }
 0x1c4   : > { %8661 = vmatpush.bf16.msra.mxu1 %v13803_v51  ;;  %v8443_v12 = vadd.f32 %v8442_v11, %v15022_v38  ;;  %v8455_v14 = vpop.f32.mrf.mxu1  ;;  %v13864_v51 = vld [vmem:[%s14545_s21 + $0xe28] sm:$0xff]  ;;  %v13877_v11 = vld [vmem:[%s14545_s21 + $0xe90] sm:$0xff] }
 0x1c5   : > { %8674 = vmatpush.bf16.msra.mxu2 %v13811_v52  ;;  %v13872_v52 = vld [vmem:[%s14545_s21 + $0xe68] sm:$0xff] }
 0x1c6   : > { %8687 = vmatpush.bf16.msra.mxu3 %v13819_v57  ;;  %8649 = vmatmul.bf16.vlgmr.msra.gmra.mxu0 %v2149_v58  ;;  %v8456_v17 = vadd.f32 %v8455_v14, %v8443_v12  ;;  %v13863_v57 = vld [vmem:[%s14545_s21 + $0xe20] sm:$0xff]  ;;  %v13885_v12 = vld [vmem:[%s14545_s21 + $0xed0] sm:$0xff]  ;;  %v13868_v14 = vld [vmem:[%s14545_s21 + $0xe48] sm:$0xff] }
 0x1c7   : > { %8693 = vmatpush.bf16.msrb.mxu0 %v13834_v53  ;;  %8662 = vmatmul.bf16.vlgmr.msra.gmra.mxu1 %v2150_v61  ;;  %v13880_v53 = vld [vmem:[%s14545_s21 + $0xea8] sm:$0xff] }
 0x1c8   : > { %8706 = vmatpush.bf16.msrb.mxu1 %v13842_v54  ;;  %8675 = vmatmul.bf16.vlgmr.msra.gmra.mxu2 %v2151_v59  ;;  %v13888_v54 = vld [vmem:[%s14545_s21 + $0xee8] sm:$0xff]  ;;  %v13871_v59 = vld [vmem:[%s14545_s21 + $0xe60] sm:$0xff] }
 0x1c9   : > { %8719 = vmatpush.bf16.msrb.mxu2 %v13850_v56  ;;  %8688 = vmatmul.bf16.vlgmr.msra.gmra.mxu3 %v2152_v62  ;;  %v13887_v62 = vld [vmem:[%s14545_s21 + $0xee0] sm:$0xff] }
 0x1ca   : > { %8732 = vmatpush.bf16.msrb.mxu3 %v13858_v60  ;;  %v13879_v60 = vld [vmem:[%s14545_s21 + $0xea0] sm:$0xff] }
 0x1cb   : > { %8694 = vmatpush.bf16.msrb.mxu0 %v13833_v63  ;;  %v8468_v22 = vpop.f32.mrf.mxu2  ;;  %v8444_v26 = vpop.f32.mrf.mxu0  ;;  %v13862_v63 = vld [vmem:[%s14545_s21 + $0xe18] sm:$0xff] }
 0x1cc   : > { %8707 = vmatpush.bf16.msrb.mxu1 %v13841_v0  ;;  %v8469_v23 = vadd.f32 %v8468_v22, %v8456_v17  ;;  %v8481_v25 = vpop.f32.mrf.mxu3  ;;  %v8457_v29 = vpop.f32.mrf.mxu1  ;;  %v13870_v0 = vld [vmem:[%s14545_s21 + $0xe58] sm:$0xff]  ;;  %v13884_v17 = vld [vmem:[%s14545_s21 + $0xec8] sm:$0xff]  ;;  %v13883_v26 = vld [vmem:[%s14545_s21 + $0xec0] sm:$0xff] }
 0x1cd   : > { %8720 = vmatpush.bf16.msrb.mxu2 %v13849_v1  ;;  %v13878_v1 = vld [vmem:[%s14545_s21 + $0xe98] sm:$0xff] }
 0x1ce   : > { %8733 = vmatpush.bf16.msrb.mxu3 %v13857_v6  ;;  %v8482_v27 = vadd.f32 %v8481_v25, %v8469_v23  ;;  %v13898_v22 = vld [vmem:[%s14545_s21 + $0xf38] sm:$0xff] }
 0x1cf   : > { %8695 = vmatpush.bf16.msrb.mxu0 %v13832_v7  ;;  %v13906_v23 = vld [vmem:[%s14545_s21 + $0xf78] sm:$0xff] }
 0x1d0   : > { %8708 = vmatpush.bf16.msrb.mxu1 %v13840_v8  ;;  %v13861_v8 = vld [vmem:[%s14545_s21 + $0xe10] sm:$0xff]  ;;  %v13914_v25 = vld [vmem:[%s14545_s21 + $0xfb8] sm:$0xff] }
 0x1d1   : > { %8721 = vmatpush.bf16.msrb.mxu2 %v13848_v9  ;;  %v13922_v29 = vld [vmem:[%s14545_s21 + $0xff8] sm:$0xff] }
 0x1d2   : > { %8734 = vmatpush.bf16.msrb.mxu3 %v13856_v10  ;;  %v13869_v10 = vld [vmem:[%s14545_s21 + $0xe50] sm:$0xff] }
 0x1d3   : > { %8696 = vmatpush.bf16.msrb.mxu0 %v13831_v13  ;;  %v8470_v36 = vpop.f32.mrf.mxu2  ;;  %v13860_v13 = vld [vmem:[%s14545_s21 + $0xe08] sm:$0xff] }
 0x1d4   : > { %8709 = vmatpush.bf16.msrb.mxu1 %v13839_v15  ;;  %v8483_v38 = vpop.f32.mrf.mxu3  ;;  %v13876_v15 = vld [vmem:[%s14545_s21 + $0xe88] sm:$0xff] }
 0x1d5   : > { %8722 = vmatpush.bf16.msrb.mxu2 %v13847_v16  ;;  %v15126_v36 = vld [vmem:[#allocation1 + $0x36] sm:$0xff]  ;;  %v15130_v38 = vld [vmem:[#allocation1 + $0x3f] sm:$0xff] }
 0x1d6   : > { %8735 = vmatpush.bf16.msrb.mxu3 %v13855_v18 }
 0x1d7   : > { %8697 = vmatpush.bf16.msrb.mxu0 %v13830_v19  ;;  %v13859_v19 = vld [vmem:[%s14545_s21 + $0xe00] sm:$0xff] }
 0x1d8   : > { %8710 = vmatpush.bf16.msrb.mxu1 %v13838_v20  ;;  %v13867_v20 = vld [vmem:[%s14545_s21 + $0xe40] sm:$0xff] }
 0x1d9   : > { %8723 = vmatpush.bf16.msrb.mxu2 %v13846_v21  ;;  %v13875_v21 = vld [vmem:[%s14545_s21 + $0xe80] sm:$0xff] }
 0x1da   : > { %8736 = vmatpush.bf16.msrb.mxu3 %v13854_v24  ;;  %v192_v24 = vld [vmem:[%s14573_s23 + $0x40] sm:$0xff] }
 0x1db   : > { %8698 = vmatpush.bf16.msrb.mxu0 %v13829_v28  ;;  %v2161_v28 = vld [vmem:[#allocation1 + $0x12] sm:$0xff] }
 0x1dc   : > { %8711 = vmatpush.bf16.msrb.mxu1 %v13837_v30  ;;  %v2160_v30 = vld [vmem:[#allocation1 + $0x9] sm:$0xff] }
 0x1dd   : > { %8724 = vmatpush.bf16.msrb.mxu2 %v13845_v31  ;;  %v2162_v31 = vld [vmem:[#allocation1 + $0x1b] sm:$0xff] }
 0x1de   : > { %8737 = vmatpush.bf16.msrb.mxu3 %v13853_v32  ;;  %v13897_v32 = vld [vmem:[%s14545_s21 + $0xf30] sm:$0xff] }
 0x1df   : > { %8699 = vmatpush.bf16.msrb.mxu0 %v13828_v33  ;;  %v13905_v33 = vld [vmem:[%s14545_s21 + $0xf70] sm:$0xff] }
 0x1e0   : > { %8712 = vmatpush.bf16.msrb.mxu1 %v13836_v34  ;;  %v13913_v34 = vld [vmem:[%s14545_s21 + $0xfb0] sm:$0xff] }
 0x1e1   : > { %8725 = vmatpush.bf16.msrb.mxu2 %v13844_v35  ;;  %v15124_v35 = vld [vmem:[#allocation1 + $0x24] sm:$0xff] }
 0x1e2   : > { %8738 = vmatpush.bf16.msrb.mxu3 %v13852_v37  ;;  %v15128_v37 = vld [vmem:[#allocation1 + $0x2d] sm:$0xff] }
 0x1e3   : > { %8700 = vmatpush.bf16.msrb.mxu0 %v13827_v39  ;;  %v8494_v55 = vpop.f32.mrf.mxu0  ;;  %v13921_v39 = vld [vmem:[%s14545_s21 + $0xff0] sm:$0xff] }
 0x1e4   : > { %8713 = vmatpush.bf16.msrb.mxu1 %v13835_v40  ;;  %v8495_v56 = vadd.f32 %v8494_v55, %v8482_v27  ;;  %v8507_v58 = vpop.f32.mrf.mxu1  ;;  %v2159_v27 = vld [vmem:[#allocation1] sm:$0xff]  ;;  %v13896_v40 = vld [vmem:[%s14545_s21 + $0xf28] sm:$0xff] }
 0x1e5   : > { %8726 = vmatpush.bf16.msrb.mxu2 %v13843_v41  ;;  %2168 = vst [vmem:[#allocation1] ss:$9 sm:$0xff] %v192_v24  ;;  %v13904_v41 = vld [vmem:[%s14545_s21 + $0xf68] sm:$0xff] }
 0x1e6   : > { %8739 = vmatpush.bf16.msrb.mxu3 %v13851_v45  ;;  %8701 = vmatmul.bf16.vlgmr.msrb.gmra.mxu0 %v15044_v2  ;;  %v8508_v61 = vadd.f32 %v8507_v58, %v8495_v56 }
 0x1e7   : > { %8745 = vmatpush.bf16.msra.mxu0 %v13866_v42  ;;  %8714 = vmatmul.bf16.vlgmr.msrb.gmra.mxu1 %v15048_v4  ;;  %v13886_v4 = vld [vmem:[%s14545_s21 + $0xed8] sm:$0xff]  ;;  %v13912_v42 = vld [vmem:[%s14545_s21 + $0xfa8] sm:$0xff] }
 0x1e8   : > { %8758 = vmatpush.bf16.msra.mxu1 %v13874_v43  ;;  %8727 = vmatmul.bf16.vlgmr.msrb.gmra.mxu2 %v15046_v3  ;;  %v13920_v43 = vld [vmem:[%s14545_s21 + $0xfe8] sm:$0xff] }
 0x1e9   : > { %8771 = vmatpush.bf16.msra.mxu2 %v13882_v44  ;;  %8740 = vmatmul.bf16.vlgmr.msrb.gmra.mxu3 %v15050_v5 }
 0x1ea   : > { %8784 = vmatpush.bf16.msra.mxu3 %v13890_v46  ;;  %v13895_v46 = vld [vmem:[%s14545_s21 + $0xf20] sm:$0xff] }
 0x1eb   : > { %8746 = vmatpush.bf16.msra.mxu0 %v13865_v47  ;;  %v8520_v2 = vpop.f32.mrf.mxu2  ;;  %v8496_v6 = vpop.f32.mrf.mxu0 }
 0x1ec   : > { %8759 = vmatpush.bf16.msra.mxu1 %v13873_v48  ;;  %v8521_v3 = vadd.f32 %v8520_v2, %v8508_v61  ;;  %v8533_v5 = vpop.f32.mrf.mxu3  ;;  %v8509_v9 = vpop.f32.mrf.mxu1  ;;  %v13903_v48 = vld [vmem:[%s14545_s21 + $0xf60] sm:$0xff]  ;;  %v13893_v61 = vld [vmem:[%s14545_s21 + $0xf10] sm:$0xff]  ;;  %v13892_v2 = vld [vmem:[%s14545_s21 + $0xf08] sm:$0xff] }
 0x1ed   : > { %8772 = vmatpush.bf16.msra.mxu2 %v13881_v49  ;;  %v13911_v49 = vld [vmem:[%s14545_s21 + $0xfa0] sm:$0xff]  ;;  %v13916_v6 = vld [vmem:[%s14545_s21 + $0xfc8] sm:$0xff] }
 0x1ee   : > { %8785 = vmatpush.bf16.msra.mxu3 %v13889_v50  ;;  %v15102_v7 = vadd.f32 %v8533_v5, %v8521_v3  ;;  %v13900_v3 = vld [vmem:[%s14545_s21 + $0xf48] sm:$0xff]  ;;  %v13899_v9 = vld [vmem:[%s14545_s21 + $0xf40] sm:$0xff] }
 0x1ef   : > { %8747 = vmatpush.bf16.msra.mxu0 %v13864_v51  ;;  %v13919_v51 = vld [vmem:[%s14545_s21 + $0xfe0] sm:$0xff] }
 0x1f0   : > { %8760 = vmatpush.bf16.msra.mxu1 %v13872_v52  ;;  %v13894_v52 = vld [vmem:[%s14545_s21 + $0xf18] sm:$0xff] }
 0x1f1   : > { %8773 = vmatpush.bf16.msra.mxu2 %v13880_v53  ;;  %v13902_v53 = vld [vmem:[%s14545_s21 + $0xf58] sm:$0xff] }
 0x1f2   : > { %8786 = vmatpush.bf16.msra.mxu3 %v13888_v54  ;;  %v13910_v54 = vld [vmem:[%s14545_s21 + $0xf98] sm:$0xff] }
 0x1f3   : > { %8748 = vmatpush.bf16.msra.mxu0 %v13863_v57  ;;  %v8522_v16 = vpop.f32.mrf.mxu2  ;;  %v13918_v57 = vld [vmem:[%s14545_s21 + $0xfd8] sm:$0xff] }
 0x1f4   : > { %8761 = vmatpush.bf16.msra.mxu1 %v13871_v59  ;;  %v8535_v18 = vpop.f32.mrf.mxu3  ;;  %v13929_v16 = vld [vmem:[%s14545_s21 + $0x1030] sm:$0xff] }
 0x1f5   : > { %8774 = vmatpush.bf16.msra.mxu2 %v13879_v60  ;;  %v13945_v18 = vld [vmem:[%s14545_s21 + $0x10b0] sm:$0xff] }
 0x1f6   : > { %8787 = vmatpush.bf16.msra.mxu3 %v13887_v62 }
 0x1f7   : > { %8749 = vmatpush.bf16.msra.mxu0 %v13862_v63  ;;  %v13901_v63 = vld [vmem:[%s14545_s21 + $0xf50] sm:$0xff] }
 0x1f8   : > { %8762 = vmatpush.bf16.msra.mxu1 %v13870_v0  ;;  %v13909_v0 = vld [vmem:[%s14545_s21 + $0xf90] sm:$0xff] }
 0x1f9   : > { %8775 = vmatpush.bf16.msra.mxu2 %v13878_v1  ;;  %v13917_v1 = vld [vmem:[%s14545_s21 + $0xfd0] sm:$0xff] }
 0x1fa   : > { %8788 = vmatpush.bf16.msra.mxu3 %v13886_v4  ;;  %v13908_v4 = vld [vmem:[%s14545_s21 + $0xf88] sm:$0xff] }
 0x1fb   : > { %8750 = vmatpush.bf16.msra.mxu0 %v13861_v8  ;;  %v13891_v8 = vld [vmem:[%s14545_s21 + $0xf00] sm:$0xff] }
 0x1fc   : > { %8763 = vmatpush.bf16.msra.mxu1 %v13869_v10  ;;  %v13907_v10 = vld [vmem:[%s14545_s21 + $0xf80] sm:$0xff] }
 0x1fd   : > { %8776 = vmatpush.bf16.msra.mxu2 %v13877_v11  ;;  %v13930_v11 = vld [vmem:[%s14545_s21 + $0x1038] sm:$0xff] }
 0x1fe   : > { %8789 = vmatpush.bf16.msra.mxu3 %v13885_v12  ;;  %v13938_v12 = vld [vmem:[%s14545_s21 + $0x1078] sm:$0xff] }
 0x1ff   : > { %8751 = vmatpush.bf16.msra.mxu0 %v13860_v13  ;;  %v13946_v13 = vld [vmem:[%s14545_s21 + $0x10b8] sm:$0xff] }
 0x200   : > { %8764 = vmatpush.bf16.msra.mxu1 %v13868_v14  ;;  %v13915_v14 = vld [vmem:[%s14545_s21 + $0xfc0] sm:$0xff] }
 0x201   : > { %8777 = vmatpush.bf16.msra.mxu2 %v13876_v15  ;;  %v13954_v15 = vld [vmem:[%s14545_s21 + $0x10f8] sm:$0xff] }
 0x202   : > { %8790 = vmatpush.bf16.msra.mxu3 %v13884_v17  ;;  %v13937_v17 = vld [vmem:[%s14545_s21 + $0x1070] sm:$0xff] }
 0x203   : > { %8752 = vmatpush.bf16.msra.mxu0 %v13859_v19  ;;  %v8546_v44 = vpop.f32.mrf.mxu0  ;;  %v13953_v19 = vld [vmem:[%s14545_s21 + $0x10f0] sm:$0xff] }
 0x204   : > { %8765 = vmatpush.bf16.msra.mxu1 %v13867_v20  ;;  %v8547_v45 = vadd.f32 %v8546_v44, %v15102_v7  ;;  %v8559_v47 = vpop.f32.mrf.mxu1  ;;  %v13928_v20 = vld [vmem:[%s14545_s21 + $0x1028] sm:$0xff]  ;;  %v13941_v44 = vld [vmem:[%s14545_s21 + $0x1090] sm:$0xff] }
 0x205   : > { %8778 = vmatpush.bf16.msra.mxu2 %v13875_v21  ;;  %v13936_v21 = vld [vmem:[%s14545_s21 + $0x1068] sm:$0xff] }
 0x206   : > { %8791 = vmatpush.bf16.msra.mxu3 %v13883_v26  ;;  %8753 = vmatmul.bf16.vlgmr.msra.gmra.mxu0 %v2159_v27  ;;  %v8560_v50 = vadd.f32 %v8559_v47, %v8547_v45  ;;  %v13927_v26 = vld [vmem:[%s14545_s21 + $0x1020] sm:$0xff]  ;;  %v13949_v45 = vld [vmem:[%s14545_s21 + $0x10d0] sm:$0xff]  ;;  %v13932_v47 = vld [vmem:[%s14545_s21 + $0x1048] sm:$0xff] }
 0x207   : > { %8797 = vmatpush.bf16.msrb.mxu0 %v13898_v22  ;;  %8766 = vmatmul.bf16.vlgmr.msra.gmra.mxu1 %v2160_v30  ;;  %v13944_v22 = vld [vmem:[%s14545_s21 + $0x10a8] sm:$0xff] }
 0x208   : > { %8810 = vmatpush.bf16.msrb.mxu1 %v13906_v23  ;;  %8779 = vmatmul.bf16.vlgmr.msra.gmra.mxu2 %v2161_v28  ;;  %v13952_v23 = vld [vmem:[%s14545_s21 + $0x10e8] sm:$0xff]  ;;  %v13935_v28 = vld [vmem:[%s14545_s21 + $0x1060] sm:$0xff] }
 0x209   : > { %8823 = vmatpush.bf16.msrb.mxu2 %v13914_v25  ;;  %8792 = vmatmul.bf16.vlgmr.msra.gmra.mxu3 %v2162_v31  ;;  %v13951_v31 = vld [vmem:[%s14545_s21 + $0x10e0] sm:$0xff] }
 0x20a   : > { %8836 = vmatpush.bf16.msrb.mxu3 %v13922_v29  ;;  %v13943_v29 = vld [vmem:[%s14545_s21 + $0x10a0] sm:$0xff] }
 0x20b   : > { %8798 = vmatpush.bf16.msrb.mxu0 %v13897_v32  ;;  %v8572_v55 = vpop.f32.mrf.mxu2  ;;  %v8548_v59 = vpop.f32.mrf.mxu0  ;;  %v13926_v32 = vld [vmem:[%s14545_s21 + $0x1018] sm:$0xff] }
 0x20c   : > { %8811 = vmatpush.bf16.msrb.mxu1 %v13905_v33  ;;  %v8573_v56 = vadd.f32 %v8572_v55, %v8560_v50  ;;  %v8585_v58 = vpop.f32.mrf.mxu3  ;;  %v8561_v62 = vpop.f32.mrf.mxu1  ;;  %v13934_v33 = vld [vmem:[%s14545_s21 + $0x1058] sm:$0xff]  ;;  %v13948_v50 = vld [vmem:[%s14545_s21 + $0x10c8] sm:$0xff]  ;;  %v13947_v59 = vld [vmem:[%s14545_s21 + $0x10c0] sm:$0xff] }
 0x20d   : > { %8824 = vmatpush.bf16.msrb.mxu2 %v13913_v34  ;;  %v13942_v34 = vld [vmem:[%s14545_s21 + $0x1098] sm:$0xff] }
 0x20e   : > { %8837 = vmatpush.bf16.msrb.mxu3 %v13921_v39  ;;  %v8586_v60 = vadd.f32 %v8585_v58, %v8573_v56  ;;  %v13962_v55 = vld [vmem:[%s14545_s21 + $0x1138] sm:$0xff] }
 0x20f   : > { %8799 = vmatpush.bf16.msrb.mxu0 %v13896_v40  ;;  %v13970_v56 = vld [vmem:[%s14545_s21 + $0x1178] sm:$0xff] }
 0x210   : > { %8812 = vmatpush.bf16.msrb.mxu1 %v13904_v41  ;;  %v13925_v41 = vld [vmem:[%s14545_s21 + $0x1010] sm:$0xff]  ;;  %v13978_v58 = vld [vmem:[%s14545_s21 + $0x11b8] sm:$0xff] }
 0x211   : > { %8825 = vmatpush.bf16.msrb.mxu2 %v13912_v42  ;;  %v13986_v62 = vld [vmem:[%s14545_s21 + $0x11f8] sm:$0xff] }
 0x212   : > { %8838 = vmatpush.bf16.msrb.mxu3 %v13920_v43  ;;  %v13933_v43 = vld [vmem:[%s14545_s21 + $0x1050] sm:$0xff] }
 0x213   : > { %8800 = vmatpush.bf16.msrb.mxu0 %v13895_v46  ;;  %v8574_v5 = vpop.f32.mrf.mxu2  ;;  %v13924_v46 = vld [vmem:[%s14545_s21 + $0x1008] sm:$0xff] }
 0x214   : > { %8813 = vmatpush.bf16.msrb.mxu1 %v13903_v48  ;;  %v8587_v7 = vpop.f32.mrf.mxu3  ;;  %v13940_v48 = vld [vmem:[%s14545_s21 + $0x1088] sm:$0xff] }
 0x215   : > { %8826 = vmatpush.bf16.msrb.mxu2 %v13911_v49  ;;  %v15206_v5 = vld [vmem:[#allocation1 + $0x36] sm:$0xff]  ;;  %v15210_v7 = vld [vmem:[#allocation1 + $0x3f] sm:$0xff] }
 0x216   : > { %8839 = vmatpush.bf16.msrb.mxu3 %v13919_v51 }
 0x217   : > { %8801 = vmatpush.bf16.msrb.mxu0 %v13894_v52  ;;  %v13923_v52 = vld [vmem:[%s14545_s21 + $0x1000] sm:$0xff] }
 0x218   : > { %8814 = vmatpush.bf16.msrb.mxu1 %v13902_v53  ;;  %v13931_v53 = vld [vmem:[%s14545_s21 + $0x1040] sm:$0xff] }
 0x219   : > { %8827 = vmatpush.bf16.msrb.mxu2 %v13910_v54  ;;  %v13939_v54 = vld [vmem:[%s14545_s21 + $0x1080] sm:$0xff] }
 0x21a   : > { %8840 = vmatpush.bf16.msrb.mxu3 %v13918_v57  ;;  %v193_v57 = vld [vmem:[%s14573_s23 + $0x48] sm:$0xff] }
 0x21b   : > { %8802 = vmatpush.bf16.msrb.mxu0 %v13893_v61  ;;  %v2171_v61 = vld [vmem:[#allocation1 + $0x12] sm:$0xff] }
 0x21c   : > { %8815 = vmatpush.bf16.msrb.mxu1 %v13901_v63  ;;  %v2170_v63 = vld [vmem:[#allocation1 + $0x9] sm:$0xff] }
 0x21d   : > { %8828 = vmatpush.bf16.msrb.mxu2 %v13909_v0  ;;  %v2172_v0 = vld [vmem:[#allocation1 + $0x1b] sm:$0xff] }
 0x21e   : > { %8841 = vmatpush.bf16.msrb.mxu3 %v13917_v1  ;;  %v13961_v1 = vld [vmem:[%s14545_s21 + $0x1130] sm:$0xff] }
 0x21f   : > { %8803 = vmatpush.bf16.msrb.mxu0 %v13892_v2  ;;  %v13969_v2 = vld [vmem:[%s14545_s21 + $0x1170] sm:$0xff] }
 0x220   : > { %8816 = vmatpush.bf16.msrb.mxu1 %v13900_v3  ;;  %v13977_v3 = vld [vmem:[%s14545_s21 + $0x11b0] sm:$0xff] }
 0x221   : > { %8829 = vmatpush.bf16.msrb.mxu2 %v13908_v4  ;;  %v15204_v4 = vld [vmem:[#allocation1 + $0x24] sm:$0xff] }
 0x222   : > { %8842 = vmatpush.bf16.msrb.mxu3 %v13916_v6  ;;  %v15208_v6 = vld [vmem:[#allocation1 + $0x2d] sm:$0xff] }
 0x223   : > { %8804 = vmatpush.bf16.msrb.mxu0 %v13891_v8  ;;  %v8598_v24 = vpop.f32.mrf.mxu0  ;;  %v13985_v8 = vld [vmem:[%s14545_s21 + $0x11f0] sm:$0xff] }
 0x224   : > { %8817 = vmatpush.bf16.msrb.mxu1 %v13899_v9  ;;  %v8599_v25 = vadd.f32 %v8598_v24, %v8586_v60  ;;  %v8611_v27 = vpop.f32.mrf.mxu1  ;;  %v2169_v60 = vld [vmem:[#allocation1] sm:$0xff]  ;;  %v13960_v9 = vld [vmem:[%s14545_s21 + $0x1128] sm:$0xff] }
 0x225   : > { %8830 = vmatpush.bf16.msrb.mxu2 %v13907_v10  ;;  %2178 = vst [vmem:[#allocation1] ss:$9 sm:$0xff] %v193_v57  ;;  %v13968_v10 = vld [vmem:[%s14545_s21 + $0x1168] sm:$0xff] }
 0x226   : > { %8843 = vmatpush.bf16.msrb.mxu3 %v13915_v14  ;;  %8805 = vmatmul.bf16.vlgmr.msrb.gmra.mxu0 %v15124_v35  ;;  %v8612_v30 = vadd.f32 %v8611_v27, %v8599_v25 }
 0x227   : > { %8849 = vmatpush.bf16.msra.mxu0 %v13930_v11  ;;  %8818 = vmatmul.bf16.vlgmr.msrb.gmra.mxu1 %v15128_v37  ;;  %v13950_v37 = vld [vmem:[%s14545_s21 + $0x10d8] sm:$0xff]  ;;  %v13976_v11 = vld [vmem:[%s14545_s21 + $0x11a8] sm:$0xff] }
 0x228   : > { %8862 = vmatpush.bf16.msra.mxu1 %v13938_v12  ;;  %8831 = vmatmul.bf16.vlgmr.msrb.gmra.mxu2 %v15126_v36  ;;  %v13984_v12 = vld [vmem:[%s14545_s21 + $0x11e8] sm:$0xff] }
 0x229   : > { %8875 = vmatpush.bf16.msra.mxu2 %v13946_v13  ;;  %8844 = vmatmul.bf16.vlgmr.msrb.gmra.mxu3 %v15130_v38 }
 0x22a   : > { %8888 = vmatpush.bf16.msra.mxu3 %v13954_v15  ;;  %v13959_v15 = vld [vmem:[%s14545_s21 + $0x1120] sm:$0xff] }
 0x22b   : > { %8850 = vmatpush.bf16.msra.mxu0 %v13929_v16  ;;  %v8624_v35 = vpop.f32.mrf.mxu2  ;;  %v8600_v39 = vpop.f32.mrf.mxu0 }
 0x22c   : > { %8863 = vmatpush.bf16.msra.mxu1 %v13937_v17  ;;  %v8625_v36 = vadd.f32 %v8624_v35, %v8612_v30  ;;  %v8637_v38 = vpop.f32.mrf.mxu3  ;;  %v8613_v42 = vpop.f32.mrf.mxu1  ;;  %v13967_v17 = vld [vmem:[%s14545_s21 + $0x1160] sm:$0xff]  ;;  %v13957_v30 = vld [vmem:[%s14545_s21 + $0x1110] sm:$0xff]  ;;  %v13956_v35 = vld [vmem:[%s14545_s21 + $0x1108] sm:$0xff] }
 0x22d   : > { %8876 = vmatpush.bf16.msra.mxu2 %v13945_v18  ;;  %v13975_v18 = vld [vmem:[%s14545_s21 + $0x11a0] sm:$0xff]  ;;  %v13980_v39 = vld [vmem:[%s14545_s21 + $0x11c8] sm:$0xff] }
 0x22e   : > { %8889 = vmatpush.bf16.msra.mxu3 %v13953_v19  ;;  %v15182_v40 = vadd.f32 %v8637_v38, %v8625_v36  ;;  %v13964_v36 = vld [vmem:[%s14545_s21 + $0x1148] sm:$0xff]  ;;  %v13963_v42 = vld [vmem:[%s14545_s21 + $0x1140] sm:$0xff] }
 0x22f   : > { %8851 = vmatpush.bf16.msra.mxu0 %v13928_v20  ;;  %v13983_v20 = vld [vmem:[%s14545_s21 + $0x11e0] sm:$0xff] }
 0x230   : > { %8864 = vmatpush.bf16.msra.mxu1 %v13936_v21  ;;  %v13958_v21 = vld [vmem:[%s14545_s21 + $0x1118] sm:$0xff] }
 0x231   : > { %8877 = vmatpush.bf16.msra.mxu2 %v13944_v22  ;;  %v13966_v22 = vld [vmem:[%s14545_s21 + $0x1158] sm:$0xff] }
 0x232   : > { %8890 = vmatpush.bf16.msra.mxu3 %v13952_v23  ;;  %v13974_v23 = vld [vmem:[%s14545_s21 + $0x1198] sm:$0xff] }
 0x233   : > { %8852 = vmatpush.bf16.msra.mxu0 %v13927_v26  ;;  %v8626_v49 = vpop.f32.mrf.mxu2  ;;  %v13982_v26 = vld [vmem:[%s14545_s21 + $0x11d8] sm:$0xff] }
 0x234   : > { %8865 = vmatpush.bf16.msra.mxu1 %v13935_v28  ;;  %v8639_v51 = vpop.f32.mrf.mxu3  ;;  %v13993_v49 = vld [vmem:[%s14545_s21 + $0x1230] sm:$0xff] }
 0x235   : > { %8878 = vmatpush.bf16.msra.mxu2 %v13943_v29  ;;  %v14009_v51 = vld [vmem:[%s14545_s21 + $0x12b0] sm:$0xff] }
 0x236   : > { %8891 = vmatpush.bf16.msra.mxu3 %v13951_v31 }
 0x237   : > { %8853 = vmatpush.bf16.msra.mxu0 %v13926_v32  ;;  %v13965_v32 = vld [vmem:[%s14545_s21 + $0x1150] sm:$0xff] }
 0x238   : > { %8866 = vmatpush.bf16.msra.mxu1 %v13934_v33  ;;  %v13973_v33 = vld [vmem:[%s14545_s21 + $0x1190] sm:$0xff] }
 0x239   : > { %8879 = vmatpush.bf16.msra.mxu2 %v13942_v34  ;;  %v13981_v34 = vld [vmem:[%s14545_s21 + $0x11d0] sm:$0xff] }
 0x23a   : > { %8892 = vmatpush.bf16.msra.mxu3 %v13950_v37  ;;  %v13972_v37 = vld [vmem:[%s14545_s21 + $0x1188] sm:$0xff] }
 0x23b   : > { %8854 = vmatpush.bf16.msra.mxu0 %v13925_v41  ;;  %v13955_v41 = vld [vmem:[%s14545_s21 + $0x1100] sm:$0xff] }
 0x23c   : > { %8867 = vmatpush.bf16.msra.mxu1 %v13933_v43  ;;  %v13971_v43 = vld [vmem:[%s14545_s21 + $0x1180] sm:$0xff] }
 0x23d   : > { %8880 = vmatpush.bf16.msra.mxu2 %v13941_v44  ;;  %v13994_v44 = vld [vmem:[%s14545_s21 + $0x1238] sm:$0xff] }
 0x23e   : > { %8893 = vmatpush.bf16.msra.mxu3 %v13949_v45  ;;  %v14002_v45 = vld [vmem:[%s14545_s21 + $0x1278] sm:$0xff] }
 0x23f   : > { %8855 = vmatpush.bf16.msra.mxu0 %v13924_v46  ;;  %v14010_v46 = vld [vmem:[%s14545_s21 + $0x12b8] sm:$0xff] }
 0x240   : > { %8868 = vmatpush.bf16.msra.mxu1 %v13932_v47  ;;  %v13979_v47 = vld [vmem:[%s14545_s21 + $0x11c0] sm:$0xff] }
 0x241   : > { %8881 = vmatpush.bf16.msra.mxu2 %v13940_v48  ;;  %v14018_v48 = vld [vmem:[%s14545_s21 + $0x12f8] sm:$0xff] }
 0x242   : > { %8894 = vmatpush.bf16.msra.mxu3 %v13948_v50  ;;  %v14001_v50 = vld [vmem:[%s14545_s21 + $0x1270] sm:$0xff] }
 0x243   : > { %8856 = vmatpush.bf16.msra.mxu0 %v13923_v52  ;;  %v8650_v13 = vpop.f32.mrf.mxu0  ;;  %v14017_v52 = vld [vmem:[%s14545_s21 + $0x12f0] sm:$0xff] }
 0x244   : > { %8869 = vmatpush.bf16.msra.mxu1 %v13931_v53  ;;  %v8651_v14 = vadd.f32 %v8650_v13, %v15182_v40  ;;  %v8663_v16 = vpop.f32.mrf.mxu1  ;;  %v13992_v53 = vld [vmem:[%s14545_s21 + $0x1228] sm:$0xff]  ;;  %v14005_v13 = vld [vmem:[%s14545_s21 + $0x1290] sm:$0xff] }
 0x245   : > { %8882 = vmatpush.bf16.msra.mxu2 %v13939_v54  ;;  %v14000_v54 = vld [vmem:[%s14545_s21 + $0x1268] sm:$0xff] }
 0x246   : > { %8895 = vmatpush.bf16.msra.mxu3 %v13947_v59  ;;  %8857 = vmatmul.bf16.vlgmr.msra.gmra.mxu0 %v2169_v60  ;;  %v8664_v19 = vadd.f32 %v8663_v16, %v8651_v14  ;;  %v13991_v59 = vld [vmem:[%s14545_s21 + $0x1220] sm:$0xff]  ;;  %v14013_v14 = vld [vmem:[%s14545_s21 + $0x12d0] sm:$0xff]  ;;  %v13996_v16 = vld [vmem:[%s14545_s21 + $0x1248] sm:$0xff] }
 0x247   : > { %8901 = vmatpush.bf16.msrb.mxu0 %v13962_v55  ;;  %8870 = vmatmul.bf16.vlgmr.msra.gmra.mxu1 %v2170_v63  ;;  %v14008_v55 = vld [vmem:[%s14545_s21 + $0x12a8] sm:$0xff] }
 0x248   : > { %8914 = vmatpush.bf16.msrb.mxu1 %v13970_v56  ;;  %8883 = vmatmul.bf16.vlgmr.msra.gmra.mxu2 %v2171_v61  ;;  %v14016_v56 = vld [vmem:[%s14545_s21 + $0x12e8] sm:$0xff]  ;;  %v13999_v61 = vld [vmem:[%s14545_s21 + $0x1260] sm:$0xff] }
 0x249   : > { %8927 = vmatpush.bf16.msrb.mxu2 %v13978_v58  ;;  %8896 = vmatmul.bf16.vlgmr.msra.gmra.mxu3 %v2172_v0  ;;  %v14015_v0 = vld [vmem:[%s14545_s21 + $0x12e0] sm:$0xff] }
 0x24a   : > { %8940 = vmatpush.bf16.msrb.mxu3 %v13986_v62  ;;  %v14007_v62 = vld [vmem:[%s14545_s21 + $0x12a0] sm:$0xff] }
 0x24b   : > { %8902 = vmatpush.bf16.msrb.mxu0 %v13961_v1  ;;  %v8676_v24 = vpop.f32.mrf.mxu2  ;;  %v8652_v28 = vpop.f32.mrf.mxu0  ;;  %v13990_v1 = vld [vmem:[%s14545_s21 + $0x1218] sm:$0xff] }
 0x24c   : > { %8915 = vmatpush.bf16.msrb.mxu1 %v13969_v2  ;;  %v8677_v25 = vadd.f32 %v8676_v24, %v8664_v19  ;;  %v8689_v27 = vpop.f32.mrf.mxu3  ;;  %v8665_v31 = vpop.f32.mrf.mxu1  ;;  %v13998_v2 = vld [vmem:[%s14545_s21 + $0x1258] sm:$0xff]  ;;  %v14012_v19 = vld [vmem:[%s14545_s21 + $0x12c8] sm:$0xff]  ;;  %v14011_v28 = vld [vmem:[%s14545_s21 + $0x12c0] sm:$0xff] }
 0x24d   : > { %8928 = vmatpush.bf16.msrb.mxu2 %v13977_v3  ;;  %v14006_v3 = vld [vmem:[%s14545_s21 + $0x1298] sm:$0xff] }
 0x24e   : > { %8941 = vmatpush.bf16.msrb.mxu3 %v13985_v8  ;;  %v8690_v29 = vadd.f32 %v8689_v27, %v8677_v25  ;;  %v14026_v24 = vld [vmem:[%s14545_s21 + $0x1338] sm:$0xff] }
 0x24f   : > { %8903 = vmatpush.bf16.msrb.mxu0 %v13960_v9  ;;  %v14034_v25 = vld [vmem:[%s14545_s21 + $0x1378] sm:$0xff] }
 0x250   : > { %8916 = vmatpush.bf16.msrb.mxu1 %v13968_v10  ;;  %v13989_v10 = vld [vmem:[%s14545_s21 + $0x1210] sm:$0xff]  ;;  %v14042_v27 = vld [vmem:[%s14545_s21 + $0x13b8] sm:$0xff] }
 0x251   : > { %8929 = vmatpush.bf16.msrb.mxu2 %v13976_v11  ;;  %v14050_v31 = vld [vmem:[%s14545_s21 + $0x13f8] sm:$0xff] }
 0x252   : > { %8942 = vmatpush.bf16.msrb.mxu3 %v13984_v12  ;;  %v13997_v12 = vld [vmem:[%s14545_s21 + $0x1250] sm:$0xff] }
 0x253   : > { %8904 = vmatpush.bf16.msrb.mxu0 %v13959_v15  ;;  %v8678_v38 = vpop.f32.mrf.mxu2  ;;  %v13988_v15 = vld [vmem:[%s14545_s21 + $0x1208] sm:$0xff] }
 0x254   : > { %8917 = vmatpush.bf16.msrb.mxu1 %v13967_v17  ;;  %v8691_v40 = vpop.f32.mrf.mxu3  ;;  %v14004_v17 = vld [vmem:[%s14545_s21 + $0x1288] sm:$0xff] }
 0x255   : > { %8930 = vmatpush.bf16.msrb.mxu2 %v13975_v18  ;;  %v15286_v38 = vld [vmem:[#allocation1 + $0x36] sm:$0xff]  ;;  %v15290_v40 = vld [vmem:[#allocation1 + $0x3f] sm:$0xff] }
 0x256   : > { %8943 = vmatpush.bf16.msrb.mxu3 %v13983_v20 }
 0x257   : > { %8905 = vmatpush.bf16.msrb.mxu0 %v13958_v21  ;;  %v13987_v21 = vld [vmem:[%s14545_s21 + $0x1200] sm:$0xff] }
 0x258   : > { %8918 = vmatpush.bf16.msrb.mxu1 %v13966_v22  ;;  %v13995_v22 = vld [vmem:[%s14545_s21 + $0x1240] sm:$0xff] }
 0x259   : > { %8931 = vmatpush.bf16.msrb.mxu2 %v13974_v23  ;;  %v14003_v23 = vld [vmem:[%s14545_s21 + $0x1280] sm:$0xff] }
 0x25a   : > { %8944 = vmatpush.bf16.msrb.mxu3 %v13982_v26  ;;  %v194_v26 = vld [vmem:[%s14573_s23 + $0x50] sm:$0xff] }
 0x25b   : > { %8906 = vmatpush.bf16.msrb.mxu0 %v13957_v30  ;;  %v2181_v30 = vld [vmem:[#allocation1 + $0x12] sm:$0xff] }
 0x25c   : > { %8919 = vmatpush.bf16.msrb.mxu1 %v13965_v32  ;;  %v2180_v32 = vld [vmem:[#allocation1 + $0x9] sm:$0xff] }
 0x25d   : > { %8932 = vmatpush.bf16.msrb.mxu2 %v13973_v33  ;;  %v2182_v33 = vld [vmem:[#allocation1 + $0x1b] sm:$0xff] }
 0x25e   : > { %8945 = vmatpush.bf16.msrb.mxu3 %v13981_v34  ;;  %v14025_v34 = vld [vmem:[%s14545_s21 + $0x1330] sm:$0xff] }
 0x25f   : > { %8907 = vmatpush.bf16.msrb.mxu0 %v13956_v35  ;;  %v14033_v35 = vld [vmem:[%s14545_s21 + $0x1370] sm:$0xff] }
 0x260   : > { %8920 = vmatpush.bf16.msrb.mxu1 %v13964_v36  ;;  %v14041_v36 = vld [vmem:[%s14545_s21 + $0x13b0] sm:$0xff] }
 0x261   : > { %8933 = vmatpush.bf16.msrb.mxu2 %v13972_v37  ;;  %v15284_v37 = vld [vmem:[#allocation1 + $0x24] sm:$0xff] }
 0x262   : > { %8946 = vmatpush.bf16.msrb.mxu3 %v13980_v39  ;;  %v15288_v39 = vld [vmem:[#allocation1 + $0x2d] sm:$0xff] }
 0x263   : > { %8908 = vmatpush.bf16.msrb.mxu0 %v13955_v41  ;;  %v8702_v57 = vpop.f32.mrf.mxu0  ;;  %v14049_v41 = vld [vmem:[%s14545_s21 + $0x13f0] sm:$0xff] }
 0x264   : > { %8921 = vmatpush.bf16.msrb.mxu1 %v13963_v42  ;;  %v8703_v58 = vadd.f32 %v8702_v57, %v8690_v29  ;;  %v8715_v60 = vpop.f32.mrf.mxu1  ;;  %v2179_v29 = vld [vmem:[#allocation1] sm:$0xff]  ;;  %v14024_v42 = vld [vmem:[%s14545_s21 + $0x1328] sm:$0xff] }
 0x265   : > { %8934 = vmatpush.bf16.msrb.mxu2 %v13971_v43  ;;  %2188 = vst [vmem:[#allocation1] ss:$9 sm:$0xff] %v194_v26  ;;  %v14032_v43 = vld [vmem:[%s14545_s21 + $0x1368] sm:$0xff] }
 0x266   : > { %8947 = vmatpush.bf16.msrb.mxu3 %v13979_v47  ;;  %8909 = vmatmul.bf16.vlgmr.msrb.gmra.mxu0 %v15204_v4  ;;  %v8716_v63 = vadd.f32 %v8715_v60, %v8703_v58 }
 0x267   : > { %8953 = vmatpush.bf16.msra.mxu0 %v13994_v44  ;;  %8922 = vmatmul.bf16.vlgmr.msrb.gmra.mxu1 %v15208_v6  ;;  %v14014_v6 = vld [vmem:[%s14545_s21 + $0x12d8] sm:$0xff]  ;;  %v14040_v44 = vld [vmem:[%s14545_s21 + $0x13a8] sm:$0xff] }
 0x268   : > { %8966 = vmatpush.bf16.msra.mxu1 %v14002_v45  ;;  %8935 = vmatmul.bf16.vlgmr.msrb.gmra.mxu2 %v15206_v5  ;;  %v14048_v45 = vld [vmem:[%s14545_s21 + $0x13e8] sm:$0xff] }
 0x269   : > { %8979 = vmatpush.bf16.msra.mxu2 %v14010_v46  ;;  %8948 = vmatmul.bf16.vlgmr.msrb.gmra.mxu3 %v15210_v7 }
 0x26a   : > { %8992 = vmatpush.bf16.msra.mxu3 %v14018_v48  ;;  %v14023_v48 = vld [vmem:[%s14545_s21 + $0x1320] sm:$0xff] }
 0x26b   : > { %8954 = vmatpush.bf16.msra.mxu0 %v13993_v49  ;;  %v8728_v4 = vpop.f32.mrf.mxu2  ;;  %v8704_v8 = vpop.f32.mrf.mxu0 }
 0x26c   : > { %8967 = vmatpush.bf16.msra.mxu1 %v14001_v50  ;;  %v8729_v5 = vadd.f32 %v8728_v4, %v8716_v63  ;;  %v8741_v7 = vpop.f32.mrf.mxu3  ;;  %v8717_v11 = vpop.f32.mrf.mxu1  ;;  %v14031_v50 = vld [vmem:[%s14545_s21 + $0x1360] sm:$0xff]  ;;  %v14021_v63 = vld [vmem:[%s14545_s21 + $0x1310] sm:$0xff]  ;;  %v14020_v4 = vld [vmem:[%s14545_s21 + $0x1308] sm:$0xff] }
 0x26d   : > { %8980 = vmatpush.bf16.msra.mxu2 %v14009_v51  ;;  %v14039_v51 = vld [vmem:[%s14545_s21 + $0x13a0] sm:$0xff]  ;;  %v14044_v8 = vld [vmem:[%s14545_s21 + $0x13c8] sm:$0xff] }
 0x26e   : > { %8993 = vmatpush.bf16.msra.mxu3 %v14017_v52  ;;  %v15262_v9 = vadd.f32 %v8741_v7, %v8729_v5  ;;  %v14028_v5 = vld [vmem:[%s14545_s21 + $0x1348] sm:$0xff]  ;;  %v14027_v11 = vld [vmem:[%s14545_s21 + $0x1340] sm:$0xff] }
 0x26f   : > { %8955 = vmatpush.bf16.msra.mxu0 %v13992_v53  ;;  %v14047_v53 = vld [vmem:[%s14545_s21 + $0x13e0] sm:$0xff] }
 0x270   : > { %8968 = vmatpush.bf16.msra.mxu1 %v14000_v54  ;;  %v14022_v54 = vld [vmem:[%s14545_s21 + $0x1318] sm:$0xff] }
 0x271   : > { %8981 = vmatpush.bf16.msra.mxu2 %v14008_v55  ;;  %v14030_v55 = vld [vmem:[%s14545_s21 + $0x1358] sm:$0xff] }
 0x272   : > { %8994 = vmatpush.bf16.msra.mxu3 %v14016_v56  ;;  %v14038_v56 = vld [vmem:[%s14545_s21 + $0x1398] sm:$0xff] }
 0x273   : > { %8956 = vmatpush.bf16.msra.mxu0 %v13991_v59  ;;  %v8730_v18 = vpop.f32.mrf.mxu2  ;;  %v14046_v59 = vld [vmem:[%s14545_s21 + $0x13d8] sm:$0xff] }
 0x274   : > { %8969 = vmatpush.bf16.msra.mxu1 %v13999_v61  ;;  %v8743_v20 = vpop.f32.mrf.mxu3  ;;  %v14057_v18 = vld [vmem:[%s14545_s21 + $0x1430] sm:$0xff] }
 0x275   : > { %8982 = vmatpush.bf16.msra.mxu2 %v14007_v62  ;;  %v14073_v20 = vld [vmem:[%s14545_s21 + $0x14b0] sm:$0xff] }
 0x276   : > { %8995 = vmatpush.bf16.msra.mxu3 %v14015_v0 }
 0x277   : > { %8957 = vmatpush.bf16.msra.mxu0 %v13990_v1  ;;  %v14029_v1 = vld [vmem:[%s14545_s21 + $0x1350] sm:$0xff] }
 0x278   : > { %8970 = vmatpush.bf16.msra.mxu1 %v13998_v2  ;;  %v14037_v2 = vld [vmem:[%s14545_s21 + $0x1390] sm:$0xff] }
 0x279   : > { %8983 = vmatpush.bf16.msra.mxu2 %v14006_v3  ;;  %v14045_v3 = vld [vmem:[%s14545_s21 + $0x13d0] sm:$0xff] }
 0x27a   : > { %8996 = vmatpush.bf16.msra.mxu3 %v14014_v6  ;;  %v14036_v6 = vld [vmem:[%s14545_s21 + $0x1388] sm:$0xff] }
 0x27b   : > { %8958 = vmatpush.bf16.msra.mxu0 %v13989_v10  ;;  %v14019_v10 = vld [vmem:[%s14545_s21 + $0x1300] sm:$0xff] }
 0x27c   : > { %8971 = vmatpush.bf16.msra.mxu1 %v13997_v12  ;;  %v14035_v12 = vld [vmem:[%s14545_s21 + $0x1380] sm:$0xff] }
 0x27d   : > { %8984 = vmatpush.bf16.msra.mxu2 %v14005_v13  ;;  %v14058_v13 = vld [vmem:[%s14545_s21 + $0x1438] sm:$0xff] }
 0x27e   : > { %8997 = vmatpush.bf16.msra.mxu3 %v14013_v14  ;;  %v14066_v14 = vld [vmem:[%s14545_s21 + $0x1478] sm:$0xff] }
 0x27f   : > { %8959 = vmatpush.bf16.msra.mxu0 %v13988_v15  ;;  %v14074_v15 = vld [vmem:[%s14545_s21 + $0x14b8] sm:$0xff] }
 0x280   : > { %8972 = vmatpush.bf16.msra.mxu1 %v13996_v16  ;;  %v14043_v16 = vld [vmem:[%s14545_s21 + $0x13c0] sm:$0xff] }
 0x281   : > { %8985 = vmatpush.bf16.msra.mxu2 %v14004_v17  ;;  %v14082_v17 = vld [vmem:[%s14545_s21 + $0x14f8] sm:$0xff] }
 0x282   : > { %8998 = vmatpush.bf16.msra.mxu3 %v14012_v19  ;;  %v14065_v19 = vld [vmem:[%s14545_s21 + $0x1470] sm:$0xff] }
 0x283   : > { %8960 = vmatpush.bf16.msra.mxu0 %v13987_v21  ;;  %v8754_v46 = vpop.f32.mrf.mxu0  ;;  %v14081_v21 = vld [vmem:[%s14545_s21 + $0x14f0] sm:$0xff] }
 0x284   : > { %8973 = vmatpush.bf16.msra.mxu1 %v13995_v22  ;;  %v8755_v47 = vadd.f32 %v8754_v46, %v15262_v9  ;;  %v8767_v49 = vpop.f32.mrf.mxu1  ;;  %v14056_v22 = vld [vmem:[%s14545_s21 + $0x1428] sm:$0xff]  ;;  %v14069_v46 = vld [vmem:[%s14545_s21 + $0x1490] sm:$0xff] }
 0x285   : > { %8986 = vmatpush.bf16.msra.mxu2 %v14003_v23  ;;  %v14064_v23 = vld [vmem:[%s14545_s21 + $0x1468] sm:$0xff] }
 0x286   : > { %8999 = vmatpush.bf16.msra.mxu3 %v14011_v28  ;;  %8961 = vmatmul.bf16.vlgmr.msra.gmra.mxu0 %v2179_v29  ;;  %v8768_v52 = vadd.f32 %v8767_v49, %v8755_v47  ;;  %v14055_v28 = vld [vmem:[%s14545_s21 + $0x1420] sm:$0xff]  ;;  %v14077_v47 = vld [vmem:[%s14545_s21 + $0x14d0] sm:$0xff]  ;;  %v14060_v49 = vld [vmem:[%s14545_s21 + $0x1448] sm:$0xff] }
 0x287   : > { %9005 = vmatpush.bf16.msrb.mxu0 %v14026_v24  ;;  %8974 = vmatmul.bf16.vlgmr.msra.gmra.mxu1 %v2180_v32  ;;  %v14072_v24 = vld [vmem:[%s14545_s21 + $0x14a8] sm:$0xff] }
 0x288   : > { %9018 = vmatpush.bf16.msrb.mxu1 %v14034_v25  ;;  %8987 = vmatmul.bf16.vlgmr.msra.gmra.mxu2 %v2181_v30  ;;  %v14080_v25 = vld [vmem:[%s14545_s21 + $0x14e8] sm:$0xff]  ;;  %v14063_v30 = vld [vmem:[%s14545_s21 + $0x1460] sm:$0xff] }
 0x289   : > { %9031 = vmatpush.bf16.msrb.mxu2 %v14042_v27  ;;  %9000 = vmatmul.bf16.vlgmr.msra.gmra.mxu3 %v2182_v33  ;;  %v14079_v33 = vld [vmem:[%s14545_s21 + $0x14e0] sm:$0xff] }
 0x28a   : > { %9044 = vmatpush.bf16.msrb.mxu3 %v14050_v31  ;;  %v14071_v31 = vld [vmem:[%s14545_s21 + $0x14a0] sm:$0xff] }
 0x28b   : > { %9006 = vmatpush.bf16.msrb.mxu0 %v14025_v34  ;;  %v8780_v57 = vpop.f32.mrf.mxu2  ;;  %v8756_v61 = vpop.f32.mrf.mxu0  ;;  %v14054_v34 = vld [vmem:[%s14545_s21 + $0x1418] sm:$0xff] }
 0x28c   : > { %9019 = vmatpush.bf16.msrb.mxu1 %v14033_v35  ;;  %v8781_v58 = vadd.f32 %v8780_v57, %v8768_v52  ;;  %v8793_v60 = vpop.f32.mrf.mxu3  ;;  %v8769_v0 = vpop.f32.mrf.mxu1  ;;  %v14062_v35 = vld [vmem:[%s14545_s21 + $0x1458] sm:$0xff]  ;;  %v14076_v52 = vld [vmem:[%s14545_s21 + $0x14c8] sm:$0xff]  ;;  %v14075_v61 = vld [vmem:[%s14545_s21 + $0x14c0] sm:$0xff] }
 0x28d   : > { %9032 = vmatpush.bf16.msrb.mxu2 %v14041_v36  ;;  %v14070_v36 = vld [vmem:[%s14545_s21 + $0x1498] sm:$0xff] }
 0x28e   : > { %9045 = vmatpush.bf16.msrb.mxu3 %v14049_v41  ;;  %v8794_v62 = vadd.f32 %v8793_v60, %v8781_v58  ;;  %v14090_v57 = vld [vmem:[%s14545_s21 + $0x1538] sm:$0xff] }
 0x28f   : > { %9007 = vmatpush.bf16.msrb.mxu0 %v14024_v42  ;;  %v14098_v58 = vld [vmem:[%s14545_s21 + $0x1578] sm:$0xff] }
 0x290   : > { %9020 = vmatpush.bf16.msrb.mxu1 %v14032_v43  ;;  %v14053_v43 = vld [vmem:[%s14545_s21 + $0x1410] sm:$0xff]  ;;  %v14106_v60 = vld [vmem:[%s14545_s21 + $0x15b8] sm:$0xff] }
 0x291   : > { %9033 = vmatpush.bf16.msrb.mxu2 %v14040_v44  ;;  %v14114_v0 = vld [vmem:[%s14545_s21 + $0x15f8] sm:$0xff] }
 0x292   : > { %9046 = vmatpush.bf16.msrb.mxu3 %v14048_v45  ;;  %v14061_v45 = vld [vmem:[%s14545_s21 + $0x1450] sm:$0xff] }
 0x293   : > { %9008 = vmatpush.bf16.msrb.mxu0 %v14023_v48  ;;  %v8782_v7 = vpop.f32.mrf.mxu2  ;;  %v14052_v48 = vld [vmem:[%s14545_s21 + $0x1408] sm:$0xff] }
 0x294   : > { %9021 = vmatpush.bf16.msrb.mxu1 %v14031_v50  ;;  %v8795_v9 = vpop.f32.mrf.mxu3  ;;  %v14068_v50 = vld [vmem:[%s14545_s21 + $0x1488] sm:$0xff] }
 0x295   : > { %9034 = vmatpush.bf16.msrb.mxu2 %v14039_v51  ;;  %v15366_v7 = vld [vmem:[#allocation1 + $0x36] sm:$0xff]  ;;  %v15370_v9 = vld [vmem:[#allocation1 + $0x3f] sm:$0xff] }
 0x296   : > { %9047 = vmatpush.bf16.msrb.mxu3 %v14047_v53 }
 0x297   : > { %9009 = vmatpush.bf16.msrb.mxu0 %v14022_v54  ;;  %v14051_v54 = vld [vmem:[%s14545_s21 + $0x1400] sm:$0xff] }
 0x298   : > { %9022 = vmatpush.bf16.msrb.mxu1 %v14030_v55  ;;  %v14059_v55 = vld [vmem:[%s14545_s21 + $0x1440] sm:$0xff] }
 0x299   : > { %9035 = vmatpush.bf16.msrb.mxu2 %v14038_v56  ;;  %v14067_v56 = vld [vmem:[%s14545_s21 + $0x1480] sm:$0xff] }
 0x29a   : > { %9048 = vmatpush.bf16.msrb.mxu3 %v14046_v59  ;;  %v195_v59 = vld [vmem:[%s14573_s23 + $0x58] sm:$0xff] }
 0x29b   : > { %9010 = vmatpush.bf16.msrb.mxu0 %v14021_v63  ;;  %v2191_v63 = vld [vmem:[#allocation1 + $0x12] sm:$0xff] }
 0x29c   : > { %9023 = vmatpush.bf16.msrb.mxu1 %v14029_v1  ;;  %v2190_v1 = vld [vmem:[#allocation1 + $0x9] sm:$0xff] }
 0x29d   : > { %9036 = vmatpush.bf16.msrb.mxu2 %v14037_v2  ;;  %v2192_v2 = vld [vmem:[#allocation1 + $0x1b] sm:$0xff] }
 0x29e   : > { %9049 = vmatpush.bf16.msrb.mxu3 %v14045_v3  ;;  %v14089_v3 = vld [vmem:[%s14545_s21 + $0x1530] sm:$0xff] }
 0x29f   : > { %9011 = vmatpush.bf16.msrb.mxu0 %v14020_v4  ;;  %v14097_v4 = vld [vmem:[%s14545_s21 + $0x1570] sm:$0xff] }
 0x2a0   : > { %9024 = vmatpush.bf16.msrb.mxu1 %v14028_v5  ;;  %v14105_v5 = vld [vmem:[%s14545_s21 + $0x15b0] sm:$0xff] }
 0x2a1   : > { %9037 = vmatpush.bf16.msrb.mxu2 %v14036_v6  ;;  %v15364_v6 = vld [vmem:[#allocation1 + $0x24] sm:$0xff] }
 0x2a2   : > { %9050 = vmatpush.bf16.msrb.mxu3 %v14044_v8  ;;  %v15368_v8 = vld [vmem:[#allocation1 + $0x2d] sm:$0xff] }
 0x2a3   : > { %9012 = vmatpush.bf16.msrb.mxu0 %v14019_v10  ;;  %v8806_v26 = vpop.f32.mrf.mxu0  ;;  %v14113_v10 = vld [vmem:[%s14545_s21 + $0x15f0] sm:$0xff] }
 0x2a4   : > { %9025 = vmatpush.bf16.msrb.mxu1 %v14027_v11  ;;  %v8807_v27 = vadd.f32 %v8806_v26, %v8794_v62  ;;  %v8819_v29 = vpop.f32.mrf.mxu1  ;;  %v2189_v62 = vld [vmem:[#allocation1] sm:$0xff]  ;;  %v14088_v11 = vld [vmem:[%s14545_s21 + $0x1528] sm:$0xff] }
 0x2a5   : > { %9038 = vmatpush.bf16.msrb.mxu2 %v14035_v12  ;;  %2198 = vst [vmem:[#allocation1] ss:$9 sm:$0xff] %v195_v59  ;;  %v14096_v12 = vld [vmem:[%s14545_s21 + $0x1568] sm:$0xff] }
 0x2a6   : > { %9051 = vmatpush.bf16.msrb.mxu3 %v14043_v16  ;;  %9013 = vmatmul.bf16.vlgmr.msrb.gmra.mxu0 %v15284_v37  ;;  %v8820_v32 = vadd.f32 %v8819_v29, %v8807_v27 }
 0x2a7   : > { %9057 = vmatpush.bf16.msra.mxu0 %v14058_v13  ;;  %9026 = vmatmul.bf16.vlgmr.msrb.gmra.mxu1 %v15288_v39  ;;  %v14078_v39 = vld [vmem:[%s14545_s21 + $0x14d8] sm:$0xff]  ;;  %v14104_v13 = vld [vmem:[%s14545_s21 + $0x15a8] sm:$0xff] }
 0x2a8   : > { %9070 = vmatpush.bf16.msra.mxu1 %v14066_v14  ;;  %9039 = vmatmul.bf16.vlgmr.msrb.gmra.mxu2 %v15286_v38  ;;  %v14112_v14 = vld [vmem:[%s14545_s21 + $0x15e8] sm:$0xff] }
 0x2a9   : > { %9083 = vmatpush.bf16.msra.mxu2 %v14074_v15  ;;  %9052 = vmatmul.bf16.vlgmr.msrb.gmra.mxu3 %v15290_v40 }
 0x2aa   : > { %9096 = vmatpush.bf16.msra.mxu3 %v14082_v17  ;;  %v14087_v17 = vld [vmem:[%s14545_s21 + $0x1520] sm:$0xff] }
 0x2ab   : > { %9058 = vmatpush.bf16.msra.mxu0 %v14057_v18  ;;  %v8832_v37 = vpop.f32.mrf.mxu2  ;;  %v8808_v41 = vpop.f32.mrf.mxu0 }
 0x2ac   : > { %9071 = vmatpush.bf16.msra.mxu1 %v14065_v19  ;;  %v8833_v38 = vadd.f32 %v8832_v37, %v8820_v32  ;;  %v8845_v40 = vpop.f32.mrf.mxu3  ;;  %v8821_v44 = vpop.f32.mrf.mxu1  ;;  %v14095_v19 = vld [vmem:[%s14545_s21 + $0x1560] sm:$0xff]  ;;  %v14085_v32 = vld [vmem:[%s14545_s21 + $0x1510] sm:$0xff]  ;;  %v14084_v37 = vld [vmem:[%s14545_s21 + $0x1508] sm:$0xff] }
 0x2ad   : > { %9084 = vmatpush.bf16.msra.mxu2 %v14073_v20  ;;  %v14103_v20 = vld [vmem:[%s14545_s21 + $0x15a0] sm:$0xff]  ;;  %v14108_v41 = vld [vmem:[%s14545_s21 + $0x15c8] sm:$0xff] }
 0x2ae   : > { %9097 = vmatpush.bf16.msra.mxu3 %v14081_v21  ;;  %v15342_v42 = vadd.f32 %v8845_v40, %v8833_v38  ;;  %v14092_v38 = vld [vmem:[%s14545_s21 + $0x1548] sm:$0xff]  ;;  %v14091_v44 = vld [vmem:[%s14545_s21 + $0x1540] sm:$0xff] }
 0x2af   : > { %9059 = vmatpush.bf16.msra.mxu0 %v14056_v22  ;;  %v14111_v22 = vld [vmem:[%s14545_s21 + $0x15e0] sm:$0xff] }
 0x2b0   : > { %9072 = vmatpush.bf16.msra.mxu1 %v14064_v23  ;;  %v14086_v23 = vld [vmem:[%s14545_s21 + $0x1518] sm:$0xff] }
 0x2b1   : > { %9085 = vmatpush.bf16.msra.mxu2 %v14072_v24  ;;  %v14094_v24 = vld [vmem:[%s14545_s21 + $0x1558] sm:$0xff] }
 0x2b2   : > { %9098 = vmatpush.bf16.msra.mxu3 %v14080_v25  ;;  %v14102_v25 = vld [vmem:[%s14545_s21 + $0x1598] sm:$0xff] }
 0x2b3   : > { %9060 = vmatpush.bf16.msra.mxu0 %v14055_v28  ;;  %v8834_v51 = vpop.f32.mrf.mxu2  ;;  %v14110_v28 = vld [vmem:[%s14545_s21 + $0x15d8] sm:$0xff] }
 0x2b4   : > { %9073 = vmatpush.bf16.msra.mxu1 %v14063_v30  ;;  %v8847_v53 = vpop.f32.mrf.mxu3  ;;  %v14121_v51 = vld [vmem:[%s14545_s21 + $0x1630] sm:$0xff] }
 0x2b5   : > { %9086 = vmatpush.bf16.msra.mxu2 %v14071_v31  ;;  %v14137_v53 = vld [vmem:[%s14545_s21 + $0x16b0] sm:$0xff] }
 0x2b6   : > { %9099 = vmatpush.bf16.msra.mxu3 %v14079_v33 }
 0x2b7   : > { %9061 = vmatpush.bf16.msra.mxu0 %v14054_v34  ;;  %v14093_v34 = vld [vmem:[%s14545_s21 + $0x1550] sm:$0xff] }
 0x2b8   : > { %9074 = vmatpush.bf16.msra.mxu1 %v14062_v35  ;;  %v14101_v35 = vld [vmem:[%s14545_s21 + $0x1590] sm:$0xff] }
 0x2b9   : > { %9087 = vmatpush.bf16.msra.mxu2 %v14070_v36  ;;  %v14109_v36 = vld [vmem:[%s14545_s21 + $0x15d0] sm:$0xff] }
 0x2ba   : > { %9100 = vmatpush.bf16.msra.mxu3 %v14078_v39  ;;  %v14100_v39 = vld [vmem:[%s14545_s21 + $0x1588] sm:$0xff] }
 0x2bb   : > { %9062 = vmatpush.bf16.msra.mxu0 %v14053_v43  ;;  %v14083_v43 = vld [vmem:[%s14545_s21 + $0x1500] sm:$0xff] }
 0x2bc   : > { %9075 = vmatpush.bf16.msra.mxu1 %v14061_v45  ;;  %v14099_v45 = vld [vmem:[%s14545_s21 + $0x1580] sm:$0xff] }
 0x2bd   : > { %9088 = vmatpush.bf16.msra.mxu2 %v14069_v46  ;;  %v14122_v46 = vld [vmem:[%s14545_s21 + $0x1638] sm:$0xff] }
 0x2be   : > { %9101 = vmatpush.bf16.msra.mxu3 %v14077_v47  ;;  %v14130_v47 = vld [vmem:[%s14545_s21 + $0x1678] sm:$0xff] }
 0x2bf   : > { %9063 = vmatpush.bf16.msra.mxu0 %v14052_v48  ;;  %v14138_v48 = vld [vmem:[%s14545_s21 + $0x16b8] sm:$0xff] }
 0x2c0   : > { %9076 = vmatpush.bf16.msra.mxu1 %v14060_v49  ;;  %v14107_v49 = vld [vmem:[%s14545_s21 + $0x15c0] sm:$0xff] }
 0x2c1   : > { %9089 = vmatpush.bf16.msra.mxu2 %v14068_v50  ;;  %v14146_v50 = vld [vmem:[%s14545_s21 + $0x16f8] sm:$0xff] }
 0x2c2   : > { %9102 = vmatpush.bf16.msra.mxu3 %v14076_v52  ;;  %v14129_v52 = vld [vmem:[%s14545_s21 + $0x1670] sm:$0xff] }
 0x2c3   : > { %9064 = vmatpush.bf16.msra.mxu0 %v14051_v54  ;;  %v8858_v15 = vpop.f32.mrf.mxu0  ;;  %v14145_v54 = vld [vmem:[%s14545_s21 + $0x16f0] sm:$0xff] }
 0x2c4   : > { %9077 = vmatpush.bf16.msra.mxu1 %v14059_v55  ;;  %v8859_v16 = vadd.f32 %v8858_v15, %v15342_v42  ;;  %v8871_v18 = vpop.f32.mrf.mxu1  ;;  %v14120_v55 = vld [vmem:[%s14545_s21 + $0x1628] sm:$0xff]  ;;  %v14133_v15 = vld [vmem:[%s14545_s21 + $0x1690] sm:$0xff] }
 0x2c5   : > { %9090 = vmatpush.bf16.msra.mxu2 %v14067_v56  ;;  %v14128_v56 = vld [vmem:[%s14545_s21 + $0x1668] sm:$0xff] }
 0x2c6   : > { %9103 = vmatpush.bf16.msra.mxu3 %v14075_v61  ;;  %9065 = vmatmul.bf16.vlgmr.msra.gmra.mxu0 %v2189_v62  ;;  %v8872_v21 = vadd.f32 %v8871_v18, %v8859_v16  ;;  %v14119_v61 = vld [vmem:[%s14545_s21 + $0x1620] sm:$0xff]  ;;  %v14141_v16 = vld [vmem:[%s14545_s21 + $0x16d0] sm:$0xff]  ;;  %v14124_v18 = vld [vmem:[%s14545_s21 + $0x1648] sm:$0xff] }
 0x2c7   : > { %9109 = vmatpush.bf16.msrb.mxu0 %v14090_v57  ;;  %9078 = vmatmul.bf16.vlgmr.msra.gmra.mxu1 %v2190_v1  ;;  %v14136_v57 = vld [vmem:[%s14545_s21 + $0x16a8] sm:$0xff] }
 0x2c8   : > { %9122 = vmatpush.bf16.msrb.mxu1 %v14098_v58  ;;  %9091 = vmatmul.bf16.vlgmr.msra.gmra.mxu2 %v2191_v63  ;;  %v14144_v58 = vld [vmem:[%s14545_s21 + $0x16e8] sm:$0xff]  ;;  %v14127_v63 = vld [vmem:[%s14545_s21 + $0x1660] sm:$0xff] }
 0x2c9   : > { %9135 = vmatpush.bf16.msrb.mxu2 %v14106_v60  ;;  %9104 = vmatmul.bf16.vlgmr.msra.gmra.mxu3 %v2192_v2  ;;  %v14143_v2 = vld [vmem:[%s14545_s21 + $0x16e0] sm:$0xff] }
 0x2ca   : > { %9148 = vmatpush.bf16.msrb.mxu3 %v14114_v0  ;;  %v14135_v0 = vld [vmem:[%s14545_s21 + $0x16a0] sm:$0xff] }
 0x2cb   : > { %9110 = vmatpush.bf16.msrb.mxu0 %v14089_v3  ;;  %v8884_v26 = vpop.f32.mrf.mxu2  ;;  %v8860_v30 = vpop.f32.mrf.mxu0  ;;  %v14118_v3 = vld [vmem:[%s14545_s21 + $0x1618] sm:$0xff] }
 0x2cc   : > { %9123 = vmatpush.bf16.msrb.mxu1 %v14097_v4  ;;  %v8885_v27 = vadd.f32 %v8884_v26, %v8872_v21  ;;  %v8897_v29 = vpop.f32.mrf.mxu3  ;;  %v8873_v33 = vpop.f32.mrf.mxu1  ;;  %v14126_v4 = vld [vmem:[%s14545_s21 + $0x1658] sm:$0xff]  ;;  %v14140_v21 = vld [vmem:[%s14545_s21 + $0x16c8] sm:$0xff]  ;;  %v14139_v30 = vld [vmem:[%s14545_s21 + $0x16c0] sm:$0xff] }
 0x2cd   : > { %9136 = vmatpush.bf16.msrb.mxu2 %v14105_v5  ;;  %v14134_v5 = vld [vmem:[%s14545_s21 + $0x1698] sm:$0xff] }
 0x2ce   : > { %9149 = vmatpush.bf16.msrb.mxu3 %v14113_v10  ;;  %v8898_v31 = vadd.f32 %v8897_v29, %v8885_v27  ;;  %v14154_v26 = vld [vmem:[%s14545_s21 + $0x1738] sm:$0xff] }
 0x2cf   : > { %9111 = vmatpush.bf16.msrb.mxu0 %v14088_v11  ;;  %v14162_v27 = vld [vmem:[%s14545_s21 + $0x1778] sm:$0xff] }
 0x2d0   : > { %9124 = vmatpush.bf16.msrb.mxu1 %v14096_v12  ;;  %v14117_v12 = vld [vmem:[%s14545_s21 + $0x1610] sm:$0xff]  ;;  %v14170_v29 = vld [vmem:[%s14545_s21 + $0x17b8] sm:$0xff] }
 0x2d1   : > { %9137 = vmatpush.bf16.msrb.mxu2 %v14104_v13  ;;  %v14178_v33 = vld [vmem:[%s14545_s21 + $0x17f8] sm:$0xff] }
 0x2d2   : > { %9150 = vmatpush.bf16.msrb.mxu3 %v14112_v14  ;;  %v14125_v14 = vld [vmem:[%s14545_s21 + $0x1650] sm:$0xff] }
 0x2d3   : > { %9112 = vmatpush.bf16.msrb.mxu0 %v14087_v17  ;;  %v8886_v40 = vpop.f32.mrf.mxu2  ;;  %v14116_v17 = vld [vmem:[%s14545_s21 + $0x1608] sm:$0xff] }
 0x2d4   : > { %9125 = vmatpush.bf16.msrb.mxu1 %v14095_v19  ;;  %v8899_v42 = vpop.f32.mrf.mxu3  ;;  %v14132_v19 = vld [vmem:[%s14545_s21 + $0x1688] sm:$0xff] }
 0x2d5   : > { %9138 = vmatpush.bf16.msrb.mxu2 %v14103_v20  ;;  %v15446_v40 = vld [vmem:[#allocation1 + $0x36] sm:$0xff]  ;;  %v15450_v42 = vld [vmem:[#allocation1 + $0x3f] sm:$0xff] }
 0x2d6   : > { %9151 = vmatpush.bf16.msrb.mxu3 %v14111_v22 }
 0x2d7   : > { %9113 = vmatpush.bf16.msrb.mxu0 %v14086_v23  ;;  %v14115_v23 = vld [vmem:[%s14545_s21 + $0x1600] sm:$0xff] }
 0x2d8   : > { %9126 = vmatpush.bf16.msrb.mxu1 %v14094_v24  ;;  %v14123_v24 = vld [vmem:[%s14545_s21 + $0x1640] sm:$0xff] }
 0x2d9   : > { %9139 = vmatpush.bf16.msrb.mxu2 %v14102_v25  ;;  %v14131_v25 = vld [vmem:[%s14545_s21 + $0x1680] sm:$0xff] }
 0x2da   : > { %9152 = vmatpush.bf16.msrb.mxu3 %v14110_v28  ;;  %v196_v28 = vld [vmem:[%s14573_s23 + $0x60] sm:$0xff] }
 0x2db   : > { %9114 = vmatpush.bf16.msrb.mxu0 %v14085_v32  ;;  %v2201_v32 = vld [vmem:[#allocation1 + $0x12] sm:$0xff] }
 0x2dc   : > { %9127 = vmatpush.bf16.msrb.mxu1 %v14093_v34  ;;  %v2200_v34 = vld [vmem:[#allocation1 + $0x9] sm:$0xff] }
 0x2dd   : > { %9140 = vmatpush.bf16.msrb.mxu2 %v14101_v35  ;;  %v2202_v35 = vld [vmem:[#allocation1 + $0x1b] sm:$0xff] }
 0x2de   : > { %9153 = vmatpush.bf16.msrb.mxu3 %v14109_v36  ;;  %v14153_v36 = vld [vmem:[%s14545_s21 + $0x1730] sm:$0xff] }
 0x2df   : > { %9115 = vmatpush.bf16.msrb.mxu0 %v14084_v37  ;;  %v14161_v37 = vld [vmem:[%s14545_s21 + $0x1770] sm:$0xff] }
 0x2e0   : > { %9128 = vmatpush.bf16.msrb.mxu1 %v14092_v38  ;;  %v14169_v38 = vld [vmem:[%s14545_s21 + $0x17b0] sm:$0xff] }
 0x2e1   : > { %9141 = vmatpush.bf16.msrb.mxu2 %v14100_v39  ;;  %v15444_v39 = vld [vmem:[#allocation1 + $0x24] sm:$0xff] }
 0x2e2   : > { %9154 = vmatpush.bf16.msrb.mxu3 %v14108_v41  ;;  %v15448_v41 = vld [vmem:[#allocation1 + $0x2d] sm:$0xff] }
 0x2e3   : > { %9116 = vmatpush.bf16.msrb.mxu0 %v14083_v43  ;;  %v8910_v59 = vpop.f32.mrf.mxu0  ;;  %v14177_v43 = vld [vmem:[%s14545_s21 + $0x17f0] sm:$0xff] }
 0x2e4   : > { %9129 = vmatpush.bf16.msrb.mxu1 %v14091_v44  ;;  %v8911_v60 = vadd.f32 %v8910_v59, %v8898_v31  ;;  %v8923_v62 = vpop.f32.mrf.mxu1  ;;  %v2199_v31 = vld [vmem:[#allocation1] sm:$0xff]  ;;  %v14152_v44 = vld [vmem:[%s14545_s21 + $0x1728] sm:$0xff] }
 0x2e5   : > { %9142 = vmatpush.bf16.msrb.mxu2 %v14099_v45  ;;  %2208 = vst [vmem:[#allocation1] ss:$9 sm:$0xff] %v196_v28  ;;  %v14160_v45 = vld [vmem:[%s14545_s21 + $0x1768] sm:$0xff] }
 0x2e6   : > { %9155 = vmatpush.bf16.msrb.mxu3 %v14107_v49  ;;  %9117 = vmatmul.bf16.vlgmr.msrb.gmra.mxu0 %v15364_v6  ;;  %v8924_v1 = vadd.f32 %v8923_v62, %v8911_v60 }
 0x2e7   : > { %9161 = vmatpush.bf16.msra.mxu0 %v14122_v46  ;;  %9130 = vmatmul.bf16.vlgmr.msrb.gmra.mxu1 %v15368_v8  ;;  %v14142_v8 = vld [vmem:[%s14545_s21 + $0x16d8] sm:$0xff]  ;;  %v14168_v46 = vld [vmem:[%s14545_s21 + $0x17a8] sm:$0xff] }
 0x2e8   : > { %9174 = vmatpush.bf16.msra.mxu1 %v14130_v47  ;;  %9143 = vmatmul.bf16.vlgmr.msrb.gmra.mxu2 %v15366_v7  ;;  %v14176_v47 = vld [vmem:[%s14545_s21 + $0x17e8] sm:$0xff] }
 0x2e9   : > { %9187 = vmatpush.bf16.msra.mxu2 %v14138_v48  ;;  %9156 = vmatmul.bf16.vlgmr.msrb.gmra.mxu3 %v15370_v9 }
 0x2ea   : > { %9200 = vmatpush.bf16.msra.mxu3 %v14146_v50  ;;  %v14151_v50 = vld [vmem:[%s14545_s21 + $0x1720] sm:$0xff] }
 0x2eb   : > { %9162 = vmatpush.bf16.msra.mxu0 %v14121_v51  ;;  %v8936_v6 = vpop.f32.mrf.mxu2  ;;  %v8912_v10 = vpop.f32.mrf.mxu0 }
 0x2ec   : > { %9175 = vmatpush.bf16.msra.mxu1 %v14129_v52  ;;  %v8937_v7 = vadd.f32 %v8936_v6, %v8924_v1  ;;  %v8949_v9 = vpop.f32.mrf.mxu3  ;;  %v8925_v13 = vpop.f32.mrf.mxu1  ;;  %v14159_v52 = vld [vmem:[%s14545_s21 + $0x1760] sm:$0xff]  ;;  %v14149_v1 = vld [vmem:[%s14545_s21 + $0x1710] sm:$0xff]  ;;  %v14148_v6 = vld [vmem:[%s14545_s21 + $0x1708] sm:$0xff] }
 0x2ed   : > { %9188 = vmatpush.bf16.msra.mxu2 %v14137_v53  ;;  %v14167_v53 = vld [vmem:[%s14545_s21 + $0x17a0] sm:$0xff]  ;;  %v14172_v10 = vld [vmem:[%s14545_s21 + $0x17c8] sm:$0xff] }
 0x2ee   : > { %9201 = vmatpush.bf16.msra.mxu3 %v14145_v54  ;;  %v15422_v11 = vadd.f32 %v8949_v9, %v8937_v7  ;;  %v14156_v7 = vld [vmem:[%s14545_s21 + $0x1748] sm:$0xff]  ;;  %v14155_v13 = vld [vmem:[%s14545_s21 + $0x1740] sm:$0xff] }
 0x2ef   : > { %9163 = vmatpush.bf16.msra.mxu0 %v14120_v55  ;;  %v14175_v55 = vld [vmem:[%s14545_s21 + $0x17e0] sm:$0xff] }
 0x2f0   : > { %9176 = vmatpush.bf16.msra.mxu1 %v14128_v56  ;;  %v14150_v56 = vld [vmem:[%s14545_s21 + $0x1718] sm:$0xff] }
 0x2f1   : > { %9189 = vmatpush.bf16.msra.mxu2 %v14136_v57  ;;  %v14158_v57 = vld [vmem:[%s14545_s21 + $0x1758] sm:$0xff] }
 0x2f2   : > { %9202 = vmatpush.bf16.msra.mxu3 %v14144_v58  ;;  %v14166_v58 = vld [vmem:[%s14545_s21 + $0x1798] sm:$0xff] }
 0x2f3   : > { %9164 = vmatpush.bf16.msra.mxu0 %v14119_v61  ;;  %v8938_v20 = vpop.f32.mrf.mxu2  ;;  %v14174_v61 = vld [vmem:[%s14545_s21 + $0x17d8] sm:$0xff] }
 0x2f4   : > { %9177 = vmatpush.bf16.msra.mxu1 %v14127_v63  ;;  %v8951_v22 = vpop.f32.mrf.mxu3  ;;  %v14185_v20 = vld [vmem:[%s14545_s21 + $0x1830] sm:$0xff] }
 0x2f5   : > { %9190 = vmatpush.bf16.msra.mxu2 %v14135_v0  ;;  %v14201_v22 = vld [vmem:[%s14545_s21 + $0x18b0] sm:$0xff] }
 0x2f6   : > { %9203 = vmatpush.bf16.msra.mxu3 %v14143_v2 }
 0x2f7   : > { %9165 = vmatpush.bf16.msra.mxu0 %v14118_v3  ;;  %v14157_v3 = vld [vmem:[%s14545_s21 + $0x1750] sm:$0xff] }
 0x2f8   : > { %9178 = vmatpush.bf16.msra.mxu1 %v14126_v4  ;;  %v14165_v4 = vld [vmem:[%s14545_s21 + $0x1790] sm:$0xff] }
 0x2f9   : > { %9191 = vmatpush.bf16.msra.mxu2 %v14134_v5  ;;  %v14173_v5 = vld [vmem:[%s14545_s21 + $0x17d0] sm:$0xff] }
 0x2fa   : > { %9204 = vmatpush.bf16.msra.mxu3 %v14142_v8  ;;  %v14164_v8 = vld [vmem:[%s14545_s21 + $0x1788] sm:$0xff] }
 0x2fb   : > { %9166 = vmatpush.bf16.msra.mxu0 %v14117_v12  ;;  %v14147_v12 = vld [vmem:[%s14545_s21 + $0x1700] sm:$0xff] }
 0x2fc   : > { %9179 = vmatpush.bf16.msra.mxu1 %v14125_v14  ;;  %v14163_v14 = vld [vmem:[%s14545_s21 + $0x1780] sm:$0xff] }
 0x2fd   : > { %9192 = vmatpush.bf16.msra.mxu2 %v14133_v15  ;;  %v14186_v15 = vld [vmem:[%s14545_s21 + $0x1838] sm:$0xff] }
 0x2fe   : > { %9205 = vmatpush.bf16.msra.mxu3 %v14141_v16  ;;  %v14194_v16 = vld [vmem:[%s14545_s21 + $0x1878] sm:$0xff] }
 0x2ff   : > { %9167 = vmatpush.bf16.msra.mxu0 %v14116_v17  ;;  %v14202_v17 = vld [vmem:[%s14545_s21 + $0x18b8] sm:$0xff] }
 0x300   : > { %9180 = vmatpush.bf16.msra.mxu1 %v14124_v18  ;;  %v14171_v18 = vld [vmem:[%s14545_s21 + $0x17c0] sm:$0xff] }
 0x301   : > { %9193 = vmatpush.bf16.msra.mxu2 %v14132_v19  ;;  %v14210_v19 = vld [vmem:[%s14545_s21 + $0x18f8] sm:$0xff] }
 0x302   : > { %9206 = vmatpush.bf16.msra.mxu3 %v14140_v21  ;;  %v14193_v21 = vld [vmem:[%s14545_s21 + $0x1870] sm:$0xff] }
 0x303   : > { %9168 = vmatpush.bf16.msra.mxu0 %v14115_v23  ;;  %v8962_v48 = vpop.f32.mrf.mxu0  ;;  %v14209_v23 = vld [vmem:[%s14545_s21 + $0x18f0] sm:$0xff] }
 0x304   : > { %9181 = vmatpush.bf16.msra.mxu1 %v14123_v24  ;;  %v8963_v49 = vadd.f32 %v8962_v48, %v15422_v11  ;;  %v8975_v51 = vpop.f32.mrf.mxu1  ;;  %v14184_v24 = vld [vmem:[%s14545_s21 + $0x1828] sm:$0xff]  ;;  %v14197_v48 = vld [vmem:[%s14545_s21 + $0x1890] sm:$0xff] }
 0x305   : > { %9194 = vmatpush.bf16.msra.mxu2 %v14131_v25  ;;  %v14192_v25 = vld [vmem:[%s14545_s21 + $0x1868] sm:$0xff] }
 0x306   : > { %9207 = vmatpush.bf16.msra.mxu3 %v14139_v30  ;;  %9169 = vmatmul.bf16.vlgmr.msra.gmra.mxu0 %v2199_v31  ;;  %v8976_v54 = vadd.f32 %v8975_v51, %v8963_v49  ;;  %v14183_v30 = vld [vmem:[%s14545_s21 + $0x1820] sm:$0xff]  ;;  %v14205_v49 = vld [vmem:[%s14545_s21 + $0x18d0] sm:$0xff]  ;;  %v14188_v51 = vld [vmem:[%s14545_s21 + $0x1848] sm:$0xff] }
 0x307   : > { %9213 = vmatpush.bf16.msrb.mxu0 %v14154_v26  ;;  %9182 = vmatmul.bf16.vlgmr.msra.gmra.mxu1 %v2200_v34  ;;  %v14200_v26 = vld [vmem:[%s14545_s21 + $0x18a8] sm:$0xff] }
 0x308   : > { %9226 = vmatpush.bf16.msrb.mxu1 %v14162_v27  ;;  %9195 = vmatmul.bf16.vlgmr.msra.gmra.mxu2 %v2201_v32  ;;  %v14208_v27 = vld [vmem:[%s14545_s21 + $0x18e8] sm:$0xff]  ;;  %v14191_v32 = vld [vmem:[%s14545_s21 + $0x1860] sm:$0xff] }
 0x309   : > { %9239 = vmatpush.bf16.msrb.mxu2 %v14170_v29  ;;  %9208 = vmatmul.bf16.vlgmr.msra.gmra.mxu3 %v2202_v35  ;;  %v14207_v35 = vld [vmem:[%s14545_s21 + $0x18e0] sm:$0xff] }
 0x30a   : > { %9252 = vmatpush.bf16.msrb.mxu3 %v14178_v33  ;;  %v14199_v33 = vld [vmem:[%s14545_s21 + $0x18a0] sm:$0xff] }
 0x30b   : > { %9214 = vmatpush.bf16.msrb.mxu0 %v14153_v36  ;;  %v8988_v59 = vpop.f32.mrf.mxu2  ;;  %v8964_v63 = vpop.f32.mrf.mxu0  ;;  %v14182_v36 = vld [vmem:[%s14545_s21 + $0x1818] sm:$0xff] }
 0x30c   : > { %9227 = vmatpush.bf16.msrb.mxu1 %v14161_v37  ;;  %v8989_v60 = vadd.f32 %v8988_v59, %v8976_v54  ;;  %v9001_v62 = vpop.f32.mrf.mxu3  ;;  %v8977_v2 = vpop.f32.mrf.mxu1  ;;  %v14190_v37 = vld [vmem:[%s14545_s21 + $0x1858] sm:$0xff]  ;;  %v14204_v54 = vld [vmem:[%s14545_s21 + $0x18c8] sm:$0xff]  ;;  %v14203_v63 = vld [vmem:[%s14545_s21 + $0x18c0] sm:$0xff] }
 0x30d   : > { %9240 = vmatpush.bf16.msrb.mxu2 %v14169_v38  ;;  %v14198_v38 = vld [vmem:[%s14545_s21 + $0x1898] sm:$0xff] }
 0x30e   : > { %9253 = vmatpush.bf16.msrb.mxu3 %v14177_v43  ;;  %v9002_v0 = vadd.f32 %v9001_v62, %v8989_v60  ;;  %v14218_v59 = vld [vmem:[%s14545_s21 + $0x1938] sm:$0xff] }
 0x30f   : > { %9215 = vmatpush.bf16.msrb.mxu0 %v14152_v44  ;;  %v14226_v60 = vld [vmem:[%s14545_s21 + $0x1978] sm:$0xff] }
 0x310   : > { %9228 = vmatpush.bf16.msrb.mxu1 %v14160_v45  ;;  %v14181_v45 = vld [vmem:[%s14545_s21 + $0x1810] sm:$0xff]  ;;  %v14234_v62 = vld [vmem:[%s14545_s21 + $0x19b8] sm:$0xff] }
 0x311   : > { %9241 = vmatpush.bf16.msrb.mxu2 %v14168_v46  ;;  %v14242_v2 = vld [vmem:[%s14545_s21 + $0x19f8] sm:$0xff] }
 0x312   : > { %9254 = vmatpush.bf16.msrb.mxu3 %v14176_v47  ;;  %v14189_v47 = vld [vmem:[%s14545_s21 + $0x1850] sm:$0xff] }
 0x313   : > { %9216 = vmatpush.bf16.msrb.mxu0 %v14151_v50  ;;  %v8990_v9 = vpop.f32.mrf.mxu2  ;;  %v14180_v50 = vld [vmem:[%s14545_s21 + $0x1808] sm:$0xff] }
 0x314   : > { %9229 = vmatpush.bf16.msrb.mxu1 %v14159_v52  ;;  %v9003_v11 = vpop.f32.mrf.mxu3  ;;  %v14196_v52 = vld [vmem:[%s14545_s21 + $0x1888] sm:$0xff] }
 0x315   : > { %9242 = vmatpush.bf16.msrb.mxu2 %v14167_v53  ;;  %v15526_v9 = vld [vmem:[#allocation1 + $0x36] sm:$0xff]  ;;  %v15530_v11 = vld [vmem:[#allocation1 + $0x3f] sm:$0xff] }
 0x316   : > { %9255 = vmatpush.bf16.msrb.mxu3 %v14175_v55 }
 0x317   : > { %9217 = vmatpush.bf16.msrb.mxu0 %v14150_v56  ;;  %v14179_v56 = vld [vmem:[%s14545_s21 + $0x1800] sm:$0xff] }
 0x318   : > { %9230 = vmatpush.bf16.msrb.mxu1 %v14158_v57  ;;  %v14187_v57 = vld [vmem:[%s14545_s21 + $0x1840] sm:$0xff] }
 0x319   : > { %9243 = vmatpush.bf16.msrb.mxu2 %v14166_v58  ;;  %v14195_v58 = vld [vmem:[%s14545_s21 + $0x1880] sm:$0xff] }
 0x31a   : > { %9256 = vmatpush.bf16.msrb.mxu3 %v14174_v61  ;;  %v197_v61 = vld [vmem:[%s14573_s23 + $0x68] sm:$0xff] }
 0x31b   : > { %9218 = vmatpush.bf16.msrb.mxu0 %v14149_v1  ;;  %v2211_v1 = vld [vmem:[#allocation1 + $0x12] sm:$0xff] }
 0x31c   : > { %9231 = vmatpush.bf16.msrb.mxu1 %v14157_v3  ;;  %v2210_v3 = vld [vmem:[#allocation1 + $0x9] sm:$0xff] }
 0x31d   : > { %9244 = vmatpush.bf16.msrb.mxu2 %v14165_v4  ;;  %v2212_v4 = vld [vmem:[#allocation1 + $0x1b] sm:$0xff] }
 0x31e   : > { %9257 = vmatpush.bf16.msrb.mxu3 %v14173_v5  ;;  %v14217_v5 = vld [vmem:[%s14545_s21 + $0x1930] sm:$0xff] }
 0x31f   : > { %9219 = vmatpush.bf16.msrb.mxu0 %v14148_v6  ;;  %v14225_v6 = vld [vmem:[%s14545_s21 + $0x1970] sm:$0xff] }
 0x320   : > { %9232 = vmatpush.bf16.msrb.mxu1 %v14156_v7  ;;  %v14233_v7 = vld [vmem:[%s14545_s21 + $0x19b0] sm:$0xff] }
 0x321   : > { %9245 = vmatpush.bf16.msrb.mxu2 %v14164_v8  ;;  %v15524_v8 = vld [vmem:[#allocation1 + $0x24] sm:$0xff] }
 0x322   : > { %9258 = vmatpush.bf16.msrb.mxu3 %v14172_v10  ;;  %v15528_v10 = vld [vmem:[#allocation1 + $0x2d] sm:$0xff] }
 0x323   : > { %9220 = vmatpush.bf16.msrb.mxu0 %v14147_v12  ;;  %v9014_v28 = vpop.f32.mrf.mxu0  ;;  %v14241_v12 = vld [vmem:[%s14545_s21 + $0x19f0] sm:$0xff] }
 0x324   : > { %9233 = vmatpush.bf16.msrb.mxu1 %v14155_v13  ;;  %v9015_v29 = vadd.f32 %v9014_v28, %v9002_v0  ;;  %v9027_v31 = vpop.f32.mrf.mxu1  ;;  %v2209_v0 = vld [vmem:[#allocation1] sm:$0xff]  ;;  %v14216_v13 = vld [vmem:[%s14545_s21 + $0x1928] sm:$0xff] }
 0x325   : > { %9246 = vmatpush.bf16.msrb.mxu2 %v14163_v14  ;;  %2218 = vst [vmem:[#allocation1] ss:$9 sm:$0xff] %v197_v61  ;;  %v14224_v14 = vld [vmem:[%s14545_s21 + $0x1968] sm:$0xff] }
 0x326   : > { %9259 = vmatpush.bf16.msrb.mxu3 %v14171_v18  ;;  %9221 = vmatmul.bf16.vlgmr.msrb.gmra.mxu0 %v15444_v39  ;;  %v9028_v34 = vadd.f32 %v9027_v31, %v9015_v29 }
 0x327   : > { %9265 = vmatpush.bf16.msra.mxu0 %v14186_v15  ;;  %9234 = vmatmul.bf16.vlgmr.msrb.gmra.mxu1 %v15448_v41  ;;  %v14206_v41 = vld [vmem:[%s14545_s21 + $0x18d8] sm:$0xff]  ;;  %v14232_v15 = vld [vmem:[%s14545_s21 + $0x19a8] sm:$0xff] }
 0x328   : > { %9278 = vmatpush.bf16.msra.mxu1 %v14194_v16  ;;  %9247 = vmatmul.bf16.vlgmr.msrb.gmra.mxu2 %v15446_v40  ;;  %v14240_v16 = vld [vmem:[%s14545_s21 + $0x19e8] sm:$0xff] }
 0x329   : > { %9291 = vmatpush.bf16.msra.mxu2 %v14202_v17  ;;  %9260 = vmatmul.bf16.vlgmr.msrb.gmra.mxu3 %v15450_v42 }
 0x32a   : > { %9304 = vmatpush.bf16.msra.mxu3 %v14210_v19  ;;  %v14215_v19 = vld [vmem:[%s14545_s21 + $0x1920] sm:$0xff] }
 0x32b   : > { %9266 = vmatpush.bf16.msra.mxu0 %v14185_v20  ;;  %v9040_v39 = vpop.f32.mrf.mxu2  ;;  %v9016_v43 = vpop.f32.mrf.mxu0 }
 0x32c   : > { %9279 = vmatpush.bf16.msra.mxu1 %v14193_v21  ;;  %v9041_v40 = vadd.f32 %v9040_v39, %v9028_v34  ;;  %v9053_v42 = vpop.f32.mrf.mxu3  ;;  %v9029_v46 = vpop.f32.mrf.mxu1  ;;  %v14223_v21 = vld [vmem:[%s14545_s21 + $0x1960] sm:$0xff]  ;;  %v14213_v34 = vld [vmem:[%s14545_s21 + $0x1910] sm:$0xff]  ;;  %v14212_v39 = vld [vmem:[%s14545_s21 + $0x1908] sm:$0xff] }
 0x32d   : > { %9292 = vmatpush.bf16.msra.mxu2 %v14201_v22  ;;  %v14231_v22 = vld [vmem:[%s14545_s21 + $0x19a0] sm:$0xff]  ;;  %v14236_v43 = vld [vmem:[%s14545_s21 + $0x19c8] sm:$0xff] }
 0x32e   : > { %9305 = vmatpush.bf16.msra.mxu3 %v14209_v23  ;;  %v15502_v44 = vadd.f32 %v9053_v42, %v9041_v40  ;;  %v14220_v40 = vld [vmem:[%s14545_s21 + $0x1948] sm:$0xff]  ;;  %v14219_v46 = vld [vmem:[%s14545_s21 + $0x1940] sm:$0xff] }
 0x32f   : > { %9267 = vmatpush.bf16.msra.mxu0 %v14184_v24  ;;  %v14239_v24 = vld [vmem:[%s14545_s21 + $0x19e0] sm:$0xff] }
 0x330   : > { %9280 = vmatpush.bf16.msra.mxu1 %v14192_v25  ;;  %v14214_v25 = vld [vmem:[%s14545_s21 + $0x1918] sm:$0xff] }
 0x331   : > { %9293 = vmatpush.bf16.msra.mxu2 %v14200_v26  ;;  %v14222_v26 = vld [vmem:[%s14545_s21 + $0x1958] sm:$0xff] }
 0x332   : > { %9306 = vmatpush.bf16.msra.mxu3 %v14208_v27  ;;  %v14230_v27 = vld [vmem:[%s14545_s21 + $0x1998] sm:$0xff] }
 0x333   : > { %9268 = vmatpush.bf16.msra.mxu0 %v14183_v30  ;;  %v9042_v53 = vpop.f32.mrf.mxu2  ;;  %v14238_v30 = vld [vmem:[%s14545_s21 + $0x19d8] sm:$0xff] }
 0x334   : > { %9281 = vmatpush.bf16.msra.mxu1 %v14191_v32  ;;  %v9055_v55 = vpop.f32.mrf.mxu3  ;;  %v14249_v53 = vld [vmem:[%s14545_s21 + $0x1a30] sm:$0xff] }
 0x335   : > { %9294 = vmatpush.bf16.msra.mxu2 %v14199_v33  ;;  %v14265_v55 = vld [vmem:[%s14545_s21 + $0x1ab0] sm:$0xff] }
 0x336   : > { %9307 = vmatpush.bf16.msra.mxu3 %v14207_v35 }
 0x337   : > { %9269 = vmatpush.bf16.msra.mxu0 %v14182_v36  ;;  %v14221_v36 = vld [vmem:[%s14545_s21 + $0x1950] sm:$0xff] }
 0x338   : > { %9282 = vmatpush.bf16.msra.mxu1 %v14190_v37  ;;  %v14229_v37 = vld [vmem:[%s14545_s21 + $0x1990] sm:$0xff] }
 0x339   : > { %9295 = vmatpush.bf16.msra.mxu2 %v14198_v38  ;;  %v14237_v38 = vld [vmem:[%s14545_s21 + $0x19d0] sm:$0xff] }
 0x33a   : > { %9308 = vmatpush.bf16.msra.mxu3 %v14206_v41  ;;  %v14228_v41 = vld [vmem:[%s14545_s21 + $0x1988] sm:$0xff] }
 0x33b   : > { %9270 = vmatpush.bf16.msra.mxu0 %v14181_v45  ;;  %v14211_v45 = vld [vmem:[%s14545_s21 + $0x1900] sm:$0xff] }
 0x33c   : > { %9283 = vmatpush.bf16.msra.mxu1 %v14189_v47  ;;  %v14227_v47 = vld [vmem:[%s14545_s21 + $0x1980] sm:$0xff] }
 0x33d   : > { %9296 = vmatpush.bf16.msra.mxu2 %v14197_v48  ;;  %v14250_v48 = vld [vmem:[%s14545_s21 + $0x1a38] sm:$0xff] }
 0x33e   : > { %9309 = vmatpush.bf16.msra.mxu3 %v14205_v49  ;;  %v14258_v49 = vld [vmem:[%s14545_s21 + $0x1a78] sm:$0xff] }
 0x33f   : > { %9271 = vmatpush.bf16.msra.mxu0 %v14180_v50  ;;  %v14266_v50 = vld [vmem:[%s14545_s21 + $0x1ab8] sm:$0xff] }
 0x340   : > { %9284 = vmatpush.bf16.msra.mxu1 %v14188_v51  ;;  %v14235_v51 = vld [vmem:[%s14545_s21 + $0x19c0] sm:$0xff] }
 0x341   : > { %9297 = vmatpush.bf16.msra.mxu2 %v14196_v52  ;;  %v14274_v52 = vld [vmem:[%s14545_s21 + $0x1af8] sm:$0xff] }
 0x342   : > { %9310 = vmatpush.bf16.msra.mxu3 %v14204_v54  ;;  %v14257_v54 = vld [vmem:[%s14545_s21 + $0x1a70] sm:$0xff] }
 0x343   : > { %9272 = vmatpush.bf16.msra.mxu0 %v14179_v56  ;;  %v9066_v17 = vpop.f32.mrf.mxu0  ;;  %v14273_v56 = vld [vmem:[%s14545_s21 + $0x1af0] sm:$0xff] }
 0x344   : > { %9285 = vmatpush.bf16.msra.mxu1 %v14187_v57  ;;  %v9067_v18 = vadd.f32 %v9066_v17, %v15502_v44  ;;  %v9079_v20 = vpop.f32.mrf.mxu1  ;;  %v14248_v57 = vld [vmem:[%s14545_s21 + $0x1a28] sm:$0xff]  ;;  %v14261_v17 = vld [vmem:[%s14545_s21 + $0x1a90] sm:$0xff] }
 0x345   : > { %9298 = vmatpush.bf16.msra.mxu2 %v14195_v58  ;;  %v14256_v58 = vld [vmem:[%s14545_s21 + $0x1a68] sm:$0xff] }
 0x346   : > { %9311 = vmatpush.bf16.msra.mxu3 %v14203_v63  ;;  %9273 = vmatmul.bf16.vlgmr.msra.gmra.mxu0 %v2209_v0  ;;  %v9080_v23 = vadd.f32 %v9079_v20, %v9067_v18  ;;  %v14247_v63 = vld [vmem:[%s14545_s21 + $0x1a20] sm:$0xff]  ;;  %v14269_v18 = vld [vmem:[%s14545_s21 + $0x1ad0] sm:$0xff]  ;;  %v14252_v20 = vld [vmem:[%s14545_s21 + $0x1a48] sm:$0xff] }
 0x347   : > { %9317 = vmatpush.bf16.msrb.mxu0 %v14218_v59  ;;  %9286 = vmatmul.bf16.vlgmr.msra.gmra.mxu1 %v2210_v3  ;;  %v14264_v59 = vld [vmem:[%s14545_s21 + $0x1aa8] sm:$0xff] }
 0x348   : > { %9330 = vmatpush.bf16.msrb.mxu1 %v14226_v60  ;;  %9299 = vmatmul.bf16.vlgmr.msra.gmra.mxu2 %v2211_v1  ;;  %v14272_v60 = vld [vmem:[%s14545_s21 + $0x1ae8] sm:$0xff]  ;;  %v14255_v1 = vld [vmem:[%s14545_s21 + $0x1a60] sm:$0xff] }
 0x349   : > { %9343 = vmatpush.bf16.msrb.mxu2 %v14234_v62  ;;  %9312 = vmatmul.bf16.vlgmr.msra.gmra.mxu3 %v2212_v4  ;;  %v14271_v4 = vld [vmem:[%s14545_s21 + $0x1ae0] sm:$0xff] }
 0x34a   : > { %9356 = vmatpush.bf16.msrb.mxu3 %v14242_v2  ;;  %v14263_v2 = vld [vmem:[%s14545_s21 + $0x1aa0] sm:$0xff] }
 0x34b   : > { %9318 = vmatpush.bf16.msrb.mxu0 %v14217_v5  ;;  %v9092_v28 = vpop.f32.mrf.mxu2  ;;  %v9068_v32 = vpop.f32.mrf.mxu0  ;;  %v14246_v5 = vld [vmem:[%s14545_s21 + $0x1a18] sm:$0xff] }
 0x34c   : > { %9331 = vmatpush.bf16.msrb.mxu1 %v14225_v6  ;;  %v9093_v29 = vadd.f32 %v9092_v28, %v9080_v23  ;;  %v9105_v31 = vpop.f32.mrf.mxu3  ;;  %v9081_v35 = vpop.f32.mrf.mxu1  ;;  %v14254_v6 = vld [vmem:[%s14545_s21 + $0x1a58] sm:$0xff]  ;;  %v14268_v23 = vld [vmem:[%s14545_s21 + $0x1ac8] sm:$0xff]  ;;  %v14267_v32 = vld [vmem:[%s14545_s21 + $0x1ac0] sm:$0xff] }
 0x34d   : > { %9344 = vmatpush.bf16.msrb.mxu2 %v14233_v7  ;;  %v14262_v7 = vld [vmem:[%s14545_s21 + $0x1a98] sm:$0xff] }
 0x34e   : > { %9357 = vmatpush.bf16.msrb.mxu3 %v14241_v12  ;;  %v9106_v33 = vadd.f32 %v9105_v31, %v9093_v29  ;;  %v14282_v28 = vld [vmem:[%s14545_s21 + $0x1b38] sm:$0xff] }
 0x34f   : > { %9319 = vmatpush.bf16.msrb.mxu0 %v14216_v13  ;;  %v14290_v29 = vld [vmem:[%s14545_s21 + $0x1b78] sm:$0xff] }
 0x350   : > { %9332 = vmatpush.bf16.msrb.mxu1 %v14224_v14  ;;  %v14245_v14 = vld [vmem:[%s14545_s21 + $0x1a10] sm:$0xff]  ;;  %v14298_v31 = vld [vmem:[%s14545_s21 + $0x1bb8] sm:$0xff] }
 0x351   : > { %9345 = vmatpush.bf16.msrb.mxu2 %v14232_v15  ;;  %v14306_v35 = vld [vmem:[%s14545_s21 + $0x1bf8] sm:$0xff] }
 0x352   : > { %9358 = vmatpush.bf16.msrb.mxu3 %v14240_v16  ;;  %v14253_v16 = vld [vmem:[%s14545_s21 + $0x1a50] sm:$0xff] }
 0x353   : > { %9320 = vmatpush.bf16.msrb.mxu0 %v14215_v19  ;;  %v9094_v42 = vpop.f32.mrf.mxu2  ;;  %v14244_v19 = vld [vmem:[%s14545_s21 + $0x1a08] sm:$0xff] }
 0x354   : > { %9333 = vmatpush.bf16.msrb.mxu1 %v14223_v21  ;;  %v9107_v44 = vpop.f32.mrf.mxu3  ;;  %v14260_v21 = vld [vmem:[%s14545_s21 + $0x1a88] sm:$0xff] }
 0x355   : > { %9346 = vmatpush.bf16.msrb.mxu2 %v14231_v22  ;;  %v15606_v42 = vld [vmem:[#allocation1 + $0x36] sm:$0xff]  ;;  %v15610_v44 = vld [vmem:[#allocation1 + $0x3f] sm:$0xff] }
 0x356   : > { %9359 = vmatpush.bf16.msrb.mxu3 %v14239_v24 }
 0x357   : > { %9321 = vmatpush.bf16.msrb.mxu0 %v14214_v25  ;;  %v14243_v25 = vld [vmem:[%s14545_s21 + $0x1a00] sm:$0xff] }
 0x358   : > { %9334 = vmatpush.bf16.msrb.mxu1 %v14222_v26  ;;  %v14251_v26 = vld [vmem:[%s14545_s21 + $0x1a40] sm:$0xff] }
 0x359   : > { %9347 = vmatpush.bf16.msrb.mxu2 %v14230_v27  ;;  %v14259_v27 = vld [vmem:[%s14545_s21 + $0x1a80] sm:$0xff] }
 0x35a   : > { %9360 = vmatpush.bf16.msrb.mxu3 %v14238_v30  ;;  %v198_v30 = vld [vmem:[%s14573_s23 + $0x70] sm:$0x3f] }
 0x35b   : > { %9322 = vmatpush.bf16.msrb.mxu0 %v14213_v34  ;;  %v2221_v34 = vld [vmem:[#allocation1 + $0x12] sm:$0xff] }
 0x35c   : > { %9335 = vmatpush.bf16.msrb.mxu1 %v14221_v36  ;;  %v2220_v36 = vld [vmem:[#allocation1 + $0x9] sm:$0xff] }
 0x35d   : > { %9348 = vmatpush.bf16.msrb.mxu2 %v14229_v37  ;;  %v2222_v37 = vld [vmem:[#allocation1 + $0x1b] sm:$0xff] }
 0x35e   : > { %9361 = vmatpush.bf16.msrb.mxu3 %v14237_v38  ;;  %v14281_v38 = vld [vmem:[%s14545_s21 + $0x1b30] sm:$0xff] }
 0x35f   : > { %9323 = vmatpush.bf16.msrb.mxu0 %v14212_v39  ;;  %v14289_v39 = vld [vmem:[%s14545_s21 + $0x1b70] sm:$0xff] }
 0x360   : > { %9336 = vmatpush.bf16.msrb.mxu1 %v14220_v40  ;;  %v14297_v40 = vld [vmem:[%s14545_s21 + $0x1bb0] sm:$0xff] }
 0x361   : > { %9349 = vmatpush.bf16.msrb.mxu2 %v14228_v41  ;;  %v15604_v41 = vld [vmem:[#allocation1 + $0x24] sm:$0xff] }
 0x362   : > { %9362 = vmatpush.bf16.msrb.mxu3 %v14236_v43  ;;  %v15608_v43 = vld [vmem:[#allocation1 + $0x2d] sm:$0xff] }
 0x363   : > { %9324 = vmatpush.bf16.msrb.mxu0 %v14211_v45  ;;  %v9118_v61 = vpop.f32.mrf.mxu0  ;;  %v14305_v45 = vld [vmem:[%s14545_s21 + $0x1bf0] sm:$0xff] }
 0x364   : > { %9337 = vmatpush.bf16.msrb.mxu1 %v14219_v46  ;;  %v9119_v62 = vadd.f32 %v9118_v61, %v9106_v33  ;;  %v9131_v0 = vpop.f32.mrf.mxu1  ;;  %v2219_v33 = vld [vmem:[#allocation1] sm:$0xff]  ;;  %v14280_v46 = vld [vmem:[%s14545_s21 + $0x1b28] sm:$0xff] }
 0x365   : > { %9350 = vmatpush.bf16.msrb.mxu2 %v14227_v47  ;;  %2228 = vst [vmem:[#allocation1] ss:$9 sm:$0xff] %v198_v30  ;;  %v14288_v47 = vld [vmem:[%s14545_s21 + $0x1b68] sm:$0xff] }
 0x366   : > { %9363 = vmatpush.bf16.msrb.mxu3 %v14235_v51  ;;  %9325 = vmatmul.bf16.vlgmr.msrb.gmra.mxu0 %v15524_v8  ;;  %v9132_v3 = vadd.f32 %v9131_v0, %v9119_v62 }
 0x367   : > { %9369 = vmatpush.bf16.msra.mxu0 %v14250_v48  ;;  %9338 = vmatmul.bf16.vlgmr.msrb.gmra.mxu1 %v15528_v10  ;;  %v14270_v10 = vld [vmem:[%s14545_s21 + $0x1ad8] sm:$0xff]  ;;  %v14296_v48 = vld [vmem:[%s14545_s21 + $0x1ba8] sm:$0xff] }
 0x368   : > { %9382 = vmatpush.bf16.msra.mxu1 %v14258_v49  ;;  %9351 = vmatmul.bf16.vlgmr.msrb.gmra.mxu2 %v15526_v9  ;;  %v14304_v49 = vld [vmem:[%s14545_s21 + $0x1be8] sm:$0xff] }
 0x369   : > { %9395 = vmatpush.bf16.msra.mxu2 %v14266_v50  ;;  %9364 = vmatmul.bf16.vlgmr.msrb.gmra.mxu3 %v15530_v11 }
 0x36a   : > { %9408 = vmatpush.bf16.msra.mxu3 %v14274_v52  ;;  %v14279_v52 = vld [vmem:[%s14545_s21 + $0x1b20] sm:$0xff] }
 0x36b   : > { %9370 = vmatpush.bf16.msra.mxu0 %v14249_v53  ;;  %v9144_v8 = vpop.f32.mrf.mxu2  ;;  %v9120_v12 = vpop.f32.mrf.mxu0 }
 0x36c   : > { %9383 = vmatpush.bf16.msra.mxu1 %v14257_v54  ;;  %v9145_v9 = vadd.f32 %v9144_v8, %v9132_v3  ;;  %v9157_v11 = vpop.f32.mrf.mxu3  ;;  %v9133_v15 = vpop.f32.mrf.mxu1  ;;  %v14287_v54 = vld [vmem:[%s14545_s21 + $0x1b60] sm:$0xff]  ;;  %v14277_v3 = vld [vmem:[%s14545_s21 + $0x1b10] sm:$0xff]  ;;  %v14276_v8 = vld [vmem:[%s14545_s21 + $0x1b08] sm:$0xff] }
 0x36d   : > { %9396 = vmatpush.bf16.msra.mxu2 %v14265_v55  ;;  %v14295_v55 = vld [vmem:[%s14545_s21 + $0x1ba0] sm:$0xff]  ;;  %v14300_v12 = vld [vmem:[%s14545_s21 + $0x1bc8] sm:$0xff] }
 0x36e   : > { %9409 = vmatpush.bf16.msra.mxu3 %v14273_v56  ;;  %v15582_v13 = vadd.f32 %v9157_v11, %v9145_v9  ;;  %v14284_v9 = vld [vmem:[%s14545_s21 + $0x1b48] sm:$0xff]  ;;  %v14283_v15 = vld [vmem:[%s14545_s21 + $0x1b40] sm:$0xff] }
 0x36f   : > { %9371 = vmatpush.bf16.msra.mxu0 %v14248_v57  ;;  %v14303_v57 = vld [vmem:[%s14545_s21 + $0x1be0] sm:$0xff] }
 0x370   : > { %9384 = vmatpush.bf16.msra.mxu1 %v14256_v58  ;;  %v14278_v58 = vld [vmem:[%s14545_s21 + $0x1b18] sm:$0xff] }
 0x371   : > { %9397 = vmatpush.bf16.msra.mxu2 %v14264_v59  ;;  %v14286_v59 = vld [vmem:[%s14545_s21 + $0x1b58] sm:$0xff] }
 0x372   : > { %9410 = vmatpush.bf16.msra.mxu3 %v14272_v60  ;;  %v14294_v60 = vld [vmem:[%s14545_s21 + $0x1b98] sm:$0xff] }
 0x373   : > { %9372 = vmatpush.bf16.msra.mxu0 %v14247_v63  ;;  %v9146_v22 = vpop.f32.mrf.mxu2  ;;  %v14302_v63 = vld [vmem:[%s14545_s21 + $0x1bd8] sm:$0xff] }
 0x374   : > { %9385 = vmatpush.bf16.msra.mxu1 %v14255_v1  ;;  %v9159_v24 = vpop.f32.mrf.mxu3  ;;  %v14313_v22 = vld [vmem:[%s14545_s21 + $0x1c30] sm:$0xff] }
 0x375   : > { %9398 = vmatpush.bf16.msra.mxu2 %v14263_v2  ;;  %v14329_v24 = vld [vmem:[%s14545_s21 + $0x1cb0] sm:$0xff] }
 0x376   : > { %9411 = vmatpush.bf16.msra.mxu3 %v14271_v4 }
 0x377   : > { %9373 = vmatpush.bf16.msra.mxu0 %v14246_v5  ;;  %v14285_v5 = vld [vmem:[%s14545_s21 + $0x1b50] sm:$0xff] }
 0x378   : > { %9386 = vmatpush.bf16.msra.mxu1 %v14254_v6  ;;  %v14293_v6 = vld [vmem:[%s14545_s21 + $0x1b90] sm:$0xff] }
 0x379   : > { %9399 = vmatpush.bf16.msra.mxu2 %v14262_v7  ;;  %v14301_v7 = vld [vmem:[%s14545_s21 + $0x1bd0] sm:$0xff] }
 0x37a   : > { %9412 = vmatpush.bf16.msra.mxu3 %v14270_v10  ;;  %v14292_v10 = vld [vmem:[%s14545_s21 + $0x1b88] sm:$0xff] }
 0x37b   : > { %9374 = vmatpush.bf16.msra.mxu0 %v14245_v14  ;;  %v14275_v14 = vld [vmem:[%s14545_s21 + $0x1b00] sm:$0xff] }
 0x37c   : > { %9387 = vmatpush.bf16.msra.mxu1 %v14253_v16  ;;  %v14291_v16 = vld [vmem:[%s14545_s21 + $0x1b80] sm:$0xff] }
 0x37d   : > { %9400 = vmatpush.bf16.msra.mxu2 %v14261_v17  ;;  %v14314_v17 = vld [vmem:[%s14545_s21 + $0x1c38] sm:$0xff] }
 0x37e   : > { %9413 = vmatpush.bf16.msra.mxu3 %v14269_v18  ;;  %v14322_v18 = vld [vmem:[%s14545_s21 + $0x1c78] sm:$0xff] }
 0x37f   : > { %9375 = vmatpush.bf16.msra.mxu0 %v14244_v19  ;;  %v14330_v19 = vld [vmem:[%s14545_s21 + $0x1cb8] sm:$0xff] }
 0x380   : > { %9388 = vmatpush.bf16.msra.mxu1 %v14252_v20  ;;  %v14299_v20 = vld [vmem:[%s14545_s21 + $0x1bc0] sm:$0xff] }
 0x381   : > { %9401 = vmatpush.bf16.msra.mxu2 %v14260_v21  ;;  %v14338_v21 = vld [vmem:[%s14545_s21 + $0x1cf8] sm:$0xff] }
 0x382   : > { %9414 = vmatpush.bf16.msra.mxu3 %v14268_v23  ;;  %v14321_v23 = vld [vmem:[%s14545_s21 + $0x1c70] sm:$0xff] }
 0x383   : > { %9376 = vmatpush.bf16.msra.mxu0 %v14243_v25  ;;  %v9170_v50 = vpop.f32.mrf.mxu0  ;;  %v14337_v25 = vld [vmem:[%s14545_s21 + $0x1cf0] sm:$0xff] }
 0x384   : > { %9389 = vmatpush.bf16.msra.mxu1 %v14251_v26  ;;  %v9171_v51 = vadd.f32 %v9170_v50, %v15582_v13  ;;  %v9183_v53 = vpop.f32.mrf.mxu1  ;;  %v14312_v26 = vld [vmem:[%s14545_s21 + $0x1c28] sm:$0xff]  ;;  %v14325_v50 = vld [vmem:[%s14545_s21 + $0x1c90] sm:$0xff] }
 0x385   : > { %9402 = vmatpush.bf16.msra.mxu2 %v14259_v27  ;;  %v14320_v27 = vld [vmem:[%s14545_s21 + $0x1c68] sm:$0xff] }
 0x386   : > { %9415 = vmatpush.bf16.msra.mxu3 %v14267_v32  ;;  %9377 = vmatmul.bf16.vlgmr.msra.gmra.mxu0 %v2219_v33  ;;  %v9184_v56 = vadd.f32 %v9183_v53, %v9171_v51  ;;  %v14311_v32 = vld [vmem:[%s14545_s21 + $0x1c20] sm:$0xff]  ;;  %v14333_v51 = vld [vmem:[%s14545_s21 + $0x1cd0] sm:$0xff]  ;;  %v14316_v53 = vld [vmem:[%s14545_s21 + $0x1c48] sm:$0xff] }
 0x387   : > { %9421 = vmatpush.bf16.msrb.mxu0 %v14282_v28  ;;  %9390 = vmatmul.bf16.vlgmr.msra.gmra.mxu1 %v2220_v36  ;;  %v14328_v28 = vld [vmem:[%s14545_s21 + $0x1ca8] sm:$0xff] }
 0x388   : > { %9434 = vmatpush.bf16.msrb.mxu1 %v14290_v29  ;;  %9403 = vmatmul.bf16.vlgmr.msra.gmra.mxu2 %v2221_v34  ;;  %v14336_v29 = vld [vmem:[%s14545_s21 + $0x1ce8] sm:$0xff]  ;;  %v14319_v34 = vld [vmem:[%s14545_s21 + $0x1c60] sm:$0xff] }
 0x389   : > { %9447 = vmatpush.bf16.msrb.mxu2 %v14298_v31  ;;  %9416 = vmatmul.bf16.vlgmr.msra.gmra.mxu3 %v2222_v37  ;;  %v14335_v37 = vld [vmem:[%s14545_s21 + $0x1ce0] sm:$0xff] }
 0x38a   : > { %9460 = vmatpush.bf16.msrb.mxu3 %v14306_v35  ;;  %v14327_v35 = vld [vmem:[%s14545_s21 + $0x1ca0] sm:$0xff] }
 0x38b   : > { %9422 = vmatpush.bf16.msrb.mxu0 %v14281_v38  ;;  %v9196_v61 = vpop.f32.mrf.mxu2  ;;  %v9172_v1 = vpop.f32.mrf.mxu0  ;;  %v14310_v38 = vld [vmem:[%s14545_s21 + $0x1c18] sm:$0xff] }
 0x38c   : > { %9435 = vmatpush.bf16.msrb.mxu1 %v14289_v39  ;;  %v9197_v62 = vadd.f32 %v9196_v61, %v9184_v56  ;;  %v9209_v0 = vpop.f32.mrf.mxu3  ;;  %v9185_v4 = vpop.f32.mrf.mxu1  ;;  %v14318_v39 = vld [vmem:[%s14545_s21 + $0x1c58] sm:$0xff]  ;;  %v14332_v56 = vld [vmem:[%s14545_s21 + $0x1cc8] sm:$0xff] }
 0x38d   : > { %9448 = vmatpush.bf16.msrb.mxu2 %v14297_v40  ;;  %v14326_v40 = vld [vmem:[%s14545_s21 + $0x1c98] sm:$0xff]  ;;  %v2231_v1 = vld [vmem:[#allocation1 + $0x12] sm:$0xff] }
 0x38e   : > { %9461 = vmatpush.bf16.msrb.mxu3 %v14305_v45  ;;  %v9210_v2 = vadd.f32 %v9209_v0, %v9197_v62  ;;  %v14346_v61 = vld [vmem:[%s14545_s21 + $0x1d38] sm:$0xff] }
 0x38f   : > { %9423 = vmatpush.bf16.msrb.mxu0 %v14280_v46  ;;  %v14354_v62 = vld [vmem:[%s14545_s21 + $0x1d78] sm:$0xff] }
 0x390   : > { %9436 = vmatpush.bf16.msrb.mxu1 %v14288_v47  ;;  %v14309_v47 = vld [vmem:[%s14545_s21 + $0x1c10] sm:$0xff]  ;;  %v2229_v0 = vld [vmem:[#allocation1] sm:$0xff] }
 0x391   : > { %9449 = vmatpush.bf16.msrb.mxu2 %v14296_v48  ;;  %v2232_v4 = vld [vmem:[#allocation1 + $0x1b] sm:$0xff] }
 0x392   : > { %9462 = vmatpush.bf16.msrb.mxu3 %v14304_v49  ;;  %v14317_v49 = vld [vmem:[%s14545_s21 + $0x1c50] sm:$0xff] }
 0x393   : > { %9424 = vmatpush.bf16.msrb.mxu0 %v14279_v52  ;;  %v9198_v11 = vpop.f32.mrf.mxu2  ;;  %v14308_v52 = vld [vmem:[%s14545_s21 + $0x1c08] sm:$0xff] }
 0x394   : > { %9437 = vmatpush.bf16.msrb.mxu1 %v14287_v54  ;;  %v9211_v13 = vpop.f32.mrf.mxu3  ;;  %v14324_v54 = vld [vmem:[%s14545_s21 + $0x1c88] sm:$0xff] }
 0x395   : > { %9450 = vmatpush.bf16.msrb.mxu2 %v14295_v55 }
 0x396   : > { %9463 = vmatpush.bf16.msrb.mxu3 %v14303_v57 }
 0x397   : > { %9425 = vmatpush.bf16.msrb.mxu0 %v14278_v58  ;;  %v14307_v58 = vld [vmem:[%s14545_s21 + $0x1c00] sm:$0xff] }
 0x398   : > { %9438 = vmatpush.bf16.msrb.mxu1 %v14286_v59  ;;  %v14315_v59 = vld [vmem:[%s14545_s21 + $0x1c40] sm:$0xff] }
 0x399   : > { %9451 = vmatpush.bf16.msrb.mxu2 %v14294_v60  ;;  %v14323_v60 = vld [vmem:[%s14545_s21 + $0x1c80] sm:$0xff] }
 0x39a   : > { %9464 = vmatpush.bf16.msrb.mxu3 %v14302_v63  ;;  %v14331_v63 = vld [vmem:[%s14545_s21 + $0x1cc0] sm:$0xff] }
 0x39b   : > { %9426 = vmatpush.bf16.msrb.mxu0 %v14277_v3  ;;  %v14345_v3 = vld [vmem:[%s14545_s21 + $0x1d30] sm:$0xff] }
 0x39c   : > { %9439 = vmatpush.bf16.msrb.mxu1 %v14285_v5  ;;  %v14353_v5 = vld [vmem:[%s14545_s21 + $0x1d70] sm:$0xff] }
 0x39d   : > { %9452 = vmatpush.bf16.msrb.mxu2 %v14293_v6  ;;  %v14344_v6 = vld [vmem:[%s14545_s21 + $0x1d28] sm:$0xff] }
 0x39e   : > { %9465 = vmatpush.bf16.msrb.mxu3 %v14301_v7  ;;  %v14352_v7 = vld [vmem:[%s14545_s21 + $0x1d68] sm:$0xff] }
 0x39f   : > { %9427 = vmatpush.bf16.msrb.mxu0 %v14276_v8 }
 0x3a0   : > { %9440 = vmatpush.bf16.msrb.mxu1 %v14284_v9 }
 0x3a1   : > { %9453 = vmatpush.bf16.msrb.mxu2 %v14292_v10  ;;  %v14343_v10 = vld [vmem:[%s14545_s21 + $0x1d20] sm:$0xff] }
 0x3a2   : > { %9466 = vmatpush.bf16.msrb.mxu3 %v14300_v12  ;;  %v14351_v12 = vld [vmem:[%s14545_s21 + $0x1d60] sm:$0xff] }
 0x3a3   : > { %9428 = vmatpush.bf16.msrb.mxu0 %v14275_v14  ;;  %v9222_v30 = vpop.f32.mrf.mxu0  ;;  %v14342_v14 = vld [vmem:[%s14545_s21 + $0x1d18] sm:$0xff] }
 0x3a4   : > { %9441 = vmatpush.bf16.msrb.mxu1 %v14283_v15  ;;  %v9223_v31 = vadd.f32 %v9222_v30, %v9210_v2  ;;  %v9235_v33 = vpop.f32.mrf.mxu1  ;;  %v2230_v2 = vld [vmem:[#allocation1 + $0x9] sm:$0xff]  ;;  %v14350_v15 = vld [vmem:[%s14545_s21 + $0x1d58] sm:$0xff] }
 0x3a5   : > { %9454 = vmatpush.bf16.msrb.mxu2 %v14291_v16  ;;  %v2233_v30 = vld [vmem:[#allocation1 + $0x24] sm:$0xff] }
 0x3a6   : > { %9467 = vmatpush.bf16.msrb.mxu3 %v14299_v20  ;;  %9429 = vmatmul.bf16.vlgmr.msrb.gmra.mxu0 %v15604_v41  ;;  %v9236_v36 = vadd.f32 %v9235_v33, %v9223_v31  ;;  %v2234_v31 = vld [vmem:[#allocation1 + $0x2d] sm:$0xff] }
 0x3a7   : > { %9473 = vmatpush.bf16.msra.mxu0 %v14314_v17  ;;  %9442 = vmatmul.bf16.vlgmr.msrb.gmra.mxu1 %v15608_v43  ;;  %v14334_v43 = vld [vmem:[%s14545_s21 + $0x1cd8] sm:$0xff] }
 0x3a8   : > { %9486 = vmatpush.bf16.msra.mxu1 %v14322_v18  ;;  %9455 = vmatmul.bf16.vlgmr.msrb.gmra.mxu2 %v15606_v42 }
 0x3a9   : > { %9499 = vmatpush.bf16.msra.mxu2 %v14330_v19  ;;  %9468 = vmatmul.bf16.vlgmr.msrb.gmra.mxu3 %v15610_v44 }
 0x3aa   : > { %9512 = vmatpush.bf16.msra.mxu3 %v14338_v21  ;;  %v14341_v21 = vld [vmem:[%s14545_s21 + $0x1d10] sm:$0xff] }
 0x3ab   : > { %9474 = vmatpush.bf16.msra.mxu0 %v14313_v22  ;;  %v9248_v41 = vpop.f32.mrf.mxu2  ;;  %v9224_v45 = vpop.f32.mrf.mxu0 }
 0x3ac   : > { %9487 = vmatpush.bf16.msra.mxu1 %v14321_v23  ;;  %v9249_v42 = vadd.f32 %v9248_v41, %v9236_v36  ;;  %v9261_v44 = vpop.f32.mrf.mxu3  ;;  %v9237_v48 = vpop.f32.mrf.mxu1  ;;  %v14349_v23 = vld [vmem:[%s14545_s21 + $0x1d50] sm:$0xff] }
 0x3ad   : > { %9500 = vmatpush.bf16.msra.mxu2 %v14329_v24  ;;  %v14340_v24 = vld [vmem:[%s14545_s21 + $0x1d08] sm:$0xff] }
 0x3ae   : > { %9513 = vmatpush.bf16.msra.mxu3 %v14337_v25  ;;  %v9262_v46 = vadd.f32 %v9261_v44, %v9249_v42  ;;  %v14348_v25 = vld [vmem:[%s14545_s21 + $0x1d48] sm:$0xff] }
 0x3af   : > { %9475 = vmatpush.bf16.msra.mxu0 %v14312_v26 }
 0x3b0   : > { %9488 = vmatpush.bf16.msra.mxu1 %v14320_v27 }
 0x3b1   : > { %9501 = vmatpush.bf16.msra.mxu2 %v14328_v28  ;;  %v14339_v28 = vld [vmem:[%s14545_s21 + $0x1d00] sm:$0xff] }
 0x3b2   : > { %9514 = vmatpush.bf16.msra.mxu3 %v14336_v29  ;;  %v14347_v29 = vld [vmem:[%s14545_s21 + $0x1d40] sm:$0xff] }
 0x3b3   : > { %9476 = vmatpush.bf16.msra.mxu0 %v14311_v32  ;;  %v9250_v55 = vpop.f32.mrf.mxu2 }
 0x3b4   : > { %9489 = vmatpush.bf16.msra.mxu1 %v14319_v34  ;;  %v9263_v57 = vpop.f32.mrf.mxu3 }
 0x3b5   : > { %9502 = vmatpush.bf16.msra.mxu2 %v14327_v35 }
 0x3b6   : > { %9515 = vmatpush.bf16.msra.mxu3 %v14335_v37 }
 0x3b7   : > { %9477 = vmatpush.bf16.msra.mxu0 %v14310_v38 }
 0x3b8   : > { %9490 = vmatpush.bf16.msra.mxu1 %v14318_v39 }
 0x3b9   : > { %9503 = vmatpush.bf16.msra.mxu2 %v14326_v40 }
 0x3ba   : > { %9516 = vmatpush.bf16.msra.mxu3 %v14334_v43 }
 0x3bb   : > { %9478 = vmatpush.bf16.msra.mxu0 %v14309_v47 }
 0x3bc   : > { %9491 = vmatpush.bf16.msra.mxu1 %v14317_v49 }
 0x3bd   : > { %9504 = vmatpush.bf16.msra.mxu2 %v14325_v50 }
 0x3be   : > { %9517 = vmatpush.bf16.msra.mxu3 %v14333_v51 }
 0x3bf   : > { %9479 = vmatpush.bf16.msra.mxu0 %v14308_v52 }
 0x3c0   : > { %9492 = vmatpush.bf16.msra.mxu1 %v14316_v53 }
 0x3c1   : > { %9505 = vmatpush.bf16.msra.mxu2 %v14324_v54 }
 0x3c2   : > { %9518 = vmatpush.bf16.msra.mxu3 %v14332_v56 }
 0x3c3   : > { %9480 = vmatpush.bf16.msra.mxu0 %v14307_v58  ;;  %v9274_v8 = vpop.f32.mrf.mxu0 }
 0x3c4   : > { %9493 = vmatpush.bf16.msra.mxu1 %v14315_v59  ;;  %v9275_v9 = vadd.f32 %v9274_v8, %v9262_v46  ;;  %v9287_v11 = vpop.f32.mrf.mxu1 }
 0x3c5   : > { %9506 = vmatpush.bf16.msra.mxu2 %v14323_v60 }
 0x3c6   : > { %9519 = vmatpush.bf16.msra.mxu3 %v14331_v63  ;;  %9481 = vmatmul.bf16.vlgmr.msra.gmra.mxu0 %v2229_v0  ;;  %v9288_v13 = vadd.f32 %v9287_v11, %v9275_v9 }
 0x3c7   : > { %9525 = vmatpush.bf16.msrb.mxu0 %v14346_v61  ;;  %9494 = vmatmul.bf16.vlgmr.msra.gmra.mxu1 %v2230_v2 }
 0x3c8   : > { %9538 = vmatpush.bf16.msrb.mxu1 %v14354_v62  ;;  %9507 = vmatmul.bf16.vlgmr.msra.gmra.mxu2 %v2231_v1 }
 0x3c9   : > { %9520 = vmatmul.bf16.vlgmr.msra.gmra.mxu3 %v2232_v4 }
 0x3cb   : > { %9526 = vmatpush.bf16.msrb.mxu0 %v14345_v3  ;;  %v9300_v16 = vpop.f32.mrf.mxu2  ;;  %v9276_v19 = vpop.f32.mrf.mxu0 }
 0x3cc   : > { %9539 = vmatpush.bf16.msrb.mxu1 %v14353_v5  ;;  %v9301_v17 = vadd.f32 %v9300_v16, %v9288_v13  ;;  %v9313_v18 = vpop.f32.mrf.mxu3  ;;  %v9289_v22 = vpop.f32.mrf.mxu1 }
 0x3ce   : > { %v9314_v20 = vadd.f32 %v9313_v18, %v9301_v17 }
 0x3cf   : > { %9527 = vmatpush.bf16.msrb.mxu0 %v14344_v6 }
 0x3d0   : > { %9540 = vmatpush.bf16.msrb.mxu1 %v14352_v7 }
 0x3d3   : > { %9528 = vmatpush.bf16.msrb.mxu0 %v14343_v10  ;;  %v9302_v26 = vpop.f32.mrf.mxu2 }
 0x3d4   : > { %9541 = vmatpush.bf16.msrb.mxu1 %v14351_v12  ;;  %v9315_v27 = vpop.f32.mrf.mxu3 }
 0x3d7   : > { %9529 = vmatpush.bf16.msrb.mxu0 %v14342_v14 }
 0x3d8   : > { %9542 = vmatpush.bf16.msrb.mxu1 %v14350_v15 }
 0x3db   : > { %9530 = vmatpush.bf16.msrb.mxu0 %v14341_v21 }
 0x3dc   : > { %9543 = vmatpush.bf16.msrb.mxu1 %v14349_v23 }
 0x3df   : > { %9531 = vmatpush.bf16.msrb.mxu0 %v14340_v24 }
 0x3e0   : > { %9544 = vmatpush.bf16.msrb.mxu1 %v14348_v25 }
 0x3e3   : > { %9532 = vmatpush.bf16.msrb.mxu0 %v14339_v28  ;;  %v9326_v32 = vpop.f32.mrf.mxu0 }
 0x3e4   : > { %9545 = vmatpush.bf16.msrb.mxu1 %v14347_v29  ;;  %v9327_v33 = vadd.f32 %v9326_v32, %v9314_v20  ;;  %v9339_v34 = vpop.f32.mrf.mxu1 }
 0x3e6   : > { %9533 = vmatmul.bf16.vlgmr.msrb.gmra.mxu0 %v2233_v30  ;;  %v9340_v35 = vadd.f32 %v9339_v34, %v9327_v33 }
 0x3e7   : > { %9546 = vmatmul.bf16.vlgmr.msrb.gmra.mxu1 %v2234_v31 }
 0x3eb   : > { %v9352_v36 = vpop.f32.mrf.mxu2  ;;  %v9328_v39 = vpop.f32.mrf.mxu0 }
 0x3ec   : > { %v9353_v37 = vadd.f32 %v9352_v36, %v9340_v35  ;;  %v9365_v38 = vpop.f32.mrf.mxu3  ;;  %v9341_v41 = vpop.f32.mrf.mxu1 }
 0x3ee   : > { %v9366_v40 = vadd.f32 %v9365_v38, %v9353_v37 }
 0x3f3   : > { %v9354_v42 = vpop.f32.mrf.mxu2 }
 0x3f4   : > { %v9367_v43 = vpop.f32.mrf.mxu3 }
 0x403   : > { %v9378_v44 = vpop.f32.mrf.mxu0 }
 0x404   : > { %v9379_v45 = vadd.f32 %v9378_v44, %v9366_v40  ;;  %v9391_v46 = vpop.f32.mrf.mxu1 }
 0x406   : > { %v9392_v47 = vadd.f32 %v9391_v46, %v9379_v45 }
 0x40b   : > { %v9404_v48 = vpop.f32.mrf.mxu2  ;;  %v9380_v50 = vpop.f32.mrf.mxu0 }
 0x40c   : > { %v9417_v49 = vpop.f32.mrf.mxu3  ;;  %v9393_v51 = vpop.f32.mrf.mxu1  ;;  %v9405_v63 = vadd.f32 %v9404_v48, %v9392_v47 }
 0x40e   : > { %v9418_v1 = vadd.f32 %v9417_v49, %v9405_v63 }
 0x413   : > { %v9406_v52 = vpop.f32.mrf.mxu2 }
 0x414   : > { %v9419_v53 = vpop.f32.mrf.mxu3 }
 0x423   : > { %v9430_v54 = vpop.f32.mrf.mxu0 }
 0x424   : > { %v9443_v55 = vpop.f32.mrf.mxu1  ;;  %v9431_v2 = vadd.f32 %v9430_v54, %v9418_v1 }
 0x426   : > { %v9444_v7 = vadd.f32 %v9443_v55, %v9431_v2 }
 0x42b   : > { %v9456_v56 = vpop.f32.mrf.mxu2  ;;  %v9432_v58 = vpop.f32.mrf.mxu0 }
 0x42c   : > { %v9469_v57 = vpop.f32.mrf.mxu3  ;;  %v9445_v59 = vpop.f32.mrf.mxu1  ;;  %v9457_v8 = vadd.f32 %v9456_v56, %v9444_v7 }
 0x42e   : > { %v9470_v10 = vadd.f32 %v9469_v57, %v9457_v8 }
 0x433   : > { %v9458_v60 = vpop.f32.mrf.mxu2 }
 0x434   : > { %v9471_v61 = vpop.f32.mrf.mxu3 }
 0x443   : > { %v9482_v62 = vpop.f32.mrf.mxu0 }
 0x444   : > { %v9495_v0 = vpop.f32.mrf.mxu1  ;;  %v9483_v12 = vadd.f32 %v9482_v62, %v9470_v10 }
 0x446   : > { %v9496_v13 = vadd.f32 %v9495_v0, %v9483_v12 }
 0x44b   : > { %v9508_v3 = vpop.f32.mrf.mxu2  ;;  %v9484_v4 = vpop.f32.mrf.mxu0 }
 0x44c   : > { %v9521_v5 = vpop.f32.mrf.mxu3  ;;  %v9497_v6 = vpop.f32.mrf.mxu1  ;;  %v9509_v14 = vadd.f32 %v9508_v3, %v9496_v13 }
 0x44e   : > { %v9522_v15 = vadd.f32 %v9521_v5, %v9509_v14 }
 0x453   : > { %v9510_v9 = vpop.f32.mrf.mxu2 }
 0x454   : > { %v9523_v11 = vpop.f32.mrf.mxu3 }
 0x463   : > { %v9534_v16 = vpop.f32.mrf.mxu0 }
 0x464   : > { %v9535_v17 = vadd.f32 %v9534_v16, %v9522_v15  ;;  %v9547_v18 = vpop.f32.mrf.mxu1 }
 0x466   : > { %v9548_v19 = vadd.f32 %v9547_v18, %v9535_v17 }
 0x468   : > { %9551 = vst [vmem:[%s183_s27] sm:$0x3] %v9548_v19 }
 0x46b   : > { %v9536_v20 = vpop.f32.mrf.mxu0 }
 0x46c   : > { %v9549_v21 = vpop.f32.mrf.mxu1 }
 0x46d PF: > { %p12_p8 = scmp.ge.s32.totalorder %s14503_s14, 4   ;;  %s15713_s9 = smov %s14454_s10 }
 0x46e   : > { %s15714_s10 = smov %s14458_s11  ;;  %s15715_s11 = smov %s14513_s17 }
 0x46f   : > { %s15716_s12 = smov %s14503_s14  ;;  %14 = sbr.rel (!%p12_p8) target bundleno = 3 (0x3), region = 71 }
 0x474   :  { %9571 = vsyncpa [#allocation3], 1 }
 0x475   :  { %9573 = vsyncpa [#allocation3 + $0x1], 1 }

</bundles_post_ra>
